<compile_context>
chip_gen: v6e
topology: v6e:2x2x1
jax: 0.10.0
libtpu: 0.0.40
codegen_flags: <defaults>
</compile_context>

<pallas_src>
import functools

import numpy as np
import jax
import jax.numpy as jnp
from jax.experimental import pallas as pl
from jax.experimental.pallas import tpu as pltpu

VMEM_SPEC = pl.BlockSpec(memory_space=pltpu.MemorySpace.VMEM)


# ------------------------- the single fused kernel --------------------------

def _timexer_fwd_kernel(
    # activations
    x_tp_ref, x_ex_ref,
    # embedding weights
    w_val_ref, w_ex_ref,
    # stacked attention params: (8*L, D, D) / (8*L, 1, D)
    attn_w_ref, attn_b_ref,
    # FFN + layer norms
    w1_ref, b1_ref, w2_ref, b2_ref, ln_ref,
    # head weights (Lx, D, D)
    w_head_ref,
    # param-derived vectors (Mx+4, D) and packed static constants
    pvec_ref, cst_ref,
    # output
    o_ref,
    *, e_layers, B, Lx, inv_T, coff,
):
    f32 = jnp.float32
    Mx = B * Lx

    def C(name):
        r0, nr, nc = coff[name]
        return cst_ref[r0:r0 + nr, :nc]

    def layer_norm(h, gamma, beta):
        mu = jnp.mean(h, axis=-1, keepdims=True)
        d = h - mu
        var = jnp.mean(d * d, axis=-1, keepdims=True)
        return d * jax.lax.rsqrt(var + 1e-5) * gamma + beta

    def gelu_exact(h):
        # Exact (erf) GELU; erf via Abramowitz–Stegun 7.1.26 (|err| < 1.5e-7).
        z = h * 0.7071067811865476
        az = jnp.abs(z)
        t = 1.0 / (1.0 + 0.3275911 * az)
        poly = t * (0.254829592 + t * (-0.284496736 + t * (1.421413741
                 + t * (-1.453152027 + t * 1.061405429))))
        erf_abs = 1.0 - poly * jnp.exp(-az * az)
        erf_z = jnp.where(z >= 0.0, erf_abs, -erf_abs)
        return 0.5 * h * (1.0 + erf_z)

    def mha(xq, xkv, rep, hm, rsel, bias, wq, bq, wk, bk, wv, bv, wo, bo):
        # Heads stacked along sublanes (rows h*Mq+i).  `hm` restricts the
        # score contraction / the P@V output to each head's D/H feature slice,
        # so there is no head loop, no lane slicing, and a single softmax.
        q = jnp.dot(xq, wq, preferred_element_type=f32) + bq       # scale folded in
        k = jnp.dot(xkv, wk, preferred_element_type=f32) + bk
        v = jnp.dot(xkv, wv, preferred_element_type=f32) + bv
        qs = jnp.dot(rep, q, preferred_element_type=f32) * hm      # (H*Mq, D)
        s = jax.lax.dot_general(qs, k, (((1,), (1,)), ((), ())),
                                preferred_element_type=f32) + bias  # (H*Mq, Mk)
        s = s - jnp.max(s, axis=-1, keepdims=True)
        p = jnp.exp(s)
        p = p * pl.reciprocal(jnp.sum(p, axis=-1, keepdims=True), approx=True)
        o = jnp.dot(p, v, preferred_element_type=f32)               # (H*Mq, D)
        o = jnp.dot(rsel, o * hm, preferred_element_type=f32)       # (Mq, D)
        return jnp.dot(o, wo, preferred_element_type=f32) + bo

    # ---- static constants (all from the packed blob; 8-aligned row slices) --
    rep_s, mask_s = C("rep_self"), C("mask_self")
    hm_s, rsel_s = C("hm_self"), C("rsel_self")
    rep_c, mask_c = C("rep_cross"), C("mask_cross")
    hm_c, rsel_c = C("hm_cross"), C("rsel_cross")
    gsel, gselT = C("gsel"), C("gselT")
    bagg, sel_mat, sel_head = C("bagg"), C("sel_mat"), C("sel_head")

    const_add = pvec_ref[0:Mx, :]           # positional emb + glb token rows
    b_ex = pvec_ref[Mx:Mx + 1, :]
    b_head = pvec_ref[Mx + 1:Mx + 2, :]
    nf_g = pvec_ref[Mx + 2:Mx + 3, :]
    nf_b = pvec_ref[Mx + 3:Mx + 4, :]

    # ---- non-stationary normalization (per batch / per variate over time) ---
    x_tp = x_tp_ref[...]                                           # (B*P, PL)
    bsum = jnp.dot(bagg, x_tp, preferred_element_type=f32)         # per-batch sums
    mean = jnp.sum(bsum, axis=-1, keepdims=True) * inv_T
    xc = x_tp - mean
    bsq = jnp.dot(bagg, xc * xc, preferred_element_type=f32)
    var = jnp.sum(bsq, axis=-1, keepdims=True) * inv_T
    x_tp = xc * jax.lax.rsqrt(var + 1e-5)

    x_ex = x_ex_ref[...]                                           # (B*(N-1), T)
    mu = jnp.mean(x_ex, axis=-1, keepdims=True)
    xec = x_ex - mu
    var_e = jnp.mean(xec * xec, axis=-1, keepdims=True)
    x_ex = xec * jax.lax.rsqrt(var_e + 1e-5)

    # ---- EnEmbedding: patch value emb + positional emb + glb token ----------
    emb = jnp.dot(x_tp, w_val_ref[...], preferred_element_type=f32)    # (B*P, D)
    x = jnp.dot(sel_mat, emb, preferred_element_type=f32) + const_add  # (Mx, D)

    # ---- DataEmbedding_inverted on the exogenous variates -------------------
    cross = jnp.dot(x_ex, w_ex_ref[...], preferred_element_type=f32) + b_ex

    # ---- encoder layers ------------------------------------------------------
    for layer in range(e_layers):
        ln = ln_ref[layer]                                         # (6, D)

        def W(j):
            return attn_w_ref[j * e_layers + layer]

        def Bi(j):
            return attn_b_ref[j * e_layers + layer]

        # self attention + residual + norm1
        attn = mha(x, x, rep_s, hm_s, rsel_s, mask_s,
                   W(0), Bi(0), W(1), Bi(1), W(2), Bi(2), W(3), Bi(3))
        x = layer_norm(x + attn, ln[0:1, :], ln[1:2, :])

        # cross attention only on the B global-token rows
        x_glb = jnp.dot(gsel, x, preferred_element_type=f32)       # (B, D)
        cattn = mha(x_glb, cross, rep_c, hm_c, rsel_c, mask_c,
                    W(4), Bi(4), W(5), Bi(5), W(6), Bi(6), W(7), Bi(7))
        x_glb_n = layer_norm(x_glb + cattn, ln[2:3, :], ln[3:4, :])
        x = x + jnp.dot(gselT, x_glb_n - x_glb, preferred_element_type=f32)

        # FFN: pointwise matmul -> exact GELU -> matmul, residual + norm3
        h = jnp.dot(x, w1_ref[layer], preferred_element_type=f32) + b1_ref[layer]
        h = gelu_exact(h)
        y = jnp.dot(h, w2_ref[layer], preferred_element_type=f32) + b2_ref[layer]
        x = layer_norm(x + y, ln[4:5, :], ln[5:6, :])

    # ---- final encoder LayerNorm --------------------------------------------
    x = layer_norm(x, nf_g, nf_b)

    # ---- FlattenHead: one gather matmul + Lx weight matmuls, single store ---
    xg = jnp.dot(sel_head, x, preferred_element_type=f32)          # (Lx*B, D)
    o = b_head
    for l in range(Lx):
        o = o + jnp.dot(xg[l * B:(l + 1) * B, :], w_head_ref[l],
                        preferred_element_type=f32)
    o_ref[...] = o


# --------------------------------- helpers -----------------------------------

def positional_embedding(length, d_model):
    position = np.arange(length, dtype=np.float64)[:, None]
    div_term = np.exp(
        np.arange(0, d_model, 2, dtype=np.float64) * -(np.log(10000.0) / d_model))
    pe = np.zeros((length, d_model), dtype=np.float32)
    pe[:, 0::2] = np.sin(position * div_term)
    pe[:, 1::2] = np.cos(position * div_term)
    return pe


def _pack_constants(named):
    """Row-stack differently shaped f32 constants into one blob.

    Each section is padded to the blob lane-width and to a multiple of 8 rows,
    so every in-kernel slice starts at a sublane-tile boundary and lane 0.
    Returns (blob, {name: (row0, rows, cols)}).
    """
    width = max(int(a.shape[1]) for a in named.values())
    blocks, offsets, r0 = [], {}, 0
    for name, a in named.items():
        a = np.asarray(a, np.float32)
        nr = -(-a.shape[0] // 8) * 8
        blk = np.zeros((nr, width), np.float32)
        blk[:a.shape[0], :a.shape[1]] = a
        blocks.append(blk)
        offsets[name] = (r0, int(a.shape[0]), int(a.shape[1]))
        r0 += nr
    return np.concatenate(blocks, axis=0), offsets


# --------------------------------- wrapper -----------------------------------

def model_forward(params, x_enc, cfg):
    B, T, N = x_enc.shape
    D = cfg["d_model"]
    H = cfg["n_heads"]
    PL = cfg["patch_len"]
    P = T // PL
    Lx = P + 1
    L = cfg["e_layers"]
    E = D // H
    Mx = B * Lx
    Mk = B * (N - 1)
    scale = 1.0 / float(np.sqrt(E))

    xf = x_enc.astype(jnp.float32)
    # target variate re-laid-out as (B*P, patch_len) patches (layout plumbing)
    x_tp = xf[:, :, -1].reshape(B * P, PL)
    # exogenous variates: one row per (batch, variate) time series
    x_ex = jnp.transpose(xf[:, :, :-1], (0, 2, 1)).reshape(Mk, T)

    # ------------- static constants (numpy, embedded at trace time) ----------
    r = np.arange(Mx)
    mask_self = np.where((r[:, None] // Lx) == (r[None, :] // Lx), 0.0, -1e9)
    cb, cc = np.arange(B), np.arange(Mk)
    mask_cross = np.where(cb[:, None] == (cc[None, :] // (N - 1)), 0.0, -1e9)
    hm = np.zeros((H, D), np.float32)
    for h in range(H):
        hm[h, h * E:(h + 1) * E] = 1.0
    rep_self = np.tile(np.eye(Mx, dtype=np.float32), (H, 1))       # (H*Mx, Mx)
    rep_cross = np.tile(np.eye(B, dtype=np.float32), (H, 1))       # (H*B, B)
    gsel = np.zeros((B, Mx), np.float32)
    gsel[np.arange(B), np.arange(B) * Lx + (Lx - 1)] = 1.0
    bagg = ((np.arange(B * P)[:, None] // P) ==
            (np.arange(B * P)[None, :] // P)).astype(np.float32)
    sel_mat = np.zeros((Mx, B * P), np.float32)
    sel_head = np.zeros((Lx * B, Mx), np.float32)
    patch_pos = np.zeros((Mx, P), np.float32)
    glb_pos = np.zeros((Mx, 1), np.float32)
    for b in range(B):
        for p in range(P):
            sel_mat[b * Lx + p, b * P + p] = 1.0
            patch_pos[b * Lx + p, p] = 1.0
        for l in range(Lx):
            sel_head[l * B + b, b * Lx + l] = 1.0
        glb_pos[b * Lx + (Lx - 1), 0] = 1.0

    cblob, coff = _pack_constants(dict(
        rep_self=rep_self, mask_self=np.tile(mask_self, (H, 1)),
        hm_self=np.repeat(hm, Mx, axis=0), rsel_self=rep_self.T,
        rep_cross=rep_cross, mask_cross=np.tile(mask_cross, (H, 1)),
        hm_cross=np.repeat(hm, B, axis=0), rsel_cross=rep_cross.T,
        gsel=gsel, gselT=gsel.T, bagg=bagg, sel_mat=sel_mat, sel_head=sel_head))

    # ------------- param-derived vectors (tiny trace-time ops) ---------------
    pe = jnp.asarray(positional_embedding(P, D))                    # (P, D)
    # TODO(synk): reference cats glb_token (enc_in channels) onto a single-variate
    # en path; only channel 0 is shape-consistent, so channel 0 is used.
    glb0 = params["glb_token"][0, 0, 0][None, :]                    # (1, D)
    const_add = jnp.asarray(patch_pos) @ pe + jnp.asarray(glb_pos) * glb0
    pvec = jnp.concatenate(
        [const_add, params["b_ex"], params["b_head"], params["norm_f"]], axis=0)

    # Stack attention weights on a leading axis (free in-kernel indexing) and
    # fold the 1/sqrt(E) softmax scale into the Q projection (weight transform).
    attn_w = jnp.stack([params["wq_s"] * scale, params["wk_s"], params["wv_s"],
                        params["wo_s"], params["wq_c"] * scale, params["wk_c"],
                        params["wv_c"], params["wo_c"]]).reshape(8 * L, D, D)
    attn_b = jnp.stack([params["bq_s"] * scale, params["bk_s"], params["bv_s"],
                        params["bo_s"], params["bq_c"] * scale, params["bk_c"],
                        params["bv_c"], params["bo_c"]]).reshape(8 * L, 1, D)

    # per-token-position FlattenHead weights (pure trace-time re-layout)
    w_head_l = params["w_head"].reshape(D, Lx, D).transpose(1, 0, 2)  # (Lx, D, D)

    kern = functools.partial(_timexer_fwd_kernel, e_layers=L, B=B, Lx=Lx,
                             inv_T=1.0 / float(T), coff=coff)

    out2d = pl.pallas_call(
        kern,
        out_shape=jax.ShapeDtypeStruct((B, D), jnp.float32),
        in_specs=[VMEM_SPEC] * 14,
        out_specs=VMEM_SPEC,
    )(
        x_tp, x_ex, params["w_value"], params["w_ex"],
        attn_w, attn_b,
        params["w1"], params["b1"], params["w2"], params["b2"], params["ln"],
        w_head_l, pvec, jnp.asarray(cblob),
    )
    # TODO(synk): reference returns `dec_out.permute(0,2,1)` with dec_out undefined;
    # interpreted as the FlattenHead output -> (B, d_model, 1).
    return out2d.reshape(B, D, 1)


# ------------------------------ params init ----------------------------------

def init_params(key, cfg):
    N, T = cfg["enc_in"], cfg["seq_len"]
    D, F = cfg["d_model"], cfg["d_ff"]
    L = cfg["e_layers"]
    PL = cfg["patch_len"]
    P = T // PL
    Lx = P + 1

    ks = iter(jax.random.split(key, 32))

    def nrm(shape, s=0.02):
        return s * jax.random.normal(next(ks), shape, jnp.float32)

    ln_one = jnp.stack([jnp.ones((D,), jnp.float32) if i % 2 == 0
                        else jnp.zeros((D,), jnp.float32) for i in range(6)])

    params = {
        "w_value": nrm((PL, D)),                         # Linear(patch_len, d_model, bias=False)
        "glb_token": jax.random.normal(next(ks), (1, N, 1, D), jnp.float32),
        "w_ex": nrm((T, D)),                             # DataEmbedding_inverted Linear
        "b_ex": jnp.zeros((1, D), jnp.float32),
        "w1": nrm((L, D, F)), "b1": jnp.zeros((L, 1, F), jnp.float32),   # Conv1d(d_model, d_ff, 1)
        "w2": nrm((L, F, D)), "b2": jnp.zeros((L, 1, D), jnp.float32),   # Conv1d(d_ff, d_model, 1)
        "ln": jnp.tile(ln_one[None], (L, 1, 1)),         # (L, 6, D): [g1,b1,g2,b2,g3,b3]
        "norm_f": jnp.stack([jnp.ones((D,), jnp.float32),
                             jnp.zeros((D,), jnp.float32)]),
        "w_head": nrm((D * Lx, D)),                      # FlattenHead Linear(nf, d_model)
        "b_head": jnp.zeros((1, D), jnp.float32),
    }
    for tag in ("s", "c"):                               # self / cross attention
        for nm in ("q", "k", "v", "o"):
            params[f"w{nm}_{tag}"] = nrm((L, D, D))
            params[f"b{nm}_{tag}"] = jnp.zeros((L, 1, D), jnp.float32)
    return params


# --------------------------------- main ---------------------------------------

if __name__ == "__main__":
    cfg = dict(
        enc_in=4, seq_len=32, d_model=32, d_ff=64,
        e_layers=2, n_heads=8, patch_len=16,
    )
    key = jax.random.PRNGKey(0)
    pkey, xkey = jax.random.split(key)
    params = init_params(pkey, cfg)
    x_enc = jax.random.normal(xkey, (2, cfg["seq_len"], cfg["enc_in"]), jnp.float32)

    fwd = jax.jit(functools.partial(model_forward, cfg=cfg))
    out = jax.block_until_ready(fwd(params, x_enc))

    assert out.shape == (2, cfg["d_model"], 1), out.shape
    assert bool(jnp.all(jnp.isfinite(out)))
    print("KERNEL_OK")
</pallas_src>

<mosaic_0001>
module attributes {stable_mosaic.version = 11 : i64} {
  func.func @_timexer_fwd_kernel(%arg0: memref<4x16xf32, #tpu.memory_space<vmem>>, %arg1: memref<6x32xf32, #tpu.memory_space<vmem>>, %arg2: memref<16x32xf32, #tpu.memory_space<vmem>>, %arg3: memref<32x32xf32, #tpu.memory_space<vmem>>, %arg4: memref<16x32x32xf32, #tpu.memory_space<vmem>>, %arg5: memref<16x1x32xf32, #tpu.memory_space<vmem>>, %arg6: memref<2x32x64xf32, #tpu.memory_space<vmem>>, %arg7: memref<2x1x64xf32, #tpu.memory_space<vmem>>, %arg8: memref<2x64x32xf32, #tpu.memory_space<vmem>>, %arg9: memref<2x1x32xf32, #tpu.memory_space<vmem>>, %arg10: memref<2x6x32xf32, #tpu.memory_space<vmem>>, %arg11: memref<3x32x32xf32, #tpu.memory_space<vmem>>, %arg12: memref<10x32xf32, #tpu.memory_space<vmem>>, %arg13: memref<248x48xf32, #tpu.memory_space<vmem>>, %arg14: memref<2x32xf32, #tpu.memory_space<vmem>>) attributes {dimension_semantics = [], scalar_prefetch = 0 : i64, scratch_operands = 0 : i64, tpu.core_type = #tpu.core_type<tc>} {
    %c0 = arith.constant 0 : index
    %c0_0 = arith.constant 0 : index
    %0 = vector.load %arg13[%c0, %c0_0] : memref<248x48xf32, #tpu.memory_space<vmem>>, vector<48x6xf32>
    %c48 = arith.constant 48 : index
    %c0_1 = arith.constant 0 : index
    %1 = vector.load %arg13[%c48, %c0_1] : memref<248x48xf32, #tpu.memory_space<vmem>>, vector<48x6xf32>
    %c96 = arith.constant 96 : index
    %c0_2 = arith.constant 0 : index
    %2 = vector.load %arg13[%c96, %c0_2] : memref<248x48xf32, #tpu.memory_space<vmem>>, vector<48x32xf32>
    %c144 = arith.constant 144 : index
    %c0_3 = arith.constant 0 : index
    %3 = vector.load %arg13[%c144, %c0_3] : memref<248x48xf32, #tpu.memory_space<vmem>>, vector<6x48xf32>
    %c152 = arith.constant 152 : index
    %c0_4 = arith.constant 0 : index
    %4 = vector.load %arg13[%c152, %c0_4] : memref<248x48xf32, #tpu.memory_space<vmem>>, vector<16x2xf32>
    %c168 = arith.constant 168 : index
    %c0_5 = arith.constant 0 : index
    %5 = vector.load %arg13[%c168, %c0_5] : memref<248x48xf32, #tpu.memory_space<vmem>>, vector<16x6xf32>
    %c184 = arith.constant 184 : index
    %c0_6 = arith.constant 0 : index
    %6 = vector.load %arg13[%c184, %c0_6] : memref<248x48xf32, #tpu.memory_space<vmem>>, vector<16x32xf32>
    %c200 = arith.constant 200 : index
    %c0_7 = arith.constant 0 : index
    %7 = vector.load %arg13[%c200, %c0_7] : memref<248x48xf32, #tpu.memory_space<vmem>>, vector<2x16xf32>
    %c208 = arith.constant 208 : index
    %c0_8 = arith.constant 0 : index
    %8 = vector.load %arg13[%c208, %c0_8] : memref<248x48xf32, #tpu.memory_space<vmem>>, vector<2x6xf32>
    %c216 = arith.constant 216 : index
    %c0_9 = arith.constant 0 : index
    %9 = vector.load %arg13[%c216, %c0_9] : memref<248x48xf32, #tpu.memory_space<vmem>>, vector<6x2xf32>
    %c224 = arith.constant 224 : index
    %c0_10 = arith.constant 0 : index
    %10 = vector.load %arg13[%c224, %c0_10] : memref<248x48xf32, #tpu.memory_space<vmem>>, vector<4x4xf32>
    %c232 = arith.constant 232 : index
    %c0_11 = arith.constant 0 : index
    %11 = vector.load %arg13[%c232, %c0_11] : memref<248x48xf32, #tpu.memory_space<vmem>>, vector<6x4xf32>
    %c240 = arith.constant 240 : index
    %c0_12 = arith.constant 0 : index
    %12 = vector.load %arg13[%c240, %c0_12] : memref<248x48xf32, #tpu.memory_space<vmem>>, vector<6x6xf32>
    %c0_13 = arith.constant 0 : index
    %c0_14 = arith.constant 0 : index
    %13 = vector.load %arg12[%c0_13, %c0_14] : memref<10x32xf32, #tpu.memory_space<vmem>>, vector<6x32xf32>
    %c6 = arith.constant 6 : index
    %c0_15 = arith.constant 0 : index
    %14 = vector.load %arg12[%c6, %c0_15] : memref<10x32xf32, #tpu.memory_space<vmem>>, vector<1x32xf32>
    %c7 = arith.constant 7 : index
    %c0_16 = arith.constant 0 : index
    %15 = vector.load %arg12[%c7, %c0_16] : memref<10x32xf32, #tpu.memory_space<vmem>>, vector<1x32xf32>
    %c8 = arith.constant 8 : index
    %c0_17 = arith.constant 0 : index
    %16 = vector.load %arg12[%c8, %c0_17] : memref<10x32xf32, #tpu.memory_space<vmem>>, vector<1x32xf32>
    %c9 = arith.constant 9 : index
    %c0_18 = arith.constant 0 : index
    %17 = vector.load %arg12[%c9, %c0_18] : memref<10x32xf32, #tpu.memory_space<vmem>>, vector<1x32xf32>
    %c0_19 = arith.constant 0 : index
    %c0_20 = arith.constant 0 : index
    %18 = vector.load %arg0[%c0_19, %c0_20] : memref<4x16xf32, #tpu.memory_space<vmem>>, vector<4x16xf32>
    %cst = arith.constant dense<0.000000e+00> : vector<4x16xf32>
    %19 = tpu.matmul %10, %18, %cst {dimension_numbers = #tpu.dot_dimension_numbers<[1], [0], [0], [1], [0, 0, 1, 1], [], []>} : vector<4x4xf32>, vector<4x16xf32>, vector<4x16xf32> -> vector<4x16xf32>
    %cst_21 = arith.constant dense<0.000000e+00> : vector<4xf32>
    %20 = vector.multi_reduction <add>, %19, %cst_21 [1] : vector<4x16xf32> to vector<4xf32>
    %21 = vector.shape_cast %20 : vector<4xf32> to vector<4x1xf32>
    %cst_22 = arith.constant 3.125000e-02 : f32
    %22 = vector.broadcast %cst_22 : f32 to vector<4x1xf32>
    %23 = arith.mulf %21, %22 : vector<4x1xf32>
    %24 = vector.broadcast %23 : vector<4x1xf32> to vector<4x16xf32>
    %25 = arith.subf %18, %24 : vector<4x16xf32>
    %26 = arith.mulf %25, %25 : vector<4x16xf32>
    %cst_23 = arith.constant dense<0.000000e+00> : vector<4x16xf32>
    %27 = tpu.matmul %10, %26, %cst_23 {dimension_numbers = #tpu.dot_dimension_numbers<[1], [0], [0], [1], [0, 0, 1, 1], [], []>} : vector<4x4xf32>, vector<4x16xf32>, vector<4x16xf32> -> vector<4x16xf32>
    %cst_24 = arith.constant dense<0.000000e+00> : vector<4xf32>
    %28 = vector.multi_reduction <add>, %27, %cst_24 [1] : vector<4x16xf32> to vector<4xf32>
    %29 = vector.shape_cast %28 : vector<4xf32> to vector<4x1xf32>
    %cst_25 = arith.constant 3.125000e-02 : f32
    %30 = vector.broadcast %cst_25 : f32 to vector<4x1xf32>
    %31 = arith.mulf %29, %30 : vector<4x1xf32>
    %cst_26 = arith.constant 9.99999974E-6 : f32
    %32 = vector.broadcast %cst_26 : f32 to vector<4x1xf32>
    %33 = arith.addf %31, %32 : vector<4x1xf32>
    %34 = math.rsqrt %33 : vector<4x1xf32>
    %35 = vector.broadcast %34 : vector<4x1xf32> to vector<4x16xf32>
    %36 = arith.mulf %25, %35 : vector<4x16xf32>
    %c0_27 = arith.constant 0 : index
    %c0_28 = arith.constant 0 : index
    %37 = vector.load %arg1[%c0_27, %c0_28] : memref<6x32xf32, #tpu.memory_space<vmem>>, vector<6x32xf32>
    %cst_29 = arith.constant dense<0.000000e+00> : vector<6xf32>
    %38 = vector.multi_reduction <add>, %37, %cst_29 [1] : vector<6x32xf32> to vector<6xf32>
    %39 = vector.shape_cast %38 : vector<6xf32> to vector<6x1xf32>
    %cst_30 = arith.constant 3.200000e+01 : f32
    %40 = vector.broadcast %cst_30 : f32 to vector<6x1xf32>
    %41 = arith.divf %39, %40 : vector<6x1xf32>
    %42 = vector.broadcast %41 : vector<6x1xf32> to vector<6x32xf32>
    %43 = arith.subf %37, %42 : vector<6x32xf32>
    %44 = arith.mulf %43, %43 : vector<6x32xf32>
    %cst_31 = arith.constant dense<0.000000e+00> : vector<6xf32>
    %45 = vector.multi_reduction <add>, %44, %cst_31 [1] : vector<6x32xf32> to vector<6xf32>
    %46 = vector.shape_cast %45 : vector<6xf32> to vector<6x1xf32>
    %cst_32 = arith.constant 3.200000e+01 : f32
    %47 = vector.broadcast %cst_32 : f32 to vector<6x1xf32>
    %48 = arith.divf %46, %47 : vector<6x1xf32>
    %cst_33 = arith.constant 9.99999974E-6 : f32
    %49 = vector.broadcast %cst_33 : f32 to vector<6x1xf32>
    %50 = arith.addf %48, %49 : vector<6x1xf32>
    %51 = math.rsqrt %50 : vector<6x1xf32>
    %52 = vector.broadcast %51 : vector<6x1xf32> to vector<6x32xf32>
    %53 = arith.mulf %43, %52 : vector<6x32xf32>
    %c0_34 = arith.constant 0 : index
    %c0_35 = arith.constant 0 : index
    %54 = vector.load %arg2[%c0_34, %c0_35] : memref<16x32xf32, #tpu.memory_space<vmem>>, vector<16x32xf32>
    %cst_36 = arith.constant dense<0.000000e+00> : vector<4x32xf32>
    %55 = tpu.matmul %36, %54, %cst_36 {dimension_numbers = #tpu.dot_dimension_numbers<[1], [0], [0], [1], [0, 0, 1, 1], [], []>} : vector<4x16xf32>, vector<16x32xf32>, vector<4x32xf32> -> vector<4x32xf32>
    %cst_37 = arith.constant dense<0.000000e+00> : vector<6x32xf32>
    %56 = tpu.matmul %11, %55, %cst_37 {dimension_numbers = #tpu.dot_dimension_numbers<[1], [0], [0], [1], [0, 0, 1, 1], [], []>} : vector<6x4xf32>, vector<4x32xf32>, vector<6x32xf32> -> vector<6x32xf32>
    %57 = arith.addf %56, %13 : vector<6x32xf32>
    %c0_38 = arith.constant 0 : index
    %c0_39 = arith.constant 0 : index
    %58 = vector.load %arg3[%c0_38, %c0_39] : memref<32x32xf32, #tpu.memory_space<vmem>>, vector<32x32xf32>
    %cst_40 = arith.constant dense<0.000000e+00> : vector<6x32xf32>
    %59 = tpu.matmul %53, %58, %cst_40 {dimension_numbers = #tpu.dot_dimension_numbers<[1], [0], [0], [1], [0, 0, 1, 1], [], []>} : vector<6x32xf32>, vector<32x32xf32>, vector<6x32xf32> -> vector<6x32xf32>
    %60 = vector.broadcast %14 : vector<1x32xf32> to vector<6x32xf32>
    %61 = arith.addf %59, %60 : vector<6x32xf32>
    %c0_41 = arith.constant 0 : index
    %c0_42 = arith.constant 0 : index
    %c0_43 = arith.constant 0 : index
    %62 = vector.load %arg10[%c0_41, %c0_42, %c0_43] : memref<2x6x32xf32, #tpu.memory_space<vmem>>, vector<1x6x32xf32>
    %63 = vector.shape_cast %62 : vector<1x6x32xf32> to vector<6x32xf32>
    %c0_44 = arith.constant 0 : index
    %c0_45 = arith.constant 0 : index
    %c0_46 = arith.constant 0 : index
    %64 = vector.load %arg4[%c0_44, %c0_45, %c0_46] : memref<16x32x32xf32, #tpu.memory_space<vmem>>, vector<1x32x32xf32>
    %65 = vector.shape_cast %64 : vector<1x32x32xf32> to vector<32x32xf32>
    %c0_47 = arith.constant 0 : index
    %c0_48 = arith.constant 0 : index
    %c0_49 = arith.constant 0 : index
    %66 = vector.load %arg5[%c0_47, %c0_48, %c0_49] : memref<16x1x32xf32, #tpu.memory_space<vmem>>, vector<1x1x32xf32>
    %67 = vector.shape_cast %66 : vector<1x1x32xf32> to vector<1x32xf32>
    %c2 = arith.constant 2 : index
    %c0_50 = arith.constant 0 : index
    %c0_51 = arith.constant 0 : index
    %68 = vector.load %arg4[%c2, %c0_50, %c0_51] : memref<16x32x32xf32, #tpu.memory_space<vmem>>, vector<1x32x32xf32>
    %69 = vector.shape_cast %68 : vector<1x32x32xf32> to vector<32x32xf32>
    %c2_52 = arith.constant 2 : index
    %c0_53 = arith.constant 0 : index
    %c0_54 = arith.constant 0 : index
    %70 = vector.load %arg5[%c2_52, %c0_53, %c0_54] : memref<16x1x32xf32, #tpu.memory_space<vmem>>, vector<1x1x32xf32>
    %71 = vector.shape_cast %70 : vector<1x1x32xf32> to vector<1x32xf32>
    %c4 = arith.constant 4 : index
    %c0_55 = arith.constant 0 : index
    %c0_56 = arith.constant 0 : index
    %72 = vector.load %arg4[%c4, %c0_55, %c0_56] : memref<16x32x32xf32, #tpu.memory_space<vmem>>, vector<1x32x32xf32>
    %73 = vector.shape_cast %72 : vector<1x32x32xf32> to vector<32x32xf32>
    %c4_57 = arith.constant 4 : index
    %c0_58 = arith.constant 0 : index
    %c0_59 = arith.constant 0 : index
    %74 = vector.load %arg5[%c4_57, %c0_58, %c0_59] : memref<16x1x32xf32, #tpu.memory_space<vmem>>, vector<1x1x32xf32>
    %75 = vector.shape_cast %74 : vector<1x1x32xf32> to vector<1x32xf32>
    %c6_60 = arith.constant 6 : index
    %c0_61 = arith.constant 0 : index
    %c0_62 = arith.constant 0 : index
    %76 = vector.load %arg4[%c6_60, %c0_61, %c0_62] : memref<16x32x32xf32, #tpu.memory_space<vmem>>, vector<1x32x32xf32>
    %77 = vector.shape_cast %76 : vector<1x32x32xf32> to vector<32x32xf32>
    %c6_63 = arith.constant 6 : index
    %c0_64 = arith.constant 0 : index
    %c0_65 = arith.constant 0 : index
    %78 = vector.load %arg5[%c6_63, %c0_64, %c0_65] : memref<16x1x32xf32, #tpu.memory_space<vmem>>, vector<1x1x32xf32>
    %79 = vector.shape_cast %78 : vector<1x1x32xf32> to vector<1x32xf32>
    %cst_66 = arith.constant dense<0.000000e+00> : vector<6x32xf32>
    %80 = tpu.matmul %57, %65, %cst_66 {dimension_numbers = #tpu.dot_dimension_numbers<[1], [0], [0], [1], [0, 0, 1, 1], [], []>} : vector<6x32xf32>, vector<32x32xf32>, vector<6x32xf32> -> vector<6x32xf32>
    %81 = vector.broadcast %67 : vector<1x32xf32> to vector<6x32xf32>
    %82 = arith.addf %80, %81 : vector<6x32xf32>
    %cst_67 = arith.constant dense<0.000000e+00> : vector<6x32xf32>
    %83 = tpu.matmul %57, %69, %cst_67 {dimension_numbers = #tpu.dot_dimension_numbers<[1], [0], [0], [1], [0, 0, 1, 1], [], []>} : vector<6x32xf32>, vector<32x32xf32>, vector<6x32xf32> -> vector<6x32xf32>
    %84 = vector.broadcast %71 : vector<1x32xf32> to vector<6x32xf32>
    %85 = arith.addf %83, %84 : vector<6x32xf32>
    %cst_68 = arith.constant dense<0.000000e+00> : vector<6x32xf32>
    %86 = tpu.matmul %57, %73, %cst_68 {dimension_numbers = #tpu.dot_dimension_numbers<[1], [0], [0], [1], [0, 0, 1, 1], [], []>} : vector<6x32xf32>, vector<32x32xf32>, vector<6x32xf32> -> vector<6x32xf32>
    %87 = vector.broadcast %75 : vector<1x32xf32> to vector<6x32xf32>
    %88 = arith.addf %86, %87 : vector<6x32xf32>
    %cst_69 = arith.constant dense<0.000000e+00> : vector<48x32xf32>
    %89 = tpu.matmul %0, %82, %cst_69 {dimension_numbers = #tpu.dot_dimension_numbers<[1], [0], [0], [1], [0, 0, 1, 1], [], []>} : vector<48x6xf32>, vector<6x32xf32>, vector<48x32xf32> -> vector<48x32xf32>
    %90 = arith.mulf %89, %2 : vector<48x32xf32>
    %cst_70 = arith.constant dense<0.000000e+00> : vector<48x6xf32>
    %91 = tpu.matmul %90, %85, %cst_70 {dimension_numbers = #tpu.dot_dimension_numbers<[1], [1], [0], [0], [0, 0, 1, 0], [], []>} : vector<48x32xf32>, vector<6x32xf32>, vector<48x6xf32> -> vector<48x6xf32>
    %92 = arith.addf %91, %1 : vector<48x6xf32>
    %cst_71 = arith.constant dense<0xFF800000> : vector<48xf32>
    %93 = vector.multi_reduction <maximumf>, %92, %cst_71 [1] : vector<48x6xf32> to vector<48xf32>
    %94 = vector.shape_cast %93 : vector<48xf32> to vector<48x1xf32>
    %95 = vector.broadcast %94 : vector<48x1xf32> to vector<48x6xf32>
    %96 = arith.subf %92, %95 : vector<48x6xf32>
    %97 = math.exp %96 : vector<48x6xf32>
    %cst_72 = arith.constant dense<0.000000e+00> : vector<48xf32>
    %98 = vector.multi_reduction <add>, %97, %cst_72 [1] : vector<48x6xf32> to vector<48xf32>
    %99 = vector.shape_cast %98 : vector<48xf32> to vector<48x1xf32>
    %100 = tpu.reciprocal %99 {approx = true} : vector<48x1xf32> -> vector<48x1xf32>
    %101 = vector.broadcast %100 : vector<48x1xf32> to vector<48x6xf32>
    %102 = arith.mulf %97, %101 : vector<48x6xf32>
    %cst_73 = arith.constant dense<0.000000e+00> : vector<48x32xf32>
    %103 = tpu.matmul %102, %88, %cst_73 {dimension_numbers = #tpu.dot_dimension_numbers<[1], [0], [0], [1], [0, 0, 1, 1], [], []>} : vector<48x6xf32>, vector<6x32xf32>, vector<48x32xf32> -> vector<48x32xf32>
    %104 = arith.mulf %103, %2 : vector<48x32xf32>
    %cst_74 = arith.constant dense<0.000000e+00> : vector<6x32xf32>
    %105 = tpu.matmul %3, %104, %cst_74 {dimension_numbers = #tpu.dot_dimension_numbers<[1], [0], [0], [1], [0, 0, 1, 1], [], []>} : vector<6x48xf32>, vector<48x32xf32>, vector<6x32xf32> -> vector<6x32xf32>
    %cst_75 = arith.constant dense<0.000000e+00> : vector<6x32xf32>
    %106 = tpu.matmul %105, %77, %cst_75 {dimension_numbers = #tpu.dot_dimension_numbers<[1], [0], [0], [1], [0, 0, 1, 1], [], []>} : vector<6x32xf32>, vector<32x32xf32>, vector<6x32xf32> -> vector<6x32xf32>
    %107 = vector.broadcast %79 : vector<1x32xf32> to vector<6x32xf32>
    %108 = arith.addf %106, %107 : vector<6x32xf32>
    %109 = arith.addf %57, %108 : vector<6x32xf32>
    %110 = vector.extract_strided_slice %63 {offsets = [0, 0], sizes = [1, 32], strides = [1, 1]} : vector<6x32xf32> to vector<1x32xf32>
    %111 = vector.extract_strided_slice %63 {offsets = [1, 0], sizes = [1, 32], strides = [1, 1]} : vector<6x32xf32> to vector<1x32xf32>
    %cst_76 = arith.constant dense<0.000000e+00> : vector<6xf32>
    %112 = vector.multi_reduction <add>, %109, %cst_76 [1] : vector<6x32xf32> to vector<6xf32>
    %113 = vector.shape_cast %112 : vector<6xf32> to vector<6x1xf32>
    %cst_77 = arith.constant 3.200000e+01 : f32
    %114 = vector.broadcast %cst_77 : f32 to vector<6x1xf32>
    %115 = arith.divf %113, %114 : vector<6x1xf32>
    %116 = vector.broadcast %115 : vector<6x1xf32> to vector<6x32xf32>
    %117 = arith.subf %109, %116 : vector<6x32xf32>
    %118 = arith.mulf %117, %117 : vector<6x32xf32>
    %cst_78 = arith.constant dense<0.000000e+00> : vector<6xf32>
    %119 = vector.multi_reduction <add>, %118, %cst_78 [1] : vector<6x32xf32> to vector<6xf32>
    %120 = vector.shape_cast %119 : vector<6xf32> to vector<6x1xf32>
    %cst_79 = arith.constant 3.200000e+01 : f32
    %121 = vector.broadcast %cst_79 : f32 to vector<6x1xf32>
    %122 = arith.divf %120, %121 : vector<6x1xf32>
    %cst_80 = arith.constant 9.99999974E-6 : f32
    %123 = vector.broadcast %cst_80 : f32 to vector<6x1xf32>
    %124 = arith.addf %122, %123 : vector<6x1xf32>
    %125 = math.rsqrt %124 : vector<6x1xf32>
    %126 = vector.broadcast %125 : vector<6x1xf32> to vector<6x32xf32>
    %127 = arith.mulf %117, %126 : vector<6x32xf32>
    %128 = vector.broadcast %110 : vector<1x32xf32> to vector<6x32xf32>
    %129 = arith.mulf %127, %128 : vector<6x32xf32>
    %130 = vector.broadcast %111 : vector<1x32xf32> to vector<6x32xf32>
    %131 = arith.addf %129, %130 : vector<6x32xf32>
    %cst_81 = arith.constant dense<0.000000e+00> : vector<2x32xf32>
    %132 = tpu.matmul %8, %131, %cst_81 {dimension_numbers = #tpu.dot_dimension_numbers<[1], [0], [0], [1], [0, 0, 1, 1], [], []>} : vector<2x6xf32>, vector<6x32xf32>, vector<2x32xf32> -> vector<2x32xf32>
    %c8_82 = arith.constant 8 : index
    %c0_83 = arith.constant 0 : index
    %c0_84 = arith.constant 0 : index
    %133 = vector.load %arg4[%c8_82, %c0_83, %c0_84] : memref<16x32x32xf32, #tpu.memory_space<vmem>>, vector<1x32x32xf32>
    %134 = vector.shape_cast %133 : vector<1x32x32xf32> to vector<32x32xf32>
    %c8_85 = arith.constant 8 : index
    %c0_86 = arith.constant 0 : index
    %c0_87 = arith.constant 0 : index
    %135 = vector.load %arg5[%c8_85, %c0_86, %c0_87] : memref<16x1x32xf32, #tpu.memory_space<vmem>>, vector<1x1x32xf32>
    %136 = vector.shape_cast %135 : vector<1x1x32xf32> to vector<1x32xf32>
    %c10 = arith.constant 10 : index
    %c0_88 = arith.constant 0 : index
    %c0_89 = arith.constant 0 : index
    %137 = vector.load %arg4[%c10, %c0_88, %c0_89] : memref<16x32x32xf32, #tpu.memory_space<vmem>>, vector<1x32x32xf32>
    %138 = vector.shape_cast %137 : vector<1x32x32xf32> to vector<32x32xf32>
    %c10_90 = arith.constant 10 : index
    %c0_91 = arith.constant 0 : index
    %c0_92 = arith.constant 0 : index
    %139 = vector.load %arg5[%c10_90, %c0_91, %c0_92] : memref<16x1x32xf32, #tpu.memory_space<vmem>>, vector<1x1x32xf32>
    %140 = vector.shape_cast %139 : vector<1x1x32xf32> to vector<1x32xf32>
    %c12 = arith.constant 12 : index
    %c0_93 = arith.constant 0 : index
    %c0_94 = arith.constant 0 : index
    %141 = vector.load %arg4[%c12, %c0_93, %c0_94] : memref<16x32x32xf32, #tpu.memory_space<vmem>>, vector<1x32x32xf32>
    %142 = vector.shape_cast %141 : vector<1x32x32xf32> to vector<32x32xf32>
    %c12_95 = arith.constant 12 : index
    %c0_96 = arith.constant 0 : index
    %c0_97 = arith.constant 0 : index
    %143 = vector.load %arg5[%c12_95, %c0_96, %c0_97] : memref<16x1x32xf32, #tpu.memory_space<vmem>>, vector<1x1x32xf32>
    %144 = vector.shape_cast %143 : vector<1x1x32xf32> to vector<1x32xf32>
    %c14 = arith.constant 14 : index
    %c0_98 = arith.constant 0 : index
    %c0_99 = arith.constant 0 : index
    %145 = vector.load %arg4[%c14, %c0_98, %c0_99] : memref<16x32x32xf32, #tpu.memory_space<vmem>>, vector<1x32x32xf32>
    %146 = vector.shape_cast %145 : vector<1x32x32xf32> to vector<32x32xf32>
    %c14_100 = arith.constant 14 : index
    %c0_101 = arith.constant 0 : index
    %c0_102 = arith.constant 0 : index
    %147 = vector.load %arg5[%c14_100, %c0_101, %c0_102] : memref<16x1x32xf32, #tpu.memory_space<vmem>>, vector<1x1x32xf32>
    %148 = vector.shape_cast %147 : vector<1x1x32xf32> to vector<1x32xf32>
    %cst_103 = arith.constant dense<0.000000e+00> : vector<2x32xf32>
    %149 = tpu.matmul %132, %134, %cst_103 {dimension_numbers = #tpu.dot_dimension_numbers<[1], [0], [0], [1], [0, 0, 1, 1], [], []>} : vector<2x32xf32>, vector<32x32xf32>, vector<2x32xf32> -> vector<2x32xf32>
    %150 = vector.broadcast %136 : vector<1x32xf32> to vector<2x32xf32>
    %151 = arith.addf %149, %150 : vector<2x32xf32>
    %cst_104 = arith.constant dense<0.000000e+00> : vector<6x32xf32>
    %152 = tpu.matmul %61, %138, %cst_104 {dimension_numbers = #tpu.dot_dimension_numbers<[1], [0], [0], [1], [0, 0, 1, 1], [], []>} : vector<6x32xf32>, vector<32x32xf32>, vector<6x32xf32> -> vector<6x32xf32>
    %153 = vector.broadcast %140 : vector<1x32xf32> to vector<6x32xf32>
    %154 = arith.addf %152, %153 : vector<6x32xf32>
    %cst_105 = arith.constant dense<0.000000e+00> : vector<6x32xf32>
    %155 = tpu.matmul %61, %142, %cst_105 {dimension_numbers = #tpu.dot_dimension_numbers<[1], [0], [0], [1], [0, 0, 1, 1], [], []>} : vector<6x32xf32>, vector<32x32xf32>, vector<6x32xf32> -> vector<6x32xf32>
    %156 = vector.broadcast %144 : vector<1x32xf32> to vector<6x32xf32>
    %157 = arith.addf %155, %156 : vector<6x32xf32>
    %cst_106 = arith.constant dense<0.000000e+00> : vector<16x32xf32>
    %158 = tpu.matmul %4, %151, %cst_106 {dimension_numbers = #tpu.dot_dimension_numbers<[1], [0], [0], [1], [0, 0, 1, 1], [], []>} : vector<16x2xf32>, vector<2x32xf32>, vector<16x32xf32> -> vector<16x32xf32>
    %159 = arith.mulf %158, %6 : vector<16x32xf32>
    %cst_107 = arith.constant dense<0.000000e+00> : vector<16x6xf32>
    %160 = tpu.matmul %159, %154, %cst_107 {dimension_numbers = #tpu.dot_dimension_numbers<[1], [1], [0], [0], [0, 0, 1, 0], [], []>} : vector<16x32xf32>, vector<6x32xf32>, vector<16x6xf32> -> vector<16x6xf32>
    %161 = arith.addf %160, %5 : vector<16x6xf32>
    %cst_108 = arith.constant dense<0xFF800000> : vector<16xf32>
    %162 = vector.multi_reduction <maximumf>, %161, %cst_108 [1] : vector<16x6xf32> to vector<16xf32>
    %163 = vector.shape_cast %162 : vector<16xf32> to vector<16x1xf32>
    %164 = vector.broadcast %163 : vector<16x1xf32> to vector<16x6xf32>
    %165 = arith.subf %161, %164 : vector<16x6xf32>
    %166 = math.exp %165 : vector<16x6xf32>
    %cst_109 = arith.constant dense<0.000000e+00> : vector<16xf32>
    %167 = vector.multi_reduction <add>, %166, %cst_109 [1] : vector<16x6xf32> to vector<16xf32>
    %168 = vector.shape_cast %167 : vector<16xf32> to vector<16x1xf32>
    %169 = tpu.reciprocal %168 {approx = true} : vector<16x1xf32> -> vector<16x1xf32>
    %170 = vector.broadcast %169 : vector<16x1xf32> to vector<16x6xf32>
    %171 = arith.mulf %166, %170 : vector<16x6xf32>
    %cst_110 = arith.constant dense<0.000000e+00> : vector<16x32xf32>
    %172 = tpu.matmul %171, %157, %cst_110 {dimension_numbers = #tpu.dot_dimension_numbers<[1], [0], [0], [1], [0, 0, 1, 1], [], []>} : vector<16x6xf32>, vector<6x32xf32>, vector<16x32xf32> -> vector<16x32xf32>
    %173 = arith.mulf %172, %6 : vector<16x32xf32>
    %cst_111 = arith.constant dense<0.000000e+00> : vector<2x32xf32>
    %174 = tpu.matmul %7, %173, %cst_111 {dimension_numbers = #tpu.dot_dimension_numbers<[1], [0], [0], [1], [0, 0, 1, 1], [], []>} : vector<2x16xf32>, vector<16x32xf32>, vector<2x32xf32> -> vector<2x32xf32>
    %cst_112 = arith.constant dense<0.000000e+00> : vector<2x32xf32>
    %175 = tpu.matmul %174, %146, %cst_112 {dimension_numbers = #tpu.dot_dimension_numbers<[1], [0], [0], [1], [0, 0, 1, 1], [], []>} : vector<2x32xf32>, vector<32x32xf32>, vector<2x32xf32> -> vector<2x32xf32>
    %176 = vector.broadcast %148 : vector<1x32xf32> to vector<2x32xf32>
    %177 = arith.addf %175, %176 : vector<2x32xf32>
    %178 = arith.addf %132, %177 : vector<2x32xf32>
    %179 = vector.extract_strided_slice %63 {offsets = [2, 0], sizes = [1, 32], strides = [1, 1]} : vector<6x32xf32> to vector<1x32xf32>
    %180 = vector.extract_strided_slice %63 {offsets = [3, 0], sizes = [1, 32], strides = [1, 1]} : vector<6x32xf32> to vector<1x32xf32>
    %cst_113 = arith.constant dense<0.000000e+00> : vector<2xf32>
    %181 = vector.multi_reduction <add>, %178, %cst_113 [1] : vector<2x32xf32> to vector<2xf32>
    %182 = vector.shape_cast %181 : vector<2xf32> to vector<2x1xf32>
    %cst_114 = arith.constant 3.200000e+01 : f32
    %183 = vector.broadcast %cst_114 : f32 to vector<2x1xf32>
    %184 = arith.divf %182, %183 : vector<2x1xf32>
    %185 = vector.broadcast %184 : vector<2x1xf32> to vector<2x32xf32>
    %186 = arith.subf %178, %185 : vector<2x32xf32>
    %187 = arith.mulf %186, %186 : vector<2x32xf32>
    %cst_115 = arith.constant dense<0.000000e+00> : vector<2xf32>
    %188 = vector.multi_reduction <add>, %187, %cst_115 [1] : vector<2x32xf32> to vector<2xf32>
    %189 = vector.shape_cast %188 : vector<2xf32> to vector<2x1xf32>
    %cst_116 = arith.constant 3.200000e+01 : f32
    %190 = vector.broadcast %cst_116 : f32 to vector<2x1xf32>
    %191 = arith.divf %189, %190 : vector<2x1xf32>
    %cst_117 = arith.constant 9.99999974E-6 : f32
    %192 = vector.broadcast %cst_117 : f32 to vector<2x1xf32>
    %193 = arith.addf %191, %192 : vector<2x1xf32>
    %194 = math.rsqrt %193 : vector<2x1xf32>
    %195 = vector.broadcast %194 : vector<2x1xf32> to vector<2x32xf32>
    %196 = arith.mulf %186, %195 : vector<2x32xf32>
    %197 = vector.broadcast %179 : vector<1x32xf32> to vector<2x32xf32>
    %198 = arith.mulf %196, %197 : vector<2x32xf32>
    %199 = vector.broadcast %180 : vector<1x32xf32> to vector<2x32xf32>
    %200 = arith.addf %198, %199 : vector<2x32xf32>
    %201 = arith.subf %200, %132 : vector<2x32xf32>
    %cst_118 = arith.constant dense<0.000000e+00> : vector<6x32xf32>
    %202 = tpu.matmul %9, %201, %cst_118 {dimension_numbers = #tpu.dot_dimension_numbers<[1], [0], [0], [1], [0, 0, 1, 1], [], []>} : vector<6x2xf32>, vector<2x32xf32>, vector<6x32xf32> -> vector<6x32xf32>
    %203 = arith.addf %131, %202 : vector<6x32xf32>
    %c0_119 = arith.constant 0 : index
    %c0_120 = arith.constant 0 : index
    %c0_121 = arith.constant 0 : index
    %204 = vector.load %arg6[%c0_119, %c0_120, %c0_121] : memref<2x32x64xf32, #tpu.memory_space<vmem>>, vector<1x32x64xf32>
    %205 = vector.shape_cast %204 : vector<1x32x64xf32> to vector<32x64xf32>
    %cst_122 = arith.constant dense<0.000000e+00> : vector<6x64xf32>
    %206 = tpu.matmul %203, %205, %cst_122 {dimension_numbers = #tpu.dot_dimension_numbers<[1], [0], [0], [1], [0, 0, 1, 1], [], []>} : vector<6x32xf32>, vector<32x64xf32>, vector<6x64xf32> -> vector<6x64xf32>
    %c0_123 = arith.constant 0 : index
    %c0_124 = arith.constant 0 : index
    %c0_125 = arith.constant 0 : index
    %207 = vector.load %arg7[%c0_123, %c0_124, %c0_125] : memref<2x1x64xf32, #tpu.memory_space<vmem>>, vector<1x1x64xf32>
    %208 = vector.shape_cast %207 : vector<1x1x64xf32> to vector<1x64xf32>
    %209 = vector.broadcast %208 : vector<1x64xf32> to vector<6x64xf32>
    %210 = arith.addf %206, %209 : vector<6x64xf32>
    %cst_126 = arith.constant 0.707106769 : f32
    %211 = vector.broadcast %cst_126 : f32 to vector<6x64xf32>
    %212 = arith.mulf %210, %211 : vector<6x64xf32>
    %213 = math.absf %212 : vector<6x64xf32>
    %cst_127 = arith.constant 0.327591091 : f32
    %214 = vector.broadcast %cst_127 : f32 to vector<6x64xf32>
    %215 = arith.mulf %214, %213 : vector<6x64xf32>
    %cst_128 = arith.constant 1.000000e+00 : f32
    %216 = vector.broadcast %cst_128 : f32 to vector<6x64xf32>
    %217 = arith.addf %216, %215 : vector<6x64xf32>
    %cst_129 = arith.constant 1.000000e+00 : f32
    %218 = vector.broadcast %cst_129 : f32 to vector<6x64xf32>
    %219 = arith.divf %218, %217 : vector<6x64xf32>
    %cst_130 = arith.constant 1.06140542 : f32
    %220 = vector.broadcast %cst_130 : f32 to vector<6x64xf32>
    %221 = arith.mulf %219, %220 : vector<6x64xf32>
    %cst_131 = arith.constant -1.45315206 : f32
    %222 = vector.broadcast %cst_131 : f32 to vector<6x64xf32>
    %223 = arith.addf %222, %221 : vector<6x64xf32>
    %224 = arith.mulf %219, %223 : vector<6x64xf32>
    %cst_132 = arith.constant 1.42141378 : f32
    %225 = vector.broadcast %cst_132 : f32 to vector<6x64xf32>
    %226 = arith.addf %225, %224 : vector<6x64xf32>
    %227 = arith.mulf %219, %226 : vector<6x64xf32>
    %cst_133 = arith.constant -0.284496725 : f32
    %228 = vector.broadcast %cst_133 : f32 to vector<6x64xf32>
    %229 = arith.addf %228, %227 : vector<6x64xf32>
    %230 = arith.mulf %219, %229 : vector<6x64xf32>
    %cst_134 = arith.constant 0.254829586 : f32
    %231 = vector.broadcast %cst_134 : f32 to vector<6x64xf32>
    %232 = arith.addf %231, %230 : vector<6x64xf32>
    %233 = arith.mulf %219, %232 : vector<6x64xf32>
    %cst_135 = arith.constant 0.000000e+00 : f32
    %234 = vector.broadcast %cst_135 : f32 to vector<6x64xf32>
    %235 = arith.subf %234, %213 : vector<6x64xf32>
    %236 = arith.mulf %235, %213 : vector<6x64xf32>
    %237 = math.exp %236 : vector<6x64xf32>
    %238 = arith.mulf %233, %237 : vector<6x64xf32>
    %cst_136 = arith.constant 1.000000e+00 : f32
    %239 = vector.broadcast %cst_136 : f32 to vector<6x64xf32>
    %240 = arith.subf %239, %238 : vector<6x64xf32>
    %cst_137 = arith.constant 0.000000e+00 : f32
    %241 = vector.broadcast %cst_137 : f32 to vector<6x64xf32>
    %242 = arith.cmpf oge, %212, %241 : vector<6x64xf32>
    %cst_138 = arith.constant 0.000000e+00 : f32
    %243 = vector.broadcast %cst_138 : f32 to vector<6x64xf32>
    %244 = arith.subf %243, %240 : vector<6x64xf32>
    %245 = arith.select %242, %240, %244 : vector<6x64xi1>, vector<6x64xf32>
    %cst_139 = arith.constant 5.000000e-01 : f32
    %246 = vector.broadcast %cst_139 : f32 to vector<6x64xf32>
    %247 = arith.mulf %246, %210 : vector<6x64xf32>
    %cst_140 = arith.constant 1.000000e+00 : f32
    %248 = vector.broadcast %cst_140 : f32 to vector<6x64xf32>
    %249 = arith.addf %248, %245 : vector<6x64xf32>
    %250 = arith.mulf %247, %249 : vector<6x64xf32>
    %c0_141 = arith.constant 0 : index
    %c0_142 = arith.constant 0 : index
    %c0_143 = arith.constant 0 : index
    %251 = vector.load %arg8[%c0_141, %c0_142, %c0_143] : memref<2x64x32xf32, #tpu.memory_space<vmem>>, vector<1x64x32xf32>
    %252 = vector.shape_cast %251 : vector<1x64x32xf32> to vector<64x32xf32>
    %cst_144 = arith.constant dense<0.000000e+00> : vector<6x32xf32>
    %253 = tpu.matmul %250, %252, %cst_144 {dimension_numbers = #tpu.dot_dimension_numbers<[1], [0], [0], [1], [0, 0, 1, 1], [], []>} : vector<6x64xf32>, vector<64x32xf32>, vector<6x32xf32> -> vector<6x32xf32>
    %c0_145 = arith.constant 0 : index
    %c0_146 = arith.constant 0 : index
    %c0_147 = arith.constant 0 : index
    %254 = vector.load %arg9[%c0_145, %c0_146, %c0_147] : memref<2x1x32xf32, #tpu.memory_space<vmem>>, vector<1x1x32xf32>
    %255 = vector.shape_cast %254 : vector<1x1x32xf32> to vector<1x32xf32>
    %256 = vector.broadcast %255 : vector<1x32xf32> to vector<6x32xf32>
    %257 = arith.addf %253, %256 : vector<6x32xf32>
    %258 = arith.addf %203, %257 : vector<6x32xf32>
    %259 = vector.extract_strided_slice %63 {offsets = [4, 0], sizes = [1, 32], strides = [1, 1]} : vector<6x32xf32> to vector<1x32xf32>
    %260 = vector.extract_strided_slice %63 {offsets = [5, 0], sizes = [1, 32], strides = [1, 1]} : vector<6x32xf32> to vector<1x32xf32>
    %cst_148 = arith.constant dense<0.000000e+00> : vector<6xf32>
    %261 = vector.multi_reduction <add>, %258, %cst_148 [1] : vector<6x32xf32> to vector<6xf32>
    %262 = vector.shape_cast %261 : vector<6xf32> to vector<6x1xf32>
    %cst_149 = arith.constant 3.200000e+01 : f32
    %263 = vector.broadcast %cst_149 : f32 to vector<6x1xf32>
    %264 = arith.divf %262, %263 : vector<6x1xf32>
    %265 = vector.broadcast %264 : vector<6x1xf32> to vector<6x32xf32>
    %266 = arith.subf %258, %265 : vector<6x32xf32>
    %267 = arith.mulf %266, %266 : vector<6x32xf32>
    %cst_150 = arith.constant dense<0.000000e+00> : vector<6xf32>
    %268 = vector.multi_reduction <add>, %267, %cst_150 [1] : vector<6x32xf32> to vector<6xf32>
    %269 = vector.shape_cast %268 : vector<6xf32> to vector<6x1xf32>
    %cst_151 = arith.constant 3.200000e+01 : f32
    %270 = vector.broadcast %cst_151 : f32 to vector<6x1xf32>
    %271 = arith.divf %269, %270 : vector<6x1xf32>
    %cst_152 = arith.constant 9.99999974E-6 : f32
    %272 = vector.broadcast %cst_152 : f32 to vector<6x1xf32>
    %273 = arith.addf %271, %272 : vector<6x1xf32>
    %274 = math.rsqrt %273 : vector<6x1xf32>
    %275 = vector.broadcast %274 : vector<6x1xf32> to vector<6x32xf32>
    %276 = arith.mulf %266, %275 : vector<6x32xf32>
    %277 = vector.broadcast %259 : vector<1x32xf32> to vector<6x32xf32>
    %278 = arith.mulf %276, %277 : vector<6x32xf32>
    %279 = vector.broadcast %260 : vector<1x32xf32> to vector<6x32xf32>
    %280 = arith.addf %278, %279 : vector<6x32xf32>
    %c1 = arith.constant 1 : index
    %c0_153 = arith.constant 0 : index
    %c0_154 = arith.constant 0 : index
    %281 = vector.load %arg10[%c1, %c0_153, %c0_154] : memref<2x6x32xf32, #tpu.memory_space<vmem>>, vector<1x6x32xf32>
    %282 = vector.shape_cast %281 : vector<1x6x32xf32> to vector<6x32xf32>
    %c1_155 = arith.constant 1 : index
    %c0_156 = arith.constant 0 : index
    %c0_157 = arith.constant 0 : index
    %283 = vector.load %arg4[%c1_155, %c0_156, %c0_157] : memref<16x32x32xf32, #tpu.memory_space<vmem>>, vector<1x32x32xf32>
    %284 = vector.shape_cast %283 : vector<1x32x32xf32> to vector<32x32xf32>
    %c1_158 = arith.constant 1 : index
    %c0_159 = arith.constant 0 : index
    %c0_160 = arith.constant 0 : index
    %285 = vector.load %arg5[%c1_158, %c0_159, %c0_160] : memref<16x1x32xf32, #tpu.memory_space<vmem>>, vector<1x1x32xf32>
    %286 = vector.shape_cast %285 : vector<1x1x32xf32> to vector<1x32xf32>
    %c3 = arith.constant 3 : index
    %c0_161 = arith.constant 0 : index
    %c0_162 = arith.constant 0 : index
    %287 = vector.load %arg4[%c3, %c0_161, %c0_162] : memref<16x32x32xf32, #tpu.memory_space<vmem>>, vector<1x32x32xf32>
    %288 = vector.shape_cast %287 : vector<1x32x32xf32> to vector<32x32xf32>
    %c3_163 = arith.constant 3 : index
    %c0_164 = arith.constant 0 : index
    %c0_165 = arith.constant 0 : index
    %289 = vector.load %arg5[%c3_163, %c0_164, %c0_165] : memref<16x1x32xf32, #tpu.memory_space<vmem>>, vector<1x1x32xf32>
    %290 = vector.shape_cast %289 : vector<1x1x32xf32> to vector<1x32xf32>
    %c5 = arith.constant 5 : index
    %c0_166 = arith.constant 0 : index
    %c0_167 = arith.constant 0 : index
    %291 = vector.load %arg4[%c5, %c0_166, %c0_167] : memref<16x32x32xf32, #tpu.memory_space<vmem>>, vector<1x32x32xf32>
    %292 = vector.shape_cast %291 : vector<1x32x32xf32> to vector<32x32xf32>
    %c5_168 = arith.constant 5 : index
    %c0_169 = arith.constant 0 : index
    %c0_170 = arith.constant 0 : index
    %293 = vector.load %arg5[%c5_168, %c0_169, %c0_170] : memref<16x1x32xf32, #tpu.memory_space<vmem>>, vector<1x1x32xf32>
    %294 = vector.shape_cast %293 : vector<1x1x32xf32> to vector<1x32xf32>
    %c7_171 = arith.constant 7 : index
    %c0_172 = arith.constant 0 : index
    %c0_173 = arith.constant 0 : index
    %295 = vector.load %arg4[%c7_171, %c0_172, %c0_173] : memref<16x32x32xf32, #tpu.memory_space<vmem>>, vector<1x32x32xf32>
    %296 = vector.shape_cast %295 : vector<1x32x32xf32> to vector<32x32xf32>
    %c7_174 = arith.constant 7 : index
    %c0_175 = arith.constant 0 : index
    %c0_176 = arith.constant 0 : index
    %297 = vector.load %arg5[%c7_174, %c0_175, %c0_176] : memref<16x1x32xf32, #tpu.memory_space<vmem>>, vector<1x1x32xf32>
    %298 = vector.shape_cast %297 : vector<1x1x32xf32> to vector<1x32xf32>
    %cst_177 = arith.constant dense<0.000000e+00> : vector<6x32xf32>
    %299 = tpu.matmul %280, %284, %cst_177 {dimension_numbers = #tpu.dot_dimension_numbers<[1], [0], [0], [1], [0, 0, 1, 1], [], []>} : vector<6x32xf32>, vector<32x32xf32>, vector<6x32xf32> -> vector<6x32xf32>
    %300 = vector.broadcast %286 : vector<1x32xf32> to vector<6x32xf32>
    %301 = arith.addf %299, %300 : vector<6x32xf32>
    %cst_178 = arith.constant dense<0.000000e+00> : vector<6x32xf32>
    %302 = tpu.matmul %280, %288, %cst_178 {dimension_numbers = #tpu.dot_dimension_numbers<[1], [0], [0], [1], [0, 0, 1, 1], [], []>} : vector<6x32xf32>, vector<32x32xf32>, vector<6x32xf32> -> vector<6x32xf32>
    %303 = vector.broadcast %290 : vector<1x32xf32> to vector<6x32xf32>
    %304 = arith.addf %302, %303 : vector<6x32xf32>
    %cst_179 = arith.constant dense<0.000000e+00> : vector<6x32xf32>
    %305 = tpu.matmul %280, %292, %cst_179 {dimension_numbers = #tpu.dot_dimension_numbers<[1], [0], [0], [1], [0, 0, 1, 1], [], []>} : vector<6x32xf32>, vector<32x32xf32>, vector<6x32xf32> -> vector<6x32xf32>
    %306 = vector.broadcast %294 : vector<1x32xf32> to vector<6x32xf32>
    %307 = arith.addf %305, %306 : vector<6x32xf32>
    %cst_180 = arith.constant dense<0.000000e+00> : vector<48x32xf32>
    %308 = tpu.matmul %0, %301, %cst_180 {dimension_numbers = #tpu.dot_dimension_numbers<[1], [0], [0], [1], [0, 0, 1, 1], [], []>} : vector<48x6xf32>, vector<6x32xf32>, vector<48x32xf32> -> vector<48x32xf32>
    %309 = arith.mulf %308, %2 : vector<48x32xf32>
    %cst_181 = arith.constant dense<0.000000e+00> : vector<48x6xf32>
    %310 = tpu.matmul %309, %304, %cst_181 {dimension_numbers = #tpu.dot_dimension_numbers<[1], [1], [0], [0], [0, 0, 1, 0], [], []>} : vector<48x32xf32>, vector<6x32xf32>, vector<48x6xf32> -> vector<48x6xf32>
    %311 = arith.addf %310, %1 : vector<48x6xf32>
    %cst_182 = arith.constant dense<0xFF800000> : vector<48xf32>
    %312 = vector.multi_reduction <maximumf>, %311, %cst_182 [1] : vector<48x6xf32> to vector<48xf32>
    %313 = vector.shape_cast %312 : vector<48xf32> to vector<48x1xf32>
    %314 = vector.broadcast %313 : vector<48x1xf32> to vector<48x6xf32>
    %315 = arith.subf %311, %314 : vector<48x6xf32>
    %316 = math.exp %315 : vector<48x6xf32>
    %cst_183 = arith.constant dense<0.000000e+00> : vector<48xf32>
    %317 = vector.multi_reduction <add>, %316, %cst_183 [1] : vector<48x6xf32> to vector<48xf32>
    %318 = vector.shape_cast %317 : vector<48xf32> to vector<48x1xf32>
    %319 = tpu.reciprocal %318 {approx = true} : vector<48x1xf32> -> vector<48x1xf32>
    %320 = vector.broadcast %319 : vector<48x1xf32> to vector<48x6xf32>
    %321 = arith.mulf %316, %320 : vector<48x6xf32>
    %cst_184 = arith.constant dense<0.000000e+00> : vector<48x32xf32>
    %322 = tpu.matmul %321, %307, %cst_184 {dimension_numbers = #tpu.dot_dimension_numbers<[1], [0], [0], [1], [0, 0, 1, 1], [], []>} : vector<48x6xf32>, vector<6x32xf32>, vector<48x32xf32> -> vector<48x32xf32>
    %323 = arith.mulf %322, %2 : vector<48x32xf32>
    %cst_185 = arith.constant dense<0.000000e+00> : vector<6x32xf32>
    %324 = tpu.matmul %3, %323, %cst_185 {dimension_numbers = #tpu.dot_dimension_numbers<[1], [0], [0], [1], [0, 0, 1, 1], [], []>} : vector<6x48xf32>, vector<48x32xf32>, vector<6x32xf32> -> vector<6x32xf32>
    %cst_186 = arith.constant dense<0.000000e+00> : vector<6x32xf32>
    %325 = tpu.matmul %324, %296, %cst_186 {dimension_numbers = #tpu.dot_dimension_numbers<[1], [0], [0], [1], [0, 0, 1, 1], [], []>} : vector<6x32xf32>, vector<32x32xf32>, vector<6x32xf32> -> vector<6x32xf32>
    %326 = vector.broadcast %298 : vector<1x32xf32> to vector<6x32xf32>
    %327 = arith.addf %325, %326 : vector<6x32xf32>
    %328 = arith.addf %280, %327 : vector<6x32xf32>
    %329 = vector.extract_strided_slice %282 {offsets = [0, 0], sizes = [1, 32], strides = [1, 1]} : vector<6x32xf32> to vector<1x32xf32>
    %330 = vector.extract_strided_slice %282 {offsets = [1, 0], sizes = [1, 32], strides = [1, 1]} : vector<6x32xf32> to vector<1x32xf32>
    %cst_187 = arith.constant dense<0.000000e+00> : vector<6xf32>
    %331 = vector.multi_reduction <add>, %328, %cst_187 [1] : vector<6x32xf32> to vector<6xf32>
    %332 = vector.shape_cast %331 : vector<6xf32> to vector<6x1xf32>
    %cst_188 = arith.constant 3.200000e+01 : f32
    %333 = vector.broadcast %cst_188 : f32 to vector<6x1xf32>
    %334 = arith.divf %332, %333 : vector<6x1xf32>
    %335 = vector.broadcast %334 : vector<6x1xf32> to vector<6x32xf32>
    %336 = arith.subf %328, %335 : vector<6x32xf32>
    %337 = arith.mulf %336, %336 : vector<6x32xf32>
    %cst_189 = arith.constant dense<0.000000e+00> : vector<6xf32>
    %338 = vector.multi_reduction <add>, %337, %cst_189 [1] : vector<6x32xf32> to vector<6xf32>
    %339 = vector.shape_cast %338 : vector<6xf32> to vector<6x1xf32>
    %cst_190 = arith.constant 3.200000e+01 : f32
    %340 = vector.broadcast %cst_190 : f32 to vector<6x1xf32>
    %341 = arith.divf %339, %340 : vector<6x1xf32>
    %cst_191 = arith.constant 9.99999974E-6 : f32
    %342 = vector.broadcast %cst_191 : f32 to vector<6x1xf32>
    %343 = arith.addf %341, %342 : vector<6x1xf32>
    %344 = math.rsqrt %343 : vector<6x1xf32>
    %345 = vector.broadcast %344 : vector<6x1xf32> to vector<6x32xf32>
    %346 = arith.mulf %336, %345 : vector<6x32xf32>
    %347 = vector.broadcast %329 : vector<1x32xf32> to vector<6x32xf32>
    %348 = arith.mulf %346, %347 : vector<6x32xf32>
    %349 = vector.broadcast %330 : vector<1x32xf32> to vector<6x32xf32>
    %350 = arith.addf %348, %349 : vector<6x32xf32>
    %cst_192 = arith.constant dense<0.000000e+00> : vector<2x32xf32>
    %351 = tpu.matmul %8, %350, %cst_192 {dimension_numbers = #tpu.dot_dimension_numbers<[1], [0], [0], [1], [0, 0, 1, 1], [], []>} : vector<2x6xf32>, vector<6x32xf32>, vector<2x32xf32> -> vector<2x32xf32>
    %c9_193 = arith.constant 9 : index
    %c0_194 = arith.constant 0 : index
    %c0_195 = arith.constant 0 : index
    %352 = vector.load %arg4[%c9_193, %c0_194, %c0_195] : memref<16x32x32xf32, #tpu.memory_space<vmem>>, vector<1x32x32xf32>
    %353 = vector.shape_cast %352 : vector<1x32x32xf32> to vector<32x32xf32>
    %c9_196 = arith.constant 9 : index
    %c0_197 = arith.constant 0 : index
    %c0_198 = arith.constant 0 : index
    %354 = vector.load %arg5[%c9_196, %c0_197, %c0_198] : memref<16x1x32xf32, #tpu.memory_space<vmem>>, vector<1x1x32xf32>
    %355 = vector.shape_cast %354 : vector<1x1x32xf32> to vector<1x32xf32>
    %c11 = arith.constant 11 : index
    %c0_199 = arith.constant 0 : index
    %c0_200 = arith.constant 0 : index
    %356 = vector.load %arg4[%c11, %c0_199, %c0_200] : memref<16x32x32xf32, #tpu.memory_space<vmem>>, vector<1x32x32xf32>
    %357 = vector.shape_cast %356 : vector<1x32x32xf32> to vector<32x32xf32>
    %c11_201 = arith.constant 11 : index
    %c0_202 = arith.constant 0 : index
    %c0_203 = arith.constant 0 : index
    %358 = vector.load %arg5[%c11_201, %c0_202, %c0_203] : memref<16x1x32xf32, #tpu.memory_space<vmem>>, vector<1x1x32xf32>
    %359 = vector.shape_cast %358 : vector<1x1x32xf32> to vector<1x32xf32>
    %c13 = arith.constant 13 : index
    %c0_204 = arith.constant 0 : index
    %c0_205 = arith.constant 0 : index
    %360 = vector.load %arg4[%c13, %c0_204, %c0_205] : memref<16x32x32xf32, #tpu.memory_space<vmem>>, vector<1x32x32xf32>
    %361 = vector.shape_cast %360 : vector<1x32x32xf32> to vector<32x32xf32>
    %c13_206 = arith.constant 13 : index
    %c0_207 = arith.constant 0 : index
    %c0_208 = arith.constant 0 : index
    %362 = vector.load %arg5[%c13_206, %c0_207, %c0_208] : memref<16x1x32xf32, #tpu.memory_space<vmem>>, vector<1x1x32xf32>
    %363 = vector.shape_cast %362 : vector<1x1x32xf32> to vector<1x32xf32>
    %c15 = arith.constant 15 : index
    %c0_209 = arith.constant 0 : index
    %c0_210 = arith.constant 0 : index
    %364 = vector.load %arg4[%c15, %c0_209, %c0_210] : memref<16x32x32xf32, #tpu.memory_space<vmem>>, vector<1x32x32xf32>
    %365 = vector.shape_cast %364 : vector<1x32x32xf32> to vector<32x32xf32>
    %c15_211 = arith.constant 15 : index
    %c0_212 = arith.constant 0 : index
    %c0_213 = arith.constant 0 : index
    %366 = vector.load %arg5[%c15_211, %c0_212, %c0_213] : memref<16x1x32xf32, #tpu.memory_space<vmem>>, vector<1x1x32xf32>
    %367 = vector.shape_cast %366 : vector<1x1x32xf32> to vector<1x32xf32>
    %cst_214 = arith.constant dense<0.000000e+00> : vector<2x32xf32>
    %368 = tpu.matmul %351, %353, %cst_214 {dimension_numbers = #tpu.dot_dimension_numbers<[1], [0], [0], [1], [0, 0, 1, 1], [], []>} : vector<2x32xf32>, vector<32x32xf32>, vector<2x32xf32> -> vector<2x32xf32>
    %369 = vector.broadcast %355 : vector<1x32xf32> to vector<2x32xf32>
    %370 = arith.addf %368, %369 : vector<2x32xf32>
    %cst_215 = arith.constant dense<0.000000e+00> : vector<6x32xf32>
    %371 = tpu.matmul %61, %357, %cst_215 {dimension_numbers = #tpu.dot_dimension_numbers<[1], [0], [0], [1], [0, 0, 1, 1], [], []>} : vector<6x32xf32>, vector<32x32xf32>, vector<6x32xf32> -> vector<6x32xf32>
    %372 = vector.broadcast %359 : vector<1x32xf32> to vector<6x32xf32>
    %373 = arith.addf %371, %372 : vector<6x32xf32>
    %cst_216 = arith.constant dense<0.000000e+00> : vector<6x32xf32>
    %374 = tpu.matmul %61, %361, %cst_216 {dimension_numbers = #tpu.dot_dimension_numbers<[1], [0], [0], [1], [0, 0, 1, 1], [], []>} : vector<6x32xf32>, vector<32x32xf32>, vector<6x32xf32> -> vector<6x32xf32>
    %375 = vector.broadcast %363 : vector<1x32xf32> to vector<6x32xf32>
    %376 = arith.addf %374, %375 : vector<6x32xf32>
    %cst_217 = arith.constant dense<0.000000e+00> : vector<16x32xf32>
    %377 = tpu.matmul %4, %370, %cst_217 {dimension_numbers = #tpu.dot_dimension_numbers<[1], [0], [0], [1], [0, 0, 1, 1], [], []>} : vector<16x2xf32>, vector<2x32xf32>, vector<16x32xf32> -> vector<16x32xf32>
    %378 = arith.mulf %377, %6 : vector<16x32xf32>
    %cst_218 = arith.constant dense<0.000000e+00> : vector<16x6xf32>
    %379 = tpu.matmul %378, %373, %cst_218 {dimension_numbers = #tpu.dot_dimension_numbers<[1], [1], [0], [0], [0, 0, 1, 0], [], []>} : vector<16x32xf32>, vector<6x32xf32>, vector<16x6xf32> -> vector<16x6xf32>
    %380 = arith.addf %379, %5 : vector<16x6xf32>
    %cst_219 = arith.constant dense<0xFF800000> : vector<16xf32>
    %381 = vector.multi_reduction <maximumf>, %380, %cst_219 [1] : vector<16x6xf32> to vector<16xf32>
    %382 = vector.shape_cast %381 : vector<16xf32> to vector<16x1xf32>
    %383 = vector.broadcast %382 : vector<16x1xf32> to vector<16x6xf32>
    %384 = arith.subf %380, %383 : vector<16x6xf32>
    %385 = math.exp %384 : vector<16x6xf32>
    %cst_220 = arith.constant dense<0.000000e+00> : vector<16xf32>
    %386 = vector.multi_reduction <add>, %385, %cst_220 [1] : vector<16x6xf32> to vector<16xf32>
    %387 = vector.shape_cast %386 : vector<16xf32> to vector<16x1xf32>
    %388 = tpu.reciprocal %387 {approx = true} : vector<16x1xf32> -> vector<16x1xf32>
    %389 = vector.broadcast %388 : vector<16x1xf32> to vector<16x6xf32>
    %390 = arith.mulf %385, %389 : vector<16x6xf32>
    %cst_221 = arith.constant dense<0.000000e+00> : vector<16x32xf32>
    %391 = tpu.matmul %390, %376, %cst_221 {dimension_numbers = #tpu.dot_dimension_numbers<[1], [0], [0], [1], [0, 0, 1, 1], [], []>} : vector<16x6xf32>, vector<6x32xf32>, vector<16x32xf32> -> vector<16x32xf32>
    %392 = arith.mulf %391, %6 : vector<16x32xf32>
    %cst_222 = arith.constant dense<0.000000e+00> : vector<2x32xf32>
    %393 = tpu.matmul %7, %392, %cst_222 {dimension_numbers = #tpu.dot_dimension_numbers<[1], [0], [0], [1], [0, 0, 1, 1], [], []>} : vector<2x16xf32>, vector<16x32xf32>, vector<2x32xf32> -> vector<2x32xf32>
    %cst_223 = arith.constant dense<0.000000e+00> : vector<2x32xf32>
    %394 = tpu.matmul %393, %365, %cst_223 {dimension_numbers = #tpu.dot_dimension_numbers<[1], [0], [0], [1], [0, 0, 1, 1], [], []>} : vector<2x32xf32>, vector<32x32xf32>, vector<2x32xf32> -> vector<2x32xf32>
    %395 = vector.broadcast %367 : vector<1x32xf32> to vector<2x32xf32>
    %396 = arith.addf %394, %395 : vector<2x32xf32>
    %397 = arith.addf %351, %396 : vector<2x32xf32>
    %398 = vector.extract_strided_slice %282 {offsets = [2, 0], sizes = [1, 32], strides = [1, 1]} : vector<6x32xf32> to vector<1x32xf32>
    %399 = vector.extract_strided_slice %282 {offsets = [3, 0], sizes = [1, 32], strides = [1, 1]} : vector<6x32xf32> to vector<1x32xf32>
    %cst_224 = arith.constant dense<0.000000e+00> : vector<2xf32>
    %400 = vector.multi_reduction <add>, %397, %cst_224 [1] : vector<2x32xf32> to vector<2xf32>
    %401 = vector.shape_cast %400 : vector<2xf32> to vector<2x1xf32>
    %cst_225 = arith.constant 3.200000e+01 : f32
    %402 = vector.broadcast %cst_225 : f32 to vector<2x1xf32>
    %403 = arith.divf %401, %402 : vector<2x1xf32>
    %404 = vector.broadcast %403 : vector<2x1xf32> to vector<2x32xf32>
    %405 = arith.subf %397, %404 : vector<2x32xf32>
    %406 = arith.mulf %405, %405 : vector<2x32xf32>
    %cst_226 = arith.constant dense<0.000000e+00> : vector<2xf32>
    %407 = vector.multi_reduction <add>, %406, %cst_226 [1] : vector<2x32xf32> to vector<2xf32>
    %408 = vector.shape_cast %407 : vector<2xf32> to vector<2x1xf32>
    %cst_227 = arith.constant 3.200000e+01 : f32
    %409 = vector.broadcast %cst_227 : f32 to vector<2x1xf32>
    %410 = arith.divf %408, %409 : vector<2x1xf32>
    %cst_228 = arith.constant 9.99999974E-6 : f32
    %411 = vector.broadcast %cst_228 : f32 to vector<2x1xf32>
    %412 = arith.addf %410, %411 : vector<2x1xf32>
    %413 = math.rsqrt %412 : vector<2x1xf32>
    %414 = vector.broadcast %413 : vector<2x1xf32> to vector<2x32xf32>
    %415 = arith.mulf %405, %414 : vector<2x32xf32>
    %416 = vector.broadcast %398 : vector<1x32xf32> to vector<2x32xf32>
    %417 = arith.mulf %415, %416 : vector<2x32xf32>
    %418 = vector.broadcast %399 : vector<1x32xf32> to vector<2x32xf32>
    %419 = arith.addf %417, %418 : vector<2x32xf32>
    %420 = arith.subf %419, %351 : vector<2x32xf32>
    %cst_229 = arith.constant dense<0.000000e+00> : vector<6x32xf32>
    %421 = tpu.matmul %9, %420, %cst_229 {dimension_numbers = #tpu.dot_dimension_numbers<[1], [0], [0], [1], [0, 0, 1, 1], [], []>} : vector<6x2xf32>, vector<2x32xf32>, vector<6x32xf32> -> vector<6x32xf32>
    %422 = arith.addf %350, %421 : vector<6x32xf32>
    %c1_230 = arith.constant 1 : index
    %c0_231 = arith.constant 0 : index
    %c0_232 = arith.constant 0 : index
    %423 = vector.load %arg6[%c1_230, %c0_231, %c0_232] : memref<2x32x64xf32, #tpu.memory_space<vmem>>, vector<1x32x64xf32>
    %424 = vector.shape_cast %423 : vector<1x32x64xf32> to vector<32x64xf32>
    %cst_233 = arith.constant dense<0.000000e+00> : vector<6x64xf32>
    %425 = tpu.matmul %422, %424, %cst_233 {dimension_numbers = #tpu.dot_dimension_numbers<[1], [0], [0], [1], [0, 0, 1, 1], [], []>} : vector<6x32xf32>, vector<32x64xf32>, vector<6x64xf32> -> vector<6x64xf32>
    %c1_234 = arith.constant 1 : index
    %c0_235 = arith.constant 0 : index
    %c0_236 = arith.constant 0 : index
    %426 = vector.load %arg7[%c1_234, %c0_235, %c0_236] : memref<2x1x64xf32, #tpu.memory_space<vmem>>, vector<1x1x64xf32>
    %427 = vector.shape_cast %426 : vector<1x1x64xf32> to vector<1x64xf32>
    %428 = vector.broadcast %427 : vector<1x64xf32> to vector<6x64xf32>
    %429 = arith.addf %425, %428 : vector<6x64xf32>
    %cst_237 = arith.constant 0.707106769 : f32
    %430 = vector.broadcast %cst_237 : f32 to vector<6x64xf32>
    %431 = arith.mulf %429, %430 : vector<6x64xf32>
    %432 = math.absf %431 : vector<6x64xf32>
    %cst_238 = arith.constant 0.327591091 : f32
    %433 = vector.broadcast %cst_238 : f32 to vector<6x64xf32>
    %434 = arith.mulf %433, %432 : vector<6x64xf32>
    %cst_239 = arith.constant 1.000000e+00 : f32
    %435 = vector.broadcast %cst_239 : f32 to vector<6x64xf32>
    %436 = arith.addf %435, %434 : vector<6x64xf32>
    %cst_240 = arith.constant 1.000000e+00 : f32
    %437 = vector.broadcast %cst_240 : f32 to vector<6x64xf32>
    %438 = arith.divf %437, %436 : vector<6x64xf32>
    %cst_241 = arith.constant 1.06140542 : f32
    %439 = vector.broadcast %cst_241 : f32 to vector<6x64xf32>
    %440 = arith.mulf %438, %439 : vector<6x64xf32>
    %cst_242 = arith.constant -1.45315206 : f32
    %441 = vector.broadcast %cst_242 : f32 to vector<6x64xf32>
    %442 = arith.addf %441, %440 : vector<6x64xf32>
    %443 = arith.mulf %438, %442 : vector<6x64xf32>
    %cst_243 = arith.constant 1.42141378 : f32
    %444 = vector.broadcast %cst_243 : f32 to vector<6x64xf32>
    %445 = arith.addf %444, %443 : vector<6x64xf32>
    %446 = arith.mulf %438, %445 : vector<6x64xf32>
    %cst_244 = arith.constant -0.284496725 : f32
    %447 = vector.broadcast %cst_244 : f32 to vector<6x64xf32>
    %448 = arith.addf %447, %446 : vector<6x64xf32>
    %449 = arith.mulf %438, %448 : vector<6x64xf32>
    %cst_245 = arith.constant 0.254829586 : f32
    %450 = vector.broadcast %cst_245 : f32 to vector<6x64xf32>
    %451 = arith.addf %450, %449 : vector<6x64xf32>
    %452 = arith.mulf %438, %451 : vector<6x64xf32>
    %cst_246 = arith.constant 0.000000e+00 : f32
    %453 = vector.broadcast %cst_246 : f32 to vector<6x64xf32>
    %454 = arith.subf %453, %432 : vector<6x64xf32>
    %455 = arith.mulf %454, %432 : vector<6x64xf32>
    %456 = math.exp %455 : vector<6x64xf32>
    %457 = arith.mulf %452, %456 : vector<6x64xf32>
    %cst_247 = arith.constant 1.000000e+00 : f32
    %458 = vector.broadcast %cst_247 : f32 to vector<6x64xf32>
    %459 = arith.subf %458, %457 : vector<6x64xf32>
    %cst_248 = arith.constant 0.000000e+00 : f32
    %460 = vector.broadcast %cst_248 : f32 to vector<6x64xf32>
    %461 = arith.cmpf oge, %431, %460 : vector<6x64xf32>
    %cst_249 = arith.constant 0.000000e+00 : f32
    %462 = vector.broadcast %cst_249 : f32 to vector<6x64xf32>
    %463 = arith.subf %462, %459 : vector<6x64xf32>
    %464 = arith.select %461, %459, %463 : vector<6x64xi1>, vector<6x64xf32>
    %cst_250 = arith.constant 5.000000e-01 : f32
    %465 = vector.broadcast %cst_250 : f32 to vector<6x64xf32>
    %466 = arith.mulf %465, %429 : vector<6x64xf32>
    %cst_251 = arith.constant 1.000000e+00 : f32
    %467 = vector.broadcast %cst_251 : f32 to vector<6x64xf32>
    %468 = arith.addf %467, %464 : vector<6x64xf32>
    %469 = arith.mulf %466, %468 : vector<6x64xf32>
    %c1_252 = arith.constant 1 : index
    %c0_253 = arith.constant 0 : index
    %c0_254 = arith.constant 0 : index
    %470 = vector.load %arg8[%c1_252, %c0_253, %c0_254] : memref<2x64x32xf32, #tpu.memory_space<vmem>>, vector<1x64x32xf32>
    %471 = vector.shape_cast %470 : vector<1x64x32xf32> to vector<64x32xf32>
    %cst_255 = arith.constant dense<0.000000e+00> : vector<6x32xf32>
    %472 = tpu.matmul %469, %471, %cst_255 {dimension_numbers = #tpu.dot_dimension_numbers<[1], [0], [0], [1], [0, 0, 1, 1], [], []>} : vector<6x64xf32>, vector<64x32xf32>, vector<6x32xf32> -> vector<6x32xf32>
    %c1_256 = arith.constant 1 : index
    %c0_257 = arith.constant 0 : index
    %c0_258 = arith.constant 0 : index
    %473 = vector.load %arg9[%c1_256, %c0_257, %c0_258] : memref<2x1x32xf32, #tpu.memory_space<vmem>>, vector<1x1x32xf32>
    %474 = vector.shape_cast %473 : vector<1x1x32xf32> to vector<1x32xf32>
    %475 = vector.broadcast %474 : vector<1x32xf32> to vector<6x32xf32>
    %476 = arith.addf %472, %475 : vector<6x32xf32>
    %477 = arith.addf %422, %476 : vector<6x32xf32>
    %478 = vector.extract_strided_slice %282 {offsets = [4, 0], sizes = [1, 32], strides = [1, 1]} : vector<6x32xf32> to vector<1x32xf32>
    %479 = vector.extract_strided_slice %282 {offsets = [5, 0], sizes = [1, 32], strides = [1, 1]} : vector<6x32xf32> to vector<1x32xf32>
    %cst_259 = arith.constant dense<0.000000e+00> : vector<6xf32>
    %480 = vector.multi_reduction <add>, %477, %cst_259 [1] : vector<6x32xf32> to vector<6xf32>
    %481 = vector.shape_cast %480 : vector<6xf32> to vector<6x1xf32>
    %cst_260 = arith.constant 3.200000e+01 : f32
    %482 = vector.broadcast %cst_260 : f32 to vector<6x1xf32>
    %483 = arith.divf %481, %482 : vector<6x1xf32>
    %484 = vector.broadcast %483 : vector<6x1xf32> to vector<6x32xf32>
    %485 = arith.subf %477, %484 : vector<6x32xf32>
    %486 = arith.mulf %485, %485 : vector<6x32xf32>
    %cst_261 = arith.constant dense<0.000000e+00> : vector<6xf32>
    %487 = vector.multi_reduction <add>, %486, %cst_261 [1] : vector<6x32xf32> to vector<6xf32>
    %488 = vector.shape_cast %487 : vector<6xf32> to vector<6x1xf32>
    %cst_262 = arith.constant 3.200000e+01 : f32
    %489 = vector.broadcast %cst_262 : f32 to vector<6x1xf32>
    %490 = arith.divf %488, %489 : vector<6x1xf32>
    %cst_263 = arith.constant 9.99999974E-6 : f32
    %491 = vector.broadcast %cst_263 : f32 to vector<6x1xf32>
    %492 = arith.addf %490, %491 : vector<6x1xf32>
    %493 = math.rsqrt %492 : vector<6x1xf32>
    %494 = vector.broadcast %493 : vector<6x1xf32> to vector<6x32xf32>
    %495 = arith.mulf %485, %494 : vector<6x32xf32>
    %496 = vector.broadcast %478 : vector<1x32xf32> to vector<6x32xf32>
    %497 = arith.mulf %495, %496 : vector<6x32xf32>
    %498 = vector.broadcast %479 : vector<1x32xf32> to vector<6x32xf32>
    %499 = arith.addf %497, %498 : vector<6x32xf32>
    %cst_264 = arith.constant dense<0.000000e+00> : vector<6xf32>
    %500 = vector.multi_reduction <add>, %499, %cst_264 [1] : vector<6x32xf32> to vector<6xf32>
    %501 = vector.shape_cast %500 : vector<6xf32> to vector<6x1xf32>
    %cst_265 = arith.constant 3.200000e+01 : f32
    %502 = vector.broadcast %cst_265 : f32 to vector<6x1xf32>
    %503 = arith.divf %501, %502 : vector<6x1xf32>
    %504 = vector.broadcast %503 : vector<6x1xf32> to vector<6x32xf32>
    %505 = arith.subf %499, %504 : vector<6x32xf32>
    %506 = arith.mulf %505, %505 : vector<6x32xf32>
    %cst_266 = arith.constant dense<0.000000e+00> : vector<6xf32>
    %507 = vector.multi_reduction <add>, %506, %cst_266 [1] : vector<6x32xf32> to vector<6xf32>
    %508 = vector.shape_cast %507 : vector<6xf32> to vector<6x1xf32>
    %cst_267 = arith.constant 3.200000e+01 : f32
    %509 = vector.broadcast %cst_267 : f32 to vector<6x1xf32>
    %510 = arith.divf %508, %509 : vector<6x1xf32>
    %cst_268 = arith.constant 9.99999974E-6 : f32
    %511 = vector.broadcast %cst_268 : f32 to vector<6x1xf32>
    %512 = arith.addf %510, %511 : vector<6x1xf32>
    %513 = math.rsqrt %512 : vector<6x1xf32>
    %514 = vector.broadcast %513 : vector<6x1xf32> to vector<6x32xf32>
    %515 = arith.mulf %505, %514 : vector<6x32xf32>
    %516 = vector.broadcast %16 : vector<1x32xf32> to vector<6x32xf32>
    %517 = arith.mulf %515, %516 : vector<6x32xf32>
    %518 = vector.broadcast %17 : vector<1x32xf32> to vector<6x32xf32>
    %519 = arith.addf %517, %518 : vector<6x32xf32>
    %cst_269 = arith.constant dense<0.000000e+00> : vector<6x32xf32>
    %520 = tpu.matmul %12, %519, %cst_269 {dimension_numbers = #tpu.dot_dimension_numbers<[1], [0], [0], [1], [0, 0, 1, 1], [], []>} : vector<6x6xf32>, vector<6x32xf32>, vector<6x32xf32> -> vector<6x32xf32>
    %521 = vector.extract_strided_slice %520 {offsets = [0, 0], sizes = [2, 32], strides = [1, 1]} : vector<6x32xf32> to vector<2x32xf32>
    %c0_270 = arith.constant 0 : index
    %c0_271 = arith.constant 0 : index
    %c0_272 = arith.constant 0 : index
    %522 = vector.load %arg11[%c0_270, %c0_271, %c0_272] : memref<3x32x32xf32, #tpu.memory_space<vmem>>, vector<1x32x32xf32>
    %523 = vector.shape_cast %522 : vector<1x32x32xf32> to vector<32x32xf32>
    %cst_273 = arith.constant dense<0.000000e+00> : vector<2x32xf32>
    %524 = tpu.matmul %521, %523, %cst_273 {dimension_numbers = #tpu.dot_dimension_numbers<[1], [0], [0], [1], [0, 0, 1, 1], [], []>} : vector<2x32xf32>, vector<32x32xf32>, vector<2x32xf32> -> vector<2x32xf32>
    %525 = vector.broadcast %15 : vector<1x32xf32> to vector<2x32xf32>
    %526 = arith.addf %525, %524 : vector<2x32xf32>
    %527 = vector.extract_strided_slice %520 {offsets = [2, 0], sizes = [2, 32], strides = [1, 1]} : vector<6x32xf32> to vector<2x32xf32>
    %c1_274 = arith.constant 1 : index
    %c0_275 = arith.constant 0 : index
    %c0_276 = arith.constant 0 : index
    %528 = vector.load %arg11[%c1_274, %c0_275, %c0_276] : memref<3x32x32xf32, #tpu.memory_space<vmem>>, vector<1x32x32xf32>
    %529 = vector.shape_cast %528 : vector<1x32x32xf32> to vector<32x32xf32>
    %cst_277 = arith.constant dense<0.000000e+00> : vector<2x32xf32>
    %530 = tpu.matmul %527, %529, %cst_277 {dimension_numbers = #tpu.dot_dimension_numbers<[1], [0], [0], [1], [0, 0, 1, 1], [], []>} : vector<2x32xf32>, vector<32x32xf32>, vector<2x32xf32> -> vector<2x32xf32>
    %531 = arith.addf %526, %530 : vector<2x32xf32>
    %532 = vector.extract_strided_slice %520 {offsets = [4, 0], sizes = [2, 32], strides = [1, 1]} : vector<6x32xf32> to vector<2x32xf32>
    %c2_278 = arith.constant 2 : index
    %c0_279 = arith.constant 0 : index
    %c0_280 = arith.constant 0 : index
    %533 = vector.load %arg11[%c2_278, %c0_279, %c0_280] : memref<3x32x32xf32, #tpu.memory_space<vmem>>, vector<1x32x32xf32>
    %534 = vector.shape_cast %533 : vector<1x32x32xf32> to vector<32x32xf32>
    %cst_281 = arith.constant dense<0.000000e+00> : vector<2x32xf32>
    %535 = tpu.matmul %532, %534, %cst_281 {dimension_numbers = #tpu.dot_dimension_numbers<[1], [0], [0], [1], [0, 0, 1, 1], [], []>} : vector<2x32xf32>, vector<32x32xf32>, vector<2x32xf32> -> vector<2x32xf32>
    %536 = arith.addf %531, %535 : vector<2x32xf32>
    %c0_282 = arith.constant 0 : index
    %c0_283 = arith.constant 0 : index
    %537 = vector.load %arg14[%c0_282, %c0_283] : memref<2x32xf32, #tpu.memory_space<vmem>>, vector<2x32xf32>
    tpu.vector_store %arg14[%c0_282, %c0_283], %536 {strides = array<i32>} : memref<2x32xf32, #tpu.memory_space<vmem>>, vector<2x32xf32>,
    return
  }
}

</mosaic_0001>

<bundles_post_ra>
// kernel: squeeze.2
= control target key start
LH: loop header
LB: loop body
LE: loop exit
PB: predicated region body
PF: predicated region fallthrough
CT: control target
= control target key end

     0   :  { %vm8_vm0 = vcmask 130048   ;;  %s42_s0 = inlined_call_operand.vmem [shape: f32[2,32], index: 0, kind: input, shape index: {}]   ;;  %s43_s1 = inlined_call_operand.vmem [shape: f32[4,16], index: 1, kind: output, shape index: {}]  }
   0x1   :  { %v5_v0 = vld [vmem:[%s42_s0] sm:$0x3]  ;;  %s25_s0 = smov 112  }
   0x2   :  { %6 = vst [vmem:[#allocation1] sm:$0x3] %v5_v0 }
   0x9   :  { %v10_v1 = vld [vmem:[#allocation1] sm:$0x3]  }
   0xa   :  { %v7_v2 = vld [vmem:[#allocation1] sm:$0x3]   ;;  %11 = vrot.lane.b32.xlu0 %v10_v1, %s25_s0 }
   0xb   :  { %9 = vst.msk [vmem:[#allocation0] ss:$2 sm:$0x3] %vm8_vm0, %v7_v2  }
  0x7c   :  { %v12_v3 = vpop.permute.xlu0 %11  }
  0x7d   :  { %15 = vst.msk [vmem:[#allocation0 + $0x1] ss:$2 sm:$0x3] %vm8_vm0, %v12_v3  }
  0x84   :  { %v20_v4 = vld [vmem:[#allocation0] sm:$0xf] }
  0x85   :  { %23 = vst [vmem:[%s43_s1] sm:$0xf] %v20_v4 }

// kernel: model_forward.1
= control target key start
LH: loop header
LB: loop body
LE: loop exit
PB: predicated region body
PF: predicated region fallthrough
CT: control target
= control target key end

     0   :  { %vm89_vm0 = vcmask 1043456   ;;  %vm85_vm1 = vcmask 31744   ;;  %v5797_v1 = vmov 0.0   ;;  %vm5798_vm2 = vmmov 0   ;;  %s6975_s0 = inlined_call_operand.vmem [shape: f32[4,16], index: 0, kind: input, shape index: {}]   ;;  %s6976_s1 = inlined_call_operand.vmem [shape: f32[6,32], index: 1, kind: input, shape index: {}]   ;;  %s6977_s2 = inlined_call_operand.vmem [shape: f32[16,32], index: 2, kind: input, shape index: {}]   ;;  %s6978_s3 = inlined_call_operand.vmem [shape: f32[32,32], index: 3, kind: input, shape index: {}]   ;;  %s6979_s4 = inlined_call_operand.vmem [shape: f32[16,32,32], index: 4, kind: input, shape index: {}]   ;;  %s6980_s5 = inlined_call_operand.vmem [shape: f32[16,1,32], index: 5, kind: input, shape index: {}]   ;;  %s6981_s6 = inlined_call_operand.vmem [shape: f32[2,32,64], index: 6, kind: input, shape index: {}]   ;;  %s6982_s7 = inlined_call_operand.vmem [shape: f32[2,1,64], index: 7, kind: input, shape index: {}]   ;;  %s6983_s8 = inlined_call_operand.vmem [shape: f32[2,64,32], index: 8, kind: input, shape index: {}]   ;;  %s6984_s9 = inlined_call_operand.vmem [shape: f32[2,1,32], index: 9, kind: input, shape index: {}]   ;;  %s6985_s10 = inlined_call_operand.vmem [shape: f32[2,6,32], index: 10, kind: input, shape index: {}]   ;;  %s6986_s11 = inlined_call_operand.vmem [shape: f32[3,32,32], index: 11, kind: input, shape index: {}]   ;;  %s6987_s12 = inlined_call_operand.vmem [shape: f32[10,32], index: 12, kind: input, shape index: {}]   ;;  %s6988_s13 = inlined_call_operand.vmem [shape: f32[248,48], index: 13, kind: input, shape index: {}]   ;;  %s6989_s14 = inlined_call_operand.hbm [shape: f32[2,32], index: 14, kind: output, shape index: {}]  }
   0x1   :  { %v84_v0 = vld [vmem:[%s6975_s0] sm:$0xf]  ;;  %5189 = vmatprep.subr.mxu0 %v5797_v1  ;;  %5191 = vmatprep.mubr.msk.f32.mxu0 %vm5798_vm2, %v5797_v1 }
   0x2   :  { %v76_v2 = vld [vmem:[%s6988_s13 + $0xe0] sm:$0xf] }
   0x3   :  { %19 = vsyncpa [#allocation3], 0  ;;  %5190 = vmatpush3.msk.msra.mxu0 %vm89_vm0, %v84_v0  ;;  %5194 = vmatprep.subr.mxu1 %v5797_v1  ;;  %vm163_vm3 = vcmask 125952   ;;  %v267_v13 = vld [vmem:[%s6977_s2 + $0x8] sm:$0xff]  ;;  %v266_v14 = vld [vmem:[%s6977_s2] sm:$0xff]  ;;  %vm251_vm4 = vcmask 259072  }
   0x4   :  { %5192 = vmatmul.mubr.msk.f32.vlgmr.msra.gmra.mxu0 %vm85_vm1, %v76_v2  ;;  %5196 = vmatprep.mubr.msk.f32.mxu1 %vm5798_vm2, %v5797_v1  ;;  %v250_v15 = vld [vmem:[%s6976_s1] sm:$0x3f]  ;;  %vm268_vm5 = vcmask 130048   ;;  %v421_v27 = vld [vmem:[%s6978_s3 + $0x18] sm:$0xff]  ;;  %v420_v28 = vld [vmem:[%s6978_s3 + $0x10] sm:$0xff]  ;;  %vm426_vm6 = vcmask 261120  }
   0x5   :  { %5199 = vmatprep.subr.mxu0 %v5797_v1  ;;  %5203 = vmatprep.mubr.msk.f32.mxu0 %vm5798_vm2, %v5797_v1  ;;  %v252_v16 = vsel %vm251_vm4, %v250_v15, 0.0  ;;  %v419_v29 = vld [vmem:[%s6978_s3 + $0x8] sm:$0xff]  ;;  %v418_v30 = vld [vmem:[%s6978_s3] sm:$0xff]  ;;  %v504_v33 = vld [vmem:[%s6979_s4 + $0x18] sm:$0xff]  ;;  %vm758_vm7 = vcmask 48128   ;;  %vm777_vm8 = vcmask 1045504  }
   0x6   :  { %5200 = vmatpush3.msra.mxu0 %v267_v13  ;;  %253 = vadd.xlane.f32.xlu1 %v252_v16  ;;  %v77_v31 = vld [vmem:[%s6988_s13 + $0xe8] sm:$0x3f]  ;;  %v503_v35 = vld [vmem:[%s6979_s4 + $0x10] sm:$0xff]  ;;  %v4747_v42 = vld [vmem:[%s6979_s4 + $0x58] sm:$0xff]  ;;  %vm1186_vm9 = vcmask 392192   ;;  %vm1701_vm10 = vcmask 15360  }
   0x7   :  { %5201 = vmatprep.subr.mxu0 %v5797_v1  ;;  %v502_v36 = vld [vmem:[%s6979_s4 + $0x8] sm:$0xff]  ;;  %v4746_v43 = vld [vmem:[%s6979_s4 + $0x50] sm:$0xff]  ;;  %v501_v45 = vld [vmem:[%s6979_s4] sm:$0xff]  ;;  %vm1708_vm11 = vcmask 1041408   ;;  %vm2134_vm12 = vcmask 254976   ;;  %vm2362_vm14 = vcmask 523264  }
   0x8   :  { %5202 = vmatpush3.msra.mxu0 %v266_v14  ;;  %v4745_v44 = vld [vmem:[%s6979_s4 + $0x48] sm:$0xff]  ;;  %v4744_v46 = vld [vmem:[%s6979_s4 + $0x40] sm:$0xff]  ;;  %v4752_v50 = vld [vmem:[%s6979_s4 + $0x98] sm:$0xff]  ;;  %s5799_s0 = smov [#allocation2]  }
   0x9   :  { %5211 = vmatprep.subr.mxu0 %v5797_v1  ;;  %v79_v47 = vld [vmem:[%s6987_s12] sm:$0x3f]  ;;  %v4751_v52 = vld [vmem:[%s6979_s4 + $0x90] sm:$0xff]  ;;  %v4750_v53 = vld [vmem:[%s6979_s4 + $0x88] sm:$0xff]  ;;  %s4727_s17 = sshll.u32 %s5799_s0, 4  ;;  %s4728_s17 = int_to_ptr.vmem [resolvable:$true] %s4727_s17 }
   0xa   :  { %v4749_v54 = vld [vmem:[%s6979_s4 + $0x80] sm:$0xff]  ;;  %v6050_v14 = vld [vmem:[%s6988_s13 + $0x68] sm:$0xff]  ;;  %p5780_p1 = scmp.lt.s32.totalorder %s4728_s17, %s4728_s17 }
   0xb   :  { %v48_v57 = vld [vmem:[%s6988_s13] sm:$0xff] }
   0xc   :  { %v4759_v58 = vld [vmem:[%s6980_s5] ss:$0 sm:$0xff]  ;;  %v4761_v59 = vld [vmem:[%s6980_s5 + $0x2] ss:$0 sm:$0xff] }
   0xd   :  { %v6045_v13 = vld [vmem:[%s6988_s13 + $0x60] sm:$0xff] }
  0x8f   :  { %v254_v22 = vpop.xlane.xlu1 %253 }
  0x90   :  { %v256_v23 = vmul.f32 0.03125, %v254_v22 }
  0x92   :  { %v257_v24 = vsub.f32 %v250_v15, %v256_v23 }
  0x94   :  { %v258_v25 = vmul.f32 %v257_v24, %v257_v24 }
  0x96   :  { %v259_v26 = vsel %vm251_vm4, %v258_v25, 0.0  ;;  %v6071_v25 = vld [vmem:[%s6988_s13 + $0x80] sm:$0xff] }
  0x97   :  { %260 = vadd.xlane.f32.xlu1 %v259_v26  ;;  %v6076_v26 = vld [vmem:[%s6988_s13 + $0x88] sm:$0xff] }
  0xc4   :  { %v159_v3 = vpop.f32.mrf.mxu0 }
  0xc5   :  { %v164_v4 = vsel %vm163_vm3, %v159_v3, 0.0  ;;  %v49_v3 = vld [vmem:[%s6988_s13 + $0x8] sm:$0xff] }
  0xc6   :  { %165 = vadd.xlane.f32.xlu0 %v164_v4  ;;  %v5193_v5 = vpop.f32.mrf.mxu0  ;;  %v50_v4 = vld [vmem:[%s6988_s13 + $0x10] sm:$0xff] }
  0xc7   :  { %v4763_v5 = vld [vmem:[%s6980_s5 + $0x4] ss:$0 sm:$0xff] }
 0x120   :  { %v261_v37 = vpop.xlane.xlu1 %260 }
 0x121   :  { %v262_v38 = vmul.f32 0.03125, %v261_v37 }
 0x123   :  { %v263_v39 = vadd.f32 1e-05, %v262_v38 }
 0x14f   :  { %v166_v6 = vpop.xlane.xlu0 %165 }
 0x150   :  { %v167_v7 = vmul.f32 0.03125, %v166_v6  ;;  %v51_v6 = vld [vmem:[%s6988_s13 + $0x18] sm:$0xff] }
 0x152   :  { %v168_v8 = vsub.f32 %v84_v0, %v167_v7  ;;  %v52_v7 = vld [vmem:[%s6988_s13 + $0x20] sm:$0xff] }
 0x154   :  { %v169_v9 = vmul.f32 %v168_v8, %v168_v8 }
 0x156   :  { %5195 = vmatpush3.msk.msra.mxu1 %vm89_vm0, %v169_v9 }
 0x157   :  { %5197 = vmatmul.mubr.msk.f32.vlgmr.msra.gmra.mxu1 %vm85_vm1, %v76_v2  ;;  %5206 = vmatprep.subr.mxu1 %v5797_v1 }
 0x158   :  { %5208 = vmatprep.mubr.msk.f32.mxu1 %vm5798_vm2, %v5797_v1 }
 0x217   :  { %v239_v10 = vpop.f32.mrf.mxu1 }
 0x218   :  { %v243_v11 = vsel %vm163_vm3, %v239_v10, 0.0 }
 0x219   :  { %244 = vadd.xlane.f32.xlu0 %v243_v11  ;;  %v5198_v12 = vpop.f32.mrf.mxu1  ;;  %v53_v11 = vld [vmem:[%s6988_s13 + $0x28] sm:$0xff] }
 0x2a2   :  { %v245_v17 = vpop.xlane.xlu0 %244 }
 0x2a3   :  { %v246_v18 = vmul.f32 0.03125, %v245_v17 }
 0x2a5   :  { %v247_v19 = vadd.f32 1e-05, %v246_v18 }
 0x2a7   :  { %5659 = vrsqrt.f32 %v247_v19  ;;  %v6057_v19 = vld [vmem:[%s6988_s13 + $0x70] sm:$0xff] }
 0x2a8   :  { %5661 = vrsqrt.f32 %v263_v39  ;;  %v56_v39 = vld [vmem:[%s6988_s13 + $0x40] sm:$0xff] }
 0x2b4   :  { %v5660_v20 = vpop.eup %5659 }
 0x2b5   :  { %v249_v21 = vmul.f32 %v5660_v20, %v168_v8  ;;  %v5662_v40 = vpop.eup %5661  ;;  %v6062_v20 = vld [vmem:[%s6988_s13 + $0x78] sm:$0xff] }
 0x2b6   :  { %v265_v41 = vmul.f32 %v5662_v40, %v257_v24 }
 0x2b7   :  { %5204 = vmatmul.mubr.msk.f32.vlgmr.msra.gmra.mxu0 %vm268_vm5, %v249_v21 }
 0x2b8   :  { %5219 = vmatprep.mubr.msk.f32.mxu0 %vm5798_vm2, %v5797_v1  ;;  %5212 = vmatpush3.msra.mxu0 %v421_v27 }
 0x2b9   :  { %5213 = vmatprep.subr.mxu0 %v5797_v1 }
 0x2ba   :  { %5214 = vmatpush3.msra.mxu0 %v420_v28 }
 0x2bb   :  { %5215 = vmatprep.subr.mxu0 %v5797_v1 }
 0x2bc   :  { %5216 = vmatpush3.msra.mxu0 %v419_v29 }
 0x2bd   :  { %5217 = vmatprep.subr.mxu0 %v5797_v1 }
 0x2be   :  { %5218 = vmatpush3.msra.mxu0 %v418_v30  ;;  %v55_v30 = vld [vmem:[%s6988_s13 + $0x38] sm:$0xff] }
 0x2bf   :  { %5233 = vmatprep.subr.mxu0 %v5797_v1  ;;  %5220 = vmatmul.mubr.msk.f32.vlgmr.msra.gmra.mxu0 %vm426_vm6, %v265_v41 }
 0x2c0   :  { %5234 = vmatpush3.msra.mxu0 %v4747_v42  ;;  %5241 = vmatprep.mubr.msk.f32.mxu0 %vm5798_vm2, %v5797_v1 }
 0x2c1   :  { %5235 = vmatprep.subr.mxu0 %v5797_v1 }
 0x2c2   :  { %5236 = vmatpush3.msra.mxu0 %v4746_v43  ;;  %v59_v43 = vld [vmem:[%s6988_s13 + $0x58] sm:$0xff] }
 0x2c3   :  { %5237 = vmatprep.subr.mxu0 %v5797_v1 }
 0x2c4   :  { %5238 = vmatpush3.msra.mxu0 %v4745_v44 }
 0x2c5   :  { %5239 = vmatprep.subr.mxu0 %v5797_v1 }
 0x2c6   :  { %5240 = vmatpush3.msra.mxu0 %v4744_v46 }
 0x377   :  { %v338_v32 = vpop.f32.mrf.mxu0 }
 0x378   :  { %5207 = vmatpush3.msk.msra.mxu1 %vm89_vm0, %v338_v32  ;;  %v54_v32 = vld [vmem:[%s6988_s13 + $0x30] sm:$0xff] }
 0x379   :  { %v5205_v34 = vpop.f32.mrf.mxu0  ;;  %5209 = vmatmul.mubr.msk.f32.vlgmr.msra.gmra.mxu1 %vm85_vm1, %v77_v31  ;;  %5222 = vmatprep.subr.mxu1 %v5797_v1 }
 0x37a   :  { %5223 = vmatpush3.msra.mxu1 %v504_v33  ;;  %5230 = vmatprep.mubr.msk.f32.mxu1 %vm5798_vm2, %v5797_v1 }
 0x37b   :  { %5224 = vmatprep.subr.mxu1 %v5797_v1 }
 0x37c   :  { %5225 = vmatpush3.msra.mxu1 %v503_v35  ;;  %v57_v35 = vld [vmem:[%s6988_s13 + $0x48] sm:$0xff] }
 0x37d   :  { %5226 = vmatprep.subr.mxu1 %v5797_v1 }
 0x37e   :  { %5227 = vmatpush3.msra.mxu1 %v502_v36 }
 0x37f   :  { %5228 = vmatprep.subr.mxu1 %v5797_v1  ;;  %v5999_v55 = vpop.f32.mrf.mxu0 }
 0x380   :  { %5229 = vmatpush3.msra.mxu1 %v501_v45 }
 0x381   :  { %5244 = vmatprep.subr.mxu1 %v5797_v1  ;;  %v5221_v56 = vpop.f32.mrf.mxu0 }
 0x439   :  { %v414_v48 = vpop.f32.mrf.mxu1 }
 0x43a   :  { %v5974_v49 = vadd.f32 %v414_v48, %v79_v47  ;;  %v58_v47 = vld [vmem:[%s6988_s13 + $0x50] sm:$0xff] }
 0x43b   :  { %v5210_v51 = vpop.f32.mrf.mxu1 }
 0x43c   :  { %5231 = vmatmul.mubr.msk.f32.vlgmr.msra.gmra.mxu1 %vm426_vm6, %v5974_v49  ;;  %5242 = vmatmul.mubr.msk.f32.vlgmr.msra.gmra.mxu0 %vm426_vm6, %v5974_v49 }
 0x43d   :  { %5245 = vmatpush3.msra.mxu1 %v4752_v50  ;;  %5252 = vmatprep.mubr.msk.f32.mxu1 %vm5798_vm2, %v5797_v1 }
 0x43e   :  { %5246 = vmatprep.subr.mxu1 %v5797_v1  ;;  %5257 = vmatprep.mubr.msk.f32.mxu0 %vm758_vm7, %v48_v57 }
 0x43f   :  { %5247 = vmatpush3.msra.mxu1 %v4751_v52 }
 0x440   :  { %5248 = vmatprep.subr.mxu1 %v5797_v1 }
 0x441   :  { %5249 = vmatpush3.msra.mxu1 %v4750_v53 }
 0x442   :  { %5250 = vmatprep.subr.mxu1 %v5797_v1 }
 0x443   :  { %5251 = vmatpush3.msra.mxu1 %v4749_v54 }
 0x444   :  { %5253 = vmatmul.mubr.msk.f32.vlgmr.msra.gmra.mxu1 %vm426_vm6, %v5974_v49 }
 0x4fc   :  { %v602_v60 = vpop.f32.mrf.mxu1  ;;  %v678_v61 = vpop.f32.mrf.mxu0 }
 0x4fd   :  { %v603_v62 = vadd.f32 %v4759_v58, %v602_v60  ;;  %v679_v63 = vadd.f32 %v4761_v59, %v678_v61 }
 0x4fe   :  { %v5232_v0 = vpop.f32.mrf.mxu1  ;;  %v5243_v2 = vpop.f32.mrf.mxu0 }
 0x4ff   :  { %5255 = vmatprep.subr.msk.mxu0 %vm777_vm8, %v603_v62  ;;  %5266 = vmatprep.subr.msk.mxu1 %vm426_vm6, %v679_v63 }
 0x500   :  { %5256 = vmatpush3.msk.msra.mxu0 %vm777_vm8, %v603_v62  ;;  %5267 = vmatpush3.xpose.msk.msra.mxu1 %vm426_vm6, %v679_v63 }
 0x501   :  { %5258 = vmatmul.mubr.msk.f32.vlgmr.msra.gmra.mxu0 %vm758_vm7, %v49_v3  ;;  %5288 = vmatprep.subr.mxu1 %v5797_v1 }
 0x502   :  { %5260 = vmatprep.mubr.msk.f32.mxu0 %vm758_vm7, %v50_v4 }
 0x504   :  { %v754_v8 = vpop.f32.mrf.mxu1 }
 0x505   :  { %v755_v9 = vadd.f32 %v4763_v5, %v754_v8  ;;  %5261 = vmatmul.mubr.msk.f32.gmra.mxu0 %vm758_vm7, %v51_v6 }
 0x506   :  { %v5254_v10 = vpop.f32.mrf.mxu1  ;;  %5263 = vmatprep.mubr.msk.f32.mxu0 %vm758_vm7, %v52_v7 }
 0x507   :  { %5277 = vmatprep.subr.msk.mxu0 %vm777_vm8, %v755_v9 }
 0x508   :  { %5278 = vmatpush3.msk.msra.mxu0 %vm777_vm8, %v755_v9 }
 0x509   :  { %5264 = vmatmul.mubr.msk.f32.gmra.mxu0 %vm758_vm7, %v53_v11  ;;  %5314 = vmatprep.subr.mxu0 %v5797_v1 }
 0x5c1   :  { %v5259_v12 = vpop.f32.mrf.mxu0 }
 0x5c2   :  { %v877_v17 = vmul.f32 %v5259_v12, %v6050_v14 }
 0x5c3   :  { %v847_v15 = vpop.f32.mrf.mxu0 }
 0x5c4   :  { %v876_v16 = vmul.f32 %v847_v15, %v6045_v13 }
 0x5c5   :  { %v5262_v18 = vpop.f32.mrf.mxu0 }
 0x5c6   :  { %5268 = vmatprep.mubr.msk.f32.mxu1 %vm426_vm6, %v876_v16  ;;  %v879_v23 = vmul.f32 %v5262_v18, %v6062_v20 }
 0x5c7   :  { %v857_v21 = vpop.f32.mrf.mxu0  ;;  %5269 = vmatmul.mubr.msk.f32.vlgmr.msra.gmra.mxu1 %vm426_vm6, %v877_v17 }
 0x5c8   :  { %v878_v22 = vmul.f32 %v857_v21, %v6057_v19 }
 0x5c9   :  { %v5265_v24 = vpop.f32.mrf.mxu0 }
 0x5ca   :  { %5271 = vmatprep.mubr.msk.f32.mxu1 %vm426_vm6, %v878_v22  ;;  %v881_v29 = vmul.f32 %v5265_v24, %v6076_v26 }
 0x5cb   :  { %v867_v27 = vpop.f32.mrf.mxu0  ;;  %5272 = vmatmul.mubr.msk.f32.gmra.mxu1 %vm426_vm6, %v879_v23 }
 0x5cc   :  { %v880_v28 = vmul.f32 %v867_v27, %v6071_v25 }
 0x5ce   :  { %5274 = vmatprep.mubr.msk.f32.mxu1 %vm426_vm6, %v880_v28 }
 0x5cf   :  { %5275 = vmatmul.mubr.msk.f32.gmra.mxu1 %vm426_vm6, %v881_v29 }
 0x5d0   :  { %5300 = vmatprep.mubr.msk.f32.mxu1 %vm5798_vm2, %v5797_v1 }
 0x687   :  { %v5270_v31 = vpop.f32.mrf.mxu1 }
 0x688   :  { %v975_v33 = vadd.f32 %v5270_v31, %v55_v30 }
 0x689   :  { %v969_v34 = vpop.f32.mrf.mxu1 }
 0x68a   :  { %v970_v36 = vadd.f32 %v969_v34, %v54_v32  ;;  %v1001_v37 = vsel %vm758_vm7, %v975_v33, -inf }
 0x68b   :  { %1002 = vmax.xlane.f32.xlu1 %v1001_v37  ;;  %v5273_v38 = vpop.f32.mrf.mxu1 }
 0x68c   :  { %v985_v40 = vadd.f32 %v5273_v38, %v57_v35  ;;  %v998_v41 = vsel %vm758_vm7, %v970_v36, -inf }
 0x68d   :  { %999 = vmax.xlane.f32.xlu0 %v998_v41  ;;  %v979_v42 = vpop.f32.mrf.mxu1 }
 0x68e   :  { %v980_v44 = vadd.f32 %v979_v42, %v56_v39  ;;  %v1007_v45 = vsel %vm758_vm7, %v985_v40, -inf }
 0x68f   :  { %1008 = vmax.xlane.f32.xlu1 %v1007_v45  ;;  %v5276_v46 = vpop.f32.mrf.mxu1 }
 0x690   :  { %v995_v48 = vadd.f32 %v5276_v46, %v59_v43  ;;  %v1004_v50 = vsel %vm758_vm7, %v980_v44, -inf }
 0x691   :  { %1005 = vmax.xlane.f32.xlu0 %v1004_v50  ;;  %v989_v51 = vpop.f32.mrf.mxu1 }
 0x692   :  { %v990_v52 = vadd.f32 %v989_v51, %v58_v47  ;;  %v1013_v53 = vsel %vm758_vm7, %v995_v48, -inf }
 0x693   :  { %1014 = vmax.xlane.f32.xlu1 %v1013_v53 }
 0x694   :  { %v1010_v54 = vsel %vm758_vm7, %v990_v52, -inf }
 0x695   :  { %1011 = vmax.xlane.f32.xlu0 %v1010_v54 }
 0x714   :  { %v1003_v56 = vpop.xlane.xlu1 %1002 }
 0x715   :  { %v1017_v57 = vsub.f32 %v975_v33, %v1003_v56 }
 0x716   :  { %v1000_v58 = vpop.xlane.xlu0 %999 }
 0x717   :  { %v1024_v59 = vmul.f32 1.442695, %v1017_v57  ;;  %v1016_v60 = vsub.f32 %v970_v36, %v1000_v58 }
 0x718   :  { %v1009_v61 = vpop.xlane.xlu1 %1008 }
 0x719   :  { %5663 = vpow2.f32 %v1024_v59  ;;  %v1022_v62 = vmul.f32 1.442695, %v1016_v60  ;;  %v1019_v63 = vsub.f32 %v985_v40, %v1009_v61 }
 0x71a   :  { %v1006_v0 = vpop.xlane.xlu0 %1005 }
 0x71b   :  { %5665 = vpow2.f32 %v1022_v62  ;;  %v1028_v2 = vmul.f32 1.442695, %v1019_v63  ;;  %v1018_v3 = vsub.f32 %v980_v44, %v1006_v0  ;;  %v4787_v62 = vld [vmem:[%s6980_s5 + $0x6] ss:$0 sm:$0xff] }
 0x71c   :  { %v1015_v4 = vpop.xlane.xlu1 %1014 }
 0x71d   :  { %5667 = vpow2.f32 %v1028_v2  ;;  %v1026_v5 = vmul.f32 1.442695, %v1018_v3  ;;  %v1021_v6 = vsub.f32 %v995_v48, %v1015_v4 }
 0x71e   :  { %v1012_v7 = vpop.xlane.xlu0 %1011 }
 0x71f   :  { %5669 = vpow2.f32 %v1026_v5  ;;  %v1032_v8 = vmul.f32 1.442695, %v1021_v6  ;;  %v1020_v9 = vsub.f32 %v990_v52, %v1012_v7 }
 0x721   :  { %5671 = vpow2.f32 %v1032_v8  ;;  %v1030_v10 = vmul.f32 1.442695, %v1020_v9 }
 0x723   :  { %5673 = vpow2.f32 %v1030_v10  ;;  %v4794_v10 = vld [vmem:[%s6979_s4 + $0x118] sm:$0xff] }
 0x726   :  { %v5664_v11 = vpop.eup %5663 }
 0x727   :  { %v1037_v12 = vsel %vm758_vm7, %v5664_v11, 0.0 }
 0x728   :  { %v5666_v15 = vpop.eup %5665  ;;  %1038 = vadd.xlane.f32.xlu1 %v1037_v12  ;;  %v4791_v12 = vld [vmem:[%s6979_s4 + $0x100] sm:$0xff] }
 0x729   :  { %v1034_v16 = vsel %vm758_vm7, %v5666_v15, 0.0 }
 0x72a   :  { %v5668_v17 = vpop.eup %5667  ;;  %1035 = vadd.xlane.f32.xlu0 %v1034_v16 }
 0x72b   :  { %v1043_v18 = vsel %vm758_vm7, %v5668_v17, 0.0 }
 0x72c   :  { %v5670_v21 = vpop.eup %5669  ;;  %1044 = vadd.xlane.f32.xlu1 %v1043_v18  ;;  %v1353_v18 = vlaneseq }
 0x72d   :  { %v1040_v22 = vsel %vm758_vm7, %v5670_v21, 0.0 }
 0x72e   :  { %v5672_v23 = vpop.eup %5671  ;;  %1041 = vadd.xlane.f32.xlu0 %v1040_v22 }
 0x72f   :  { %v1049_v24 = vsel %vm758_vm7, %v5672_v23, 0.0 }
 0x730   :  { %v5674_v27 = vpop.eup %5673  ;;  %1050 = vadd.xlane.f32.xlu1 %v1049_v24 }
 0x731   :  { %v1046_v28 = vsel %vm758_vm7, %v5674_v27, 0.0 }
 0x732   :  { %1047 = vadd.xlane.f32.xlu0 %v1046_v28 }
 0x7b1   :  { %v1039_v29 = vpop.xlane.xlu1 %1038 }
 0x7b2   :  { %5675 = vrcp.f32 %v1039_v29 }
 0x7b3   :  { %v1036_v30 = vpop.xlane.xlu0 %1035 }
 0x7b4   :  { %5677 = vrcp.f32 %v1036_v30 }
 0x7b5   :  { %v1045_v31 = vpop.xlane.xlu1 %1044 }
 0x7b6   :  { %5679 = vrcp.f32 %v1045_v31 }
 0x7b7   :  { %v1042_v32 = vpop.xlane.xlu0 %1041 }
 0x7b8   :  { %5681 = vrcp.f32 %v1042_v32 }
 0x7b9   :  { %v1051_v33 = vpop.xlane.xlu1 %1050 }
 0x7ba   :  { %5683 = vrcp.f32 %v1051_v33  ;;  %v74_v33 = vld [vmem:[%s6988_s13 + $0xd0] sm:$0x3] }
 0x7bb   :  { %v1048_v34 = vpop.xlane.xlu0 %1047 }
 0x7bc   :  { %5685 = vrcp.f32 %v1048_v34  ;;  %v4799_v34 = vld [vmem:[%s6979_s4 + $0x158] sm:$0xff] }
 0x7bf   :  { %v5676_v35 = vpop.eup %5675 }
 0x7c0   :  { %v1059_v38 = vmul.f32 %v5676_v35, %v5664_v11  ;;  %v4793_v11 = vld [vmem:[%s6979_s4 + $0x110] sm:$0xff] }
 0x7c1   :  { %v5678_v36 = vpop.eup %5677  ;;  %v4798_v35 = vld [vmem:[%s6979_s4 + $0x150] sm:$0xff] }
 0x7c2   :  { %v1058_v37 = vmul.f32 %v5678_v36, %v5666_v15  ;;  %v4797_v36 = vld [vmem:[%s6979_s4 + $0x148] sm:$0xff] }
 0x7c3   :  { %v5680_v39 = vpop.eup %5679 }
 0x7c4   :  { %5279 = vmatprep.mubr.msk.f32.mxu0 %vm758_vm7, %v1058_v37  ;;  %v1061_v42 = vmul.f32 %v5680_v39, %v5668_v17  ;;  %v4742_v37 = vld [vmem:[%s6987_s12 + $0x6] ss:$0 sm:$0xff] }
 0x7c5   :  { %v5682_v40 = vpop.eup %5681  ;;  %5280 = vmatmul.mubr.msk.f32.vlgmr.msra.gmra.mxu0 %vm758_vm7, %v1059_v38  ;;  %v4796_v38 = vld [vmem:[%s6979_s4 + $0x140] sm:$0xff]  ;;  %v6227_v39 = vadd.f32 %v4742_v37, %v5999_v55  ;;  %v4803_v55 = vld [vmem:[%s6979_s4 + $0x190] sm:$0xff] }
 0x7c6   :  { %v1060_v41 = vmul.f32 %v5682_v40, %v5670_v21  ;;  %v6183_v21 = vshrl.u32 %v1353_v18, 7  ;;  %v4804_v40 = vld [vmem:[%s6979_s4 + $0x198] sm:$0xff] }
 0x7c7   :  { %v5684_v43 = vpop.eup %5683 }
 0x7c8   :  { %5282 = vmatprep.mubr.msk.f32.mxu0 %vm758_vm7, %v1060_v41  ;;  %v1063_v46 = vmul.f32 %v5684_v43, %v5672_v23  ;;  %v1355_v22 = vsub.s32 0, %v6183_v21  ;;  %v6189_v23 = vld [vmem:[%s6985_s10] sm:$0x3f]  ;;  %v1360_v24 = vsub.s32 1, %v6183_v21  ;;  %v4802_v43 = vld [vmem:[%s6979_s4 + $0x188] sm:$0xff] }
 0x7c9   :  { %v5686_v44 = vpop.eup %5685  ;;  %5283 = vmatmul.mubr.msk.f32.gmra.mxu0 %vm758_vm7, %v1061_v42 }
 0x7ca   :  { %v1062_v45 = vmul.f32 %v5686_v44, %v5674_v27  ;;  %v1356_v27 = vrot.slane %v6189_v23, %v1355_v22  ;;  %v1361_v30 = vrot.slane %v6189_v23, %v1360_v24  ;;  %v4801_v44 = vld [vmem:[%s6979_s4 + $0x180] sm:$0xff] }
 0x7cc   :  { %5285 = vmatprep.mubr.msk.f32.mxu0 %vm758_vm7, %v1062_v45 }
 0x7cd   :  { %5286 = vmatmul.mubr.msk.f32.gmra.mxu0 %vm758_vm7, %v1063_v46 }
 0x7ce   :  { %5316 = vmatprep.mubr.msk.f32.mxu0 %vm5798_vm2, %v5797_v1 }
 0x885   :  { %v5281_v47 = vpop.f32.mrf.mxu0 }
 0x886   :  { %v1181_v59 = vmul.f32 %v5281_v47, %v6050_v14  ;;  %v4755_v14 = vld [vmem:[%s6979_s4 + $0xc8] sm:$0xff]  ;;  %v6258_v47 = vld [vmem:[%s6988_s13 + $0x98] sm:$0xff] }
 0x887   :  { %v1151_v48 = vpop.f32.mrf.mxu0 }
 0x889   :  { %v5284_v50 = vpop.f32.mrf.mxu0 }
 0x88a   :  { %v1183_v57 = vmul.f32 %v5284_v50, %v6062_v20  ;;  %v66_v20 = vld [vmem:[%s6988_s13 + $0x90] sm:$0x3f]  ;;  %v4813_v50 = vld [vmem:[%s6980_s5 + $0xa] ss:$0 sm:$0xff] }
 0x88b   :  { %v1161_v51 = vpop.f32.mrf.mxu0 }
 0x88c   :  { %v1182_v58 = vmul.f32 %v1161_v51, %v6057_v19  ;;  %v4757_v19 = vld [vmem:[%s6979_s4 + $0xd8] sm:$0xff] }
 0x88d   :  { %v5287_v52 = vpop.f32.mrf.mxu0 }
 0x88e   :  { %v1185_v53 = vmul.f32 %v5287_v52, %v6076_v26  ;;  %v4754_v26 = vld [vmem:[%s6979_s4 + $0xc0] sm:$0xff] }
 0x88f   :  { %v1171_v54 = vpop.f32.mrf.mxu0 }
 0x890   :  { %v1184_v56 = vmul.f32 %v1171_v54, %v6071_v25  ;;  %5289 = vmatpush3.msra.mxu1 %v1185_v53  ;;  %v1180_v25 = vmul.f32 %v1151_v48, %v6045_v13  ;;  %v4756_v13 = vld [vmem:[%s6979_s4 + $0xd0] sm:$0xff]  ;;  %v4811_v48 = vld [vmem:[%s6980_s5 + $0x8] ss:$0 sm:$0xff]  ;;  %v68_v54 = vld [vmem:[%s6988_s13 + $0xa0] sm:$0xff] }
 0x891   :  { %5290 = vmatprep.subr.mxu1 %v5797_v1 }
 0x892   :  { %5291 = vmatpush3.msra.mxu1 %v1184_v56 }
 0x893   :  { %5292 = vmatprep.subr.mxu1 %v5797_v1 }
 0x894   :  { %5293 = vmatpush3.msra.mxu1 %v1183_v57  ;;  %v4815_v57 = vld [vmem:[%s6980_s5 + $0xc] ss:$0 sm:$0xff] }
 0x895   :  { %5294 = vmatprep.subr.mxu1 %v5797_v1 }
 0x896   :  { %5295 = vmatpush3.msra.mxu1 %v1182_v58 }
 0x897   :  { %5296 = vmatprep.subr.mxu1 %v5797_v1 }
 0x898   :  { %5297 = vmatpush3.msra.mxu1 %v1181_v59 }
 0x899   :  { %5298 = vmatprep.subr.mxu1 %v5797_v1 }
 0x89a   :  { %5299 = vmatpush3.msra.mxu1 %v1180_v25 }
 0x89b   :  { %5301 = vmatmul.mubr.msk.f32.vlgmr.msra.gmra.mxu1 %vm1186_vm9, %v66_v20  ;;  %5303 = vmatprep.subr.mxu1 %v5797_v1 }
 0x89c   :  { %5304 = vmatpush3.msra.mxu1 %v4757_v19  ;;  %5311 = vmatprep.mubr.msk.f32.mxu1 %vm5798_vm2, %v5797_v1  ;;  %v71_v19 = vld [vmem:[%s6988_s13 + $0xb8] sm:$0xff] }
 0x89d   :  { %5305 = vmatprep.subr.mxu1 %v5797_v1 }
 0x89e   :  { %5306 = vmatpush3.msra.mxu1 %v4756_v13  ;;  %v72_v13 = vld [vmem:[%s6988_s13 + $0xc0] sm:$0xff] }
 0x89f   :  { %5307 = vmatprep.subr.mxu1 %v5797_v1 }
 0x8a0   :  { %5308 = vmatpush3.msra.mxu1 %v4755_v14 }
 0x8a1   :  { %5309 = vmatprep.subr.mxu1 %v5797_v1 }
 0x8a2   :  { %5310 = vmatpush3.msra.mxu1 %v4754_v26 }
 0x8a3   :  { %5319 = vmatprep.subr.mxu1 %v5797_v1 }
 0x95b   :  { %v1256_v60 = vpop.f32.mrf.mxu1 }
 0x95c   :  { %5312 = vmatmul.mubr.msk.f32.vlgmr.msra.gmra.mxu1 %vm426_vm6, %v1256_v60 }
 0x95d   :  { %v5302_v61 = vpop.f32.mrf.mxu1  ;;  %5327 = vmatprep.mubr.msk.f32.mxu1 %vm5798_vm2, %v5797_v1  ;;  %5320 = vmatpush3.msra.mxu1 %v4794_v10 }
 0x95e   :  { %5321 = vmatprep.subr.mxu1 %v5797_v1  ;;  %v70_v61 = vld [vmem:[%s6988_s13 + $0xb0] sm:$0xff] }
 0x95f   :  { %5322 = vmatpush3.msra.mxu1 %v4793_v11 }
 0x960   :  { %5323 = vmatprep.subr.mxu1 %v5797_v1 }
 0xa1c   :  { %v1335_v63 = vpop.f32.mrf.mxu1 }
 0xa1d   :  { %v1336_v0 = vadd.f32 %v4787_v62, %v1335_v63  ;;  %v69_v63 = vld [vmem:[%s6988_s13 + $0xa8] sm:$0xff] }
 0xa1e   :  { %v5313_v2 = vpop.f32.mrf.mxu1 }
 0xa1f   :  { %v1339_v3 = vadd.f32 %v1336_v0, %v5974_v49  ;;  %v4792_v49 = vld [vmem:[%s6979_s4 + $0x108] sm:$0xff] }
 0xa20   :  { %5324 = vmatpush3.msra.mxu1 %v4792_v49 }
 0xa21   :  { %v1340_v4 = vsel %vm251_vm4, %v1339_v3, 0.0  ;;  %5325 = vmatprep.subr.mxu1 %v5797_v1 }
 0xa22   :  { %1341 = vadd.xlane.f32.xlu0 %v1340_v4  ;;  %5326 = vmatpush3.msra.mxu1 %v4791_v12 }
 0xa23   :  { %5341 = vmatprep.subr.mxu1 %v5797_v1 }
 0xaab   :  { %v1342_v5 = vpop.xlane.xlu0 %1341 }
 0xaac   :  { %v1343_v6 = vmul.f32 0.03125, %v1342_v5 }
 0xaae   :  { %v1344_v7 = vsub.f32 %v1339_v3, %v1343_v6 }
 0xab0   :  { %v1345_v8 = vmul.f32 %v1344_v7, %v1344_v7 }
 0xab2   :  { %v1346_v9 = vsel %vm251_vm4, %v1345_v8, 0.0 }
 0xab3   :  { %1347 = vadd.xlane.f32.xlu1 %v1346_v9 }
 0xb3c   :  { %v1348_v15 = vpop.xlane.xlu1 %1347 }
 0xb3d   :  { %v1349_v16 = vmul.f32 0.03125, %v1348_v15 }
 0xb3f   :  { %v1350_v17 = vadd.f32 1e-05, %v1349_v16 }
 0xb41   :  { %5687 = vrsqrt.f32 %v1350_v17 }
 0xb4e   :  { %v5688_v28 = vpop.eup %5687 }
 0xb4f   :  { %v1352_v29 = vmul.f32 %v5688_v28, %v1344_v7 }
 0xb51   :  { %v1357_v31 = vmul.f32 %v1356_v27, %v1352_v29 }
 0xb53   :  { %v6198_v32 = vadd.f32 %v1361_v30, %v1357_v31  ;;  %v4809_v31 = vld [vmem:[%s6979_s4 + $0x1d8] sm:$0xff] }
 0xb55   :  { %5315 = vmatpush3.msk.msra.mxu0 %vm777_vm8, %v6198_v32 }
 0xb56   :  { %5317 = vmatmul.mubr.msk.f32.vlgmr.msra.gmra.mxu0 %vm758_vm7, %v74_v33  ;;  %5330 = vmatprep.subr.mxu0 %v5797_v1  ;;  %v4808_v33 = vld [vmem:[%s6979_s4 + $0x1d0] sm:$0xff] }
 0xb57   :  { %5331 = vmatpush3.msra.mxu0 %v4799_v34  ;;  %5338 = vmatprep.mubr.msk.f32.mxu0 %vm5798_vm2, %v5797_v1  ;;  %v4807_v34 = vld [vmem:[%s6979_s4 + $0x1c8] sm:$0xff] }
 0xb58   :  { %5332 = vmatprep.subr.mxu0 %v5797_v1 }
 0xb59   :  { %5333 = vmatpush3.msra.mxu0 %v4798_v35 }
 0xb5a   :  { %5334 = vmatprep.subr.mxu0 %v5797_v1 }
 0xb5b   :  { %5335 = vmatpush3.msra.mxu0 %v4797_v36 }
 0xb5c   :  { %5336 = vmatprep.subr.mxu0 %v5797_v1 }
 0xb5d   :  { %5337 = vmatpush3.msra.mxu0 %v4796_v38 }
 0xb5e   :  { %5339 = vmatmul.mubr.msk.f32.vlgmr.msra.gmra.mxu0 %vm426_vm6, %v6227_v39 }
 0xb5f   :  { %5354 = vmatprep.mubr.msk.f32.mxu0 %vm1701_vm10, %v6258_v47 }
 0xc16   :  { %v6235_v41 = vpop.f32.mrf.mxu0 }
 0xc17   :  { %5328 = vmatmul.mubr.msk.f32.vlgmr.msra.gmra.mxu1 %vm426_vm6, %v6235_v41 }
 0xc18   :  { %5342 = vmatpush3.msra.mxu1 %v4804_v40  ;;  %v5318_v42 = vpop.f32.mrf.mxu0  ;;  %5349 = vmatprep.mubr.msk.f32.mxu1 %vm5798_vm2, %v5797_v1  ;;  %v73_v40 = vld [vmem:[%s6988_s13 + $0xc8] sm:$0x3] }
 0xc19   :  { %5343 = vmatprep.subr.mxu1 %v5797_v1 }
 0xc1a   :  { %5344 = vmatpush3.msra.mxu1 %v4803_v55  ;;  %v4806_v55 = vld [vmem:[%s6979_s4 + $0x1c0] sm:$0xff] }
 0xc1b   :  { %5345 = vmatprep.subr.mxu1 %v5797_v1 }
 0xc1c   :  { %5346 = vmatpush3.msra.mxu1 %v4802_v43 }
 0xc1d   :  { %5347 = vmatprep.subr.mxu1 %v5797_v1 }
 0xc1e   :  { %5348 = vmatpush3.msra.mxu1 %v4801_v44  ;;  %v1621_v45 = vpop.f32.mrf.mxu0  ;;  %v4827_v44 = vld [vmem:[%s6980_s5 + $0xe] ss:$0 sm:$0xff] }
 0xc1f   :  { %5350 = vmatmul.mubr.msk.f32.vlgmr.msra.gmra.mxu1 %vm426_vm6, %v6227_v39  ;;  %v1622_v56 = vadd.f32 %v4813_v50, %v1621_v45 }
 0xc20   :  { %v5340_v46 = vpop.f32.mrf.mxu0 }
 0xcd7   :  { %v1542_v51 = vpop.f32.mrf.mxu1 }
 0xcd8   :  { %v1543_v52 = vadd.f32 %v4811_v48, %v1542_v51 }
 0xcd9   :  { %v5329_v53 = vpop.f32.mrf.mxu1 }
 0xcda   :  { %5352 = vmatprep.subr.msk.mxu0 %vm1708_vm11, %v1543_v52 }
 0xcdb   :  { %5353 = vmatpush3.msk.msra.mxu0 %vm1708_vm11, %v1543_v52 }
 0xcdc   :  { %5355 = vmatmul.mubr.msk.f32.vlgmr.msra.gmra.mxu0 %vm1701_vm10, %v68_v54  ;;  %5357 = vmatprep.subr.msk.mxu0 %vm426_vm6, %v1622_v56 }
 0xcdd   :  { %5358 = vmatpush3.xpose.msk.msra.mxu0 %vm426_vm6, %v1622_v56 }
 0xcde   :  { %5367 = vmatprep.subr.mxu0 %v5797_v1 }
 0xcdf   :  { %v1697_v58 = vpop.f32.mrf.mxu1 }
 0xce0   :  { %v1698_v59 = vadd.f32 %v4815_v57, %v1697_v58 }
 0xce1   :  { %v5351_v25 = vpop.f32.mrf.mxu1 }
 0xce2   :  { %5362 = vmatprep.subr.msk.mxu1 %vm777_vm8, %v1698_v59 }
 0xce3   :  { %5363 = vmatpush3.msk.msra.mxu1 %vm777_vm8, %v1698_v59 }
 0xce4   :  { %5374 = vmatprep.subr.mxu1 %v5797_v1 }
 0xd9c   :  { %v5356_v20 = vpop.f32.mrf.mxu0 }
 0xd9d   :  { %v1788_v60 = vmul.f32 %v5356_v20, %v72_v13  ;;  %v2150_v20 = vsub.s32 2, %v6183_v21 }
 0xd9e   :  { %v1778_v14 = vpop.f32.mrf.mxu0 }
 0xd9f   :  { %v1787_v26 = vmul.f32 %v1778_v14, %v71_v19 }
 0xda1   :  { %5359 = vmatprep.mubr.msk.f32.mxu0 %vm426_vm6, %v1787_v26 }
 0xda2   :  { %5360 = vmatmul.mubr.msk.f32.vlgmr.msra.gmra.mxu0 %vm426_vm6, %v1788_v60 }
 0xda3   :  { %5371 = vmatprep.mubr.msk.f32.mxu0 %vm5798_vm2, %v5797_v1 }
 0xe62   :  { %v5361_v62 = vpop.f32.mrf.mxu0 }
 0xe63   :  { %v1870_v0 = vadd.f32 %v5361_v62, %v70_v61 }
 0xe64   :  { %v1864_v2 = vpop.f32.mrf.mxu0 }
 0xe65   :  { %v1865_v3 = vadd.f32 %v1864_v2, %v69_v63  ;;  %v1876_v4 = vsel %vm758_vm7, %v1870_v0, -inf  ;;  %v2239_v2 = vld [vmem:[%s6981_s6 + $0x18] sm:$0xff] }
 0xe66   :  { %1877 = vmax.xlane.f32.xlu1 %v1876_v4  ;;  %v2236_v4 = vld [vmem:[%s6981_s6] sm:$0xff] }
 0xe67   :  { %v1873_v5 = vsel %vm758_vm7, %v1865_v3, -inf }
 0xe68   :  { %1874 = vmax.xlane.f32.xlu0 %v1873_v5 }
 0xeef   :  { %v1878_v6 = vpop.xlane.xlu1 %1877 }
 0xef0   :  { %v1880_v7 = vsub.f32 %v1870_v0, %v1878_v6  ;;  %v6352_v0 = vld [vmem:[%s6988_s13 + $0xd8] sm:$0x3f] }
 0xef1   :  { %v1875_v8 = vpop.xlane.xlu0 %1874 }
 0xef2   :  { %v1883_v9 = vmul.f32 1.442695, %v1880_v7  ;;  %v1879_v10 = vsub.f32 %v1865_v3, %v1875_v8  ;;  %v2237_v3 = vld [vmem:[%s6981_s6 + $0x8] sm:$0xff]  ;;  %v2354_v8 = vld [vmem:[%s6983_s8 + $0x38] sm:$0xff] }
 0xef4   :  { %5689 = vpow2.f32 %v1883_v9  ;;  %v1881_v11 = vmul.f32 1.442695, %v1879_v10  ;;  %v2353_v9 = vld [vmem:[%s6983_s8 + $0x30] sm:$0xff]  ;;  %v2351_v10 = vld [vmem:[%s6983_s8 + $0x20] sm:$0xff] }
 0xef6   :  { %5691 = vpow2.f32 %v1881_v11  ;;  %v2350_v11 = vld [vmem:[%s6983_s8 + $0x18] sm:$0xff] }
 0xf01   :  { %v5690_v49 = vpop.eup %5689 }
 0xf02   :  { %v1888_v12 = vsel %vm758_vm7, %v5690_v49, 0.0 }
 0xf03   :  { %v5692_v15 = vpop.eup %5691  ;;  %1889 = vadd.xlane.f32.xlu1 %v1888_v12  ;;  %v2348_v12 = vld [vmem:[%s6983_s8 + $0x8] sm:$0xff] }
 0xf04   :  { %v1885_v16 = vsel %vm758_vm7, %v5692_v15, 0.0 }
 0xf05   :  { %1886 = vadd.xlane.f32.xlu0 %v1885_v16  ;;  %v4831_v16 = vld [vmem:[%s6982_s7] ss:$0 sm:$0xff] }
 0xf8c   :  { %v1890_v17 = vpop.xlane.xlu1 %1889 }
 0xf8d   :  { %5693 = vrcp.f32 %v1890_v17 }
 0xf8e   :  { %v1887_v18 = vpop.xlane.xlu0 %1886 }
 0xf8f   :  { %5695 = vrcp.f32 %v1887_v18 }
 0xf9a   :  { %v5694_v27 = vpop.eup %5693 }
 0xf9b   :  { %v1894_v30 = vmul.f32 %v5694_v27, %v5690_v49  ;;  %v2349_v49 = vld [vmem:[%s6983_s8 + $0x10] sm:$0xff] }
 0xf9c   :  { %v5696_v28 = vpop.eup %5695 }
 0xf9d   :  { %v1893_v29 = vmul.f32 %v5696_v28, %v5692_v15  ;;  %v2347_v15 = vld [vmem:[%s6983_s8] sm:$0xff] }
 0xf9f   :  { %5364 = vmatprep.mubr.msk.f32.mxu1 %vm758_vm7, %v1893_v29 }
 0xfa0   :  { %5365 = vmatmul.mubr.msk.f32.vlgmr.msra.gmra.mxu1 %vm758_vm7, %v1894_v30 }
 0xfa1   :  { %5382 = vmatprep.mubr.msk.f32.mxu1 %vm5798_vm2, %v5797_v1  ;;  %5375 = vmatpush3.msra.mxu1 %v4809_v31 }
 0xfa2   :  { %5376 = vmatprep.subr.mxu1 %v5797_v1 }
 0xfa3   :  { %5377 = vmatpush3.msra.mxu1 %v4808_v33 }
 0xfa4   :  { %5378 = vmatprep.subr.mxu1 %v5797_v1 }
 0xfa5   :  { %5379 = vmatpush3.msra.mxu1 %v4807_v34 }
 0xfa6   :  { %5380 = vmatprep.subr.mxu1 %v5797_v1 }
 0xfa7   :  { %5381 = vmatpush3.msra.mxu1 %v4806_v55 }
 0xfa8   :  { %5401 = vmatprep.subr.mxu1 %v5797_v1 }
0x1060   :  { %v5366_v35 = vpop.f32.mrf.mxu1 }
0x1061   :  { %v1980_v36 = vmul.f32 %v5366_v35, %v72_v13  ;;  %v2151_v13 = vrot.slane %v6189_v23, %v2150_v20 }
0x1062   :  { %v1970_v37 = vpop.f32.mrf.mxu1 }
0x1063   :  { %v1979_v38 = vmul.f32 %v1970_v37, %v71_v19  ;;  %5368 = vmatpush3.msra.mxu0 %v1980_v36  ;;  %v2155_v19 = vsub.s32 3, %v6183_v21 }
0x1064   :  { %5369 = vmatprep.subr.mxu0 %v5797_v1 }
0x1065   :  { %5370 = vmatpush3.msra.mxu0 %v1979_v38  ;;  %v2156_v60 = vrot.slane %v6189_v23, %v2155_v19 }
0x1066   :  { %5372 = vmatmul.mubr.msk.f32.vlgmr.msra.gmra.mxu0 %vm268_vm5, %v73_v40  ;;  %5385 = vmatprep.subr.mxu0 %v5797_v1 }
0x1067   :  { %5387 = vmatprep.mubr.msk.f32.mxu0 %vm5798_vm2, %v5797_v1 }
0x1126   :  { %v2050_v42 = vpop.f32.mrf.mxu0 }
0x1127   :  { %5383 = vmatmul.mubr.msk.f32.vlgmr.msra.gmra.mxu1 %vm426_vm6, %v2050_v42 }
0x1128   :  { %v5373_v43 = vpop.f32.mrf.mxu0  ;;  %5417 = vmatprep.mubr.msk.f32.mxu1 %vm5798_vm2, %v5797_v1  ;;  %5402 = vmatpush3.msra.mxu1 %v2354_v8  ;;  %v4836_v8 = vld [vmem:[%s6979_s4 + $0x20] sm:$0xff] }
0x1129   :  { %5403 = vmatprep.subr.mxu1 %v5797_v1 }
0x112a   :  { %5404 = vmatpush3.msra.mxu1 %v2353_v9  ;;  %v4846_v9 = vld [vmem:[%s6979_s4 + $0xa0] sm:$0xff] }
0x112b   :  { %5405 = vmatprep.subr.mxu1 %v5797_v1 }
0x11e7   :  { %v2129_v45 = vpop.f32.mrf.mxu1 }
0x11e8   :  { %v2130_v46 = vadd.f32 %v4827_v44, %v2129_v45 }
0x11e9   :  { %v5384_v48 = vpop.f32.mrf.mxu1 }
0x11ea   :  { %v2133_v50 = vadd.f32 %v2130_v46, %v6235_v41 }
0x11ec   :  { %v2135_v51 = vsel %vm2134_vm12, %v2133_v50, 0.0 }
0x11ed   :  { %2136 = vadd.xlane.f32.xlu0 %v2135_v51 }
0x1276   :  { %v2137_v52 = vpop.xlane.xlu0 %2136 }
0x1277   :  { %v2138_v53 = vmul.f32 0.03125, %v2137_v52 }
0x1279   :  { %v2139_v54 = vsub.f32 %v2133_v50, %v2138_v53 }
0x127b   :  { %v2140_v56 = vmul.f32 %v2139_v54, %v2139_v54 }
0x127d   :  { %v2141_v57 = vsel %vm2134_vm12, %v2140_v56, 0.0 }
0x127e   :  { %2142 = vadd.xlane.f32.xlu1 %v2141_v57 }
0x1307   :  { %v2143_v58 = vpop.xlane.xlu1 %2142 }
0x1308   :  { %v2144_v59 = vmul.f32 0.03125, %v2143_v58  ;;  %v4833_v58 = vld [vmem:[%s6984_s9] ss:$0 sm:$0xff] }
0x130a   :  { %v2145_v25 = vadd.f32 1e-05, %v2144_v59 }
0x130c   :  { %5697 = vrsqrt.f32 %v2145_v25 }
0x1319   :  { %v5698_v14 = vpop.eup %5697 }
0x131a   :  { %v2147_v26 = vmul.f32 %v5698_v14, %v2139_v54 }
0x131c   :  { %v2152_v61 = vmul.f32 %v2151_v13, %v2147_v26 }
0x131e   :  { %v2157_v62 = vadd.f32 %v2156_v60, %v2152_v61 }
0x1320   :  { %v2158_v63 = vsub.f32 %v2157_v62, %v6235_v41  ;;  %v2238_v41 = vld [vmem:[%s6981_s6 + $0x10] sm:$0xff] }
0x1322   :  { %5386 = vmatpush3.msk.msra.mxu0 %vm1708_vm11, %v2158_v63 }
0x1323   :  { %5388 = vmatmul.mubr.msk.f32.vlgmr.msra.gmra.mxu0 %vm1701_vm10, %v6352_v0  ;;  %5390 = vmatprep.subr.mxu0 %v5797_v1 }
0x1324   :  { %5391 = vmatpush3.msra.mxu0 %v2239_v2  ;;  %5398 = vmatprep.mubr.msk.f32.mxu0 %vm5798_vm2, %v5797_v1 }
0x1325   :  { %5392 = vmatprep.subr.mxu0 %v5797_v1 }
0x1326   :  { %5393 = vmatpush3.msra.mxu0 %v2238_v41  ;;  %v4839_v41 = vld [vmem:[%s6979_s4 + $0x38] sm:$0xff] }
0x1327   :  { %5394 = vmatprep.subr.mxu0 %v5797_v1 }
0x1328   :  { %5395 = vmatpush3.msra.mxu0 %v2237_v3  ;;  %v4849_v3 = vld [vmem:[%s6979_s4 + $0xb8] sm:$0xff] }
0x1329   :  { %5396 = vmatprep.subr.mxu0 %v5797_v1 }
0x132a   :  { %5397 = vmatpush3.msra.mxu0 %v2236_v4  ;;  %v4838_v4 = vld [vmem:[%s6979_s4 + $0x30] sm:$0xff] }
0x132b   :  { %5420 = vmatprep.subr.mxu0 %v5797_v1 }
0x13e3   :  { %v2231_v5 = vpop.f32.mrf.mxu0 }
0x13e4   :  { %v6377_v6 = vadd.f32 %v2231_v5, %v6198_v32  ;;  %v2352_v32 = vld [vmem:[%s6983_s8 + $0x28] sm:$0xff]  ;;  %v4848_v5 = vld [vmem:[%s6979_s4 + $0xb0] sm:$0xff] }
0x13e5   :  { %v5389_v7 = vpop.f32.mrf.mxu0  ;;  %5406 = vmatpush3.msra.mxu1 %v2352_v32 }
0x13e6   :  { %5399 = vmatmul.mubr.msk.f32.vlgmr.msra.gmra.mxu0 %vm426_vm6, %v6377_v6  ;;  %5407 = vmatprep.subr.mxu1 %v5797_v1  ;;  %v4847_v7 = vld [vmem:[%s6979_s4 + $0xa8] sm:$0xff] }
0x13e7   :  { %5428 = vmatprep.mubr.msk.f32.mxu0 %vm5798_vm2, %v5797_v1  ;;  %5408 = vmatpush3.msra.mxu1 %v2351_v10 }
0x13e8   :  { %5409 = vmatprep.subr.mxu1 %v5797_v1  ;;  %5421 = vmatpush3.msra.mxu0 %v4839_v41  ;;  %v6563_v41 = vld [vmem:[%s6988_s13 + $0x80] sm:$0xff] }
0x13e9   :  { %5410 = vmatpush3.msra.mxu1 %v2350_v11  ;;  %5422 = vmatprep.subr.mxu0 %v5797_v1 }
0x13ea   :  { %5411 = vmatprep.subr.mxu1 %v5797_v1  ;;  %5423 = vmatpush3.msra.mxu0 %v4838_v4  ;;  %v6569_v4 = vld [vmem:[%s6988_s13 + $0x88] sm:$0xff] }
0x13eb   :  { %5412 = vmatpush3.msra.mxu1 %v2349_v49  ;;  %5424 = vmatprep.subr.mxu0 %v5797_v1  ;;  %v2452_v49 = vsub.s32 4, %v6183_v21 }
0x13ec   :  { %5413 = vmatprep.subr.mxu1 %v5797_v1 }
0x13ed   :  { %5414 = vmatpush3.msra.mxu1 %v2348_v12  ;;  %v2457_v12 = vsub.s32 5, %v6183_v21  ;;  %v4946_v21 = vld [vmem:[%s6987_s12 + $0x8] ss:$0 sm:$0xff] }
0x13ee   :  { %5415 = vmatprep.subr.mxu1 %v5797_v1 }
0x13ef   :  { %5416 = vmatpush3.msra.mxu1 %v2347_v15  ;;  %v2453_v15 = vrot.slane %v6189_v23, %v2452_v49 }
0x13f0   :  { %5442 = vmatprep.subr.mxu1 %v5797_v1 }
0x14a6   :  { %v2316_v17 = vpop.f32.mrf.mxu0 }
0x14a7   :  { %v2317_v18 = vadd.f32 %v4831_v16, %v2316_v17 }
0x14a8   :  { %v5400_v27 = vpop.f32.mrf.mxu0 }
0x14a9   :  { %v2320_v28 = vmul.f32 0.70710677, %v2317_v18  ;;  %v2344_v54 = vmul.f32 0.5, %v2317_v18  ;;  %v2458_v18 = vrot.slane %v6189_v23, %v2457_v12  ;;  %v4842_v23 = vld [vmem:[%s6979_s4 + $0x68] sm:$0xff] }
0x14ab   :  { %v2321_v29 = vand.u32 2147483647, %v2320_v28  ;;  %vm2341_vm13 = vcmp.ge.f32.partialorder %v2320_v28, 0.0 }
0x14ad   :  { %v2322_v30 = vmul.f32 0.3275911, %v2321_v29  ;;  %v2335_v33 = vsub.f32 0.0, %v2321_v29 }
0x14af   :  { %v2323_v31 = vadd.f32 1.0, %v2322_v30  ;;  %v2336_v34 = vmul.f32 %v2335_v33, %v2321_v29  ;;  %v4844_v29 = vld [vmem:[%s6979_s4 + $0x78] sm:$0xff]  ;;  %v4843_v30 = vld [vmem:[%s6979_s4 + $0x70] sm:$0xff]  ;;  %v5749_v33 = vld [vmem:[%s6988_s13] sm:$0xff] }
0x14b1   :  { %5699 = vrcp.f32 %v2323_v31  ;;  %v2337_v37 = vmul.f32 1.442695, %v2336_v34  ;;  %v4841_v31 = vld [vmem:[%s6979_s4 + $0x60] sm:$0xff] }
0x14b2   :  { %v4856_v34 = vld [vmem:[%s6980_s5 + $0x1] ss:$0 sm:$0xff] }
0x14b3   :  { %5701 = vpow2.f32 %v2337_v37 }
0x14be   :  { %v5700_v35 = vpop.eup %5699 }
0x14bf   :  { %v2326_v36 = vmul.f32 1.0614054, %v5700_v35 }
0x14c0   :  { %v5702_v48 = vpop.eup %5701 }
0x14c1   :  { %v2327_v38 = vadd.f32 -1.4531521, %v2326_v36  ;;  %v4860_v36 = vld [vmem:[%s6980_s5 + $0x5] ss:$0 sm:$0xff] }
0x14c3   :  { %v2328_v40 = vmul.f32 %v5700_v35, %v2327_v38 }
0x14c5   :  { %v2329_v55 = vadd.f32 1.4214138, %v2328_v40 }
0x14c7   :  { %v2330_v42 = vmul.f32 %v5700_v35, %v2329_v55 }
0x14c9   :  { %v2331_v43 = vadd.f32 -0.28449672, %v2330_v42 }
0x14cb   :  { %v2332_v44 = vmul.f32 %v5700_v35, %v2331_v43  ;;  %v5750_v43 = vld [vmem:[%s6988_s13 + $0x8] sm:$0xff] }
0x14cd   :  { %v2333_v45 = vadd.f32 0.2548296, %v2332_v44  ;;  %v4858_v44 = vld [vmem:[%s6980_s5 + $0x3] ss:$0 sm:$0xff] }
0x14cf   :  { %v2334_v46 = vmul.f32 %v5700_v35, %v2333_v45  ;;  %v5751_v45 = vld [vmem:[%s6988_s13 + $0x10] sm:$0xff] }
0x14d1   :  { %v2339_v50 = vmul.f32 %v5702_v48, %v2334_v46 }
0x14d3   :  { %v2340_v51 = vsub.f32 1.0, %v2339_v50  ;;  %v5752_v50 = vld [vmem:[%s6988_s13 + $0x18] sm:$0xff] }
0x14d5   :  { %v2342_v52 = vsub.f32 0.0, %v2340_v51 }
0x14d7   :  { %v2343_v53 = vsel %vm2341_vm13, %v2340_v51, %v2342_v52  ;;  %v5753_v52 = vld [vmem:[%s6988_s13 + $0x20] sm:$0xff] }
0x14d8   :  { %v2345_v56 = vadd.f32 1.0, %v2343_v53  ;;  %v5754_v53 = vld [vmem:[%s6988_s13 + $0x28] sm:$0xff] }
0x14da   :  { %v2346_v57 = vmul.f32 %v2345_v56, %v2344_v54 }
0x14dc   :  { %5418 = vmatmul.mubr.msk.f32.vlgmr.msra.gmra.mxu1 %vm2362_vm14, %v2346_v57  ;;  %v6535_v57 = vld [vmem:[%s6988_s13 + $0x60] sm:$0xff] }
0x14dd   :  { %5450 = vmatprep.mubr.msk.f32.mxu1 %vm5798_vm2, %v5797_v1  ;;  %5443 = vmatpush3.msra.mxu1 %v4849_v3 }
0x14de   :  { %5444 = vmatprep.subr.mxu1 %v5797_v1 }
0x14df   :  { %5445 = vmatpush3.msra.mxu1 %v4848_v5 }
0x14e0   :  { %5446 = vmatprep.subr.mxu1 %v5797_v1 }
0x14e1   :  { %5447 = vmatpush3.msra.mxu1 %v4847_v7  ;;  %v5761_v7 = vld [vmem:[%s6988_s13 + $0x38] sm:$0xff] }
0x14e2   :  { %5448 = vmatprep.subr.mxu1 %v5797_v1 }
0x14e3   :  { %5449 = vmatpush3.msra.mxu1 %v4846_v9 }
0x159c   :  { %v2432_v59 = vpop.f32.mrf.mxu1 }
0x159d   :  { %v2433_v25 = vadd.f32 %v4833_v58, %v2432_v59  ;;  %v6541_v59 = vld [vmem:[%s6988_s13 + $0x68] sm:$0xff] }
0x159e   :  { %v5419_v13 = vpop.f32.mrf.mxu1 }
0x159f   :  { %v2436_v14 = vadd.f32 %v2433_v25, %v6377_v6  ;;  %v4837_v6 = vld [vmem:[%s6979_s4 + $0x28] sm:$0xff] }
0x15a0   :  { %5425 = vmatpush3.msra.mxu0 %v4837_v6 }
0x15a1   :  { %v2437_v26 = vsel %vm251_vm4, %v2436_v14, 0.0  ;;  %5426 = vmatprep.subr.mxu0 %v5797_v1 }
0x15a2   :  { %2438 = vadd.xlane.f32.xlu0 %v2437_v26  ;;  %5427 = vmatpush3.msra.mxu0 %v4836_v8  ;;  %v6549_v26 = vld [vmem:[%s6988_s13 + $0x70] sm:$0xff] }
0x15a3   :  { %5431 = vmatprep.subr.mxu0 %v5797_v1 }
0x162b   :  { %v2439_v60 = vpop.xlane.xlu0 %2438 }
0x162c   :  { %v2440_v61 = vmul.f32 0.03125, %v2439_v60 }
0x162e   :  { %v2441_v62 = vsub.f32 %v2436_v14, %v2440_v61  ;;  %v6555_v61 = vld [vmem:[%s6988_s13 + $0x78] sm:$0xff] }
0x1630   :  { %v2442_v63 = vmul.f32 %v2441_v62, %v2441_v62 }
0x1632   :  { %v2443_v2 = vsel %vm251_vm4, %v2442_v63, 0.0 }
0x1633   :  { %2444 = vadd.xlane.f32.xlu1 %v2443_v2 }
0x16bc   :  { %v2445_v32 = vpop.xlane.xlu1 %2444 }
0x16bd   :  { %v2446_v10 = vmul.f32 0.03125, %v2445_v32  ;;  %v5762_v32 = vld [vmem:[%s6988_s13 + $0x30] sm:$0xff] }
0x16bf   :  { %v2447_v11 = vadd.f32 1e-05, %v2446_v10 }
0x16c1   :  { %5703 = vrsqrt.f32 %v2447_v11 }
0x16ce   :  { %v5704_v16 = vpop.eup %5703 }
0x16cf   :  { %v2449_v17 = vmul.f32 %v5704_v16, %v2441_v62  ;;  %v5763_v16 = vld [vmem:[%s6988_s13 + $0x48] sm:$0xff] }
0x16d1   :  { %v2454_v27 = vmul.f32 %v2453_v15, %v2449_v17 }
0x16d3   :  { %v6466_v28 = vadd.f32 %v2458_v18, %v2454_v27 }
0x16d5   :  { %5429 = vmatmul.mubr.msk.f32.vlgmr.msra.gmra.mxu0 %vm426_vm6, %v6466_v28  ;;  %5451 = vmatmul.mubr.msk.f32.vlgmr.msra.gmra.mxu1 %vm426_vm6, %v6466_v28 }
0x16d6   :  { %5432 = vmatpush3.msra.mxu0 %v4844_v29  ;;  %5439 = vmatprep.mubr.msk.f32.mxu0 %vm5798_vm2, %v5797_v1  ;;  %v5764_v29 = vld [vmem:[%s6988_s13 + $0x40] sm:$0xff] }
0x16d7   :  { %5433 = vmatprep.subr.mxu0 %v5797_v1 }
0x16d8   :  { %5434 = vmatpush3.msra.mxu0 %v4843_v30 }
0x16d9   :  { %5435 = vmatprep.subr.mxu0 %v5797_v1 }
0x16da   :  { %5436 = vmatpush3.msra.mxu0 %v4842_v23 }
0x16db   :  { %5437 = vmatprep.subr.mxu0 %v5797_v1 }
0x16dc   :  { %5438 = vmatpush3.msra.mxu0 %v4841_v31 }
0x16dd   :  { %5440 = vmatmul.mubr.msk.f32.vlgmr.msra.gmra.mxu0 %vm426_vm6, %v6466_v28 }
0x16de   :  { %5455 = vmatprep.mubr.msk.f32.mxu0 %vm758_vm7, %v5749_v33  ;;  %v5765_v33 = vld [vmem:[%s6988_s13 + $0x58] sm:$0xff] }
0x1795   :  { %v2565_v35 = vpop.f32.mrf.mxu0  ;;  %v2717_v37 = vpop.f32.mrf.mxu1 }
0x1796   :  { %v2566_v38 = vadd.f32 %v4856_v34, %v2565_v35  ;;  %v2718_v42 = vadd.f32 %v4860_v36, %v2717_v37  ;;  %v5766_v37 = vld [vmem:[%s6988_s13 + $0x50] sm:$0xff] }
0x1797   :  { %v5430_v40 = vpop.f32.mrf.mxu0  ;;  %v5452_v55 = vpop.f32.mrf.mxu1 }
0x1798   :  { %5453 = vmatprep.subr.msk.mxu0 %vm777_vm8, %v2566_v38 }
0x1799   :  { %5454 = vmatpush3.msk.msra.mxu0 %vm777_vm8, %v2566_v38 }
0x179a   :  { %5456 = vmatmul.mubr.msk.f32.vlgmr.msra.gmra.mxu0 %vm758_vm7, %v5750_v43  ;;  %5475 = vmatprep.subr.msk.mxu0 %vm777_vm8, %v2718_v42 }
0x179b   :  { %5476 = vmatpush3.msk.msra.mxu0 %vm777_vm8, %v2718_v42  ;;  %5458 = vmatprep.mubr.msk.f32.mxu0 %vm758_vm7, %v5751_v45 }
0x179c   :  { %5512 = vmatprep.subr.mxu0 %v5797_v1 }
0x179d   :  { %v2641_v46 = vpop.f32.mrf.mxu0 }
0x179e   :  { %v2642_v48 = vadd.f32 %v4858_v44, %v2641_v46  ;;  %5459 = vmatmul.mubr.msk.f32.gmra.mxu0 %vm758_vm7, %v5752_v50 }
0x179f   :  { %v5441_v51 = vpop.f32.mrf.mxu0  ;;  %5461 = vmatprep.mubr.msk.f32.mxu0 %vm758_vm7, %v5753_v52 }
0x17a0   :  { %5464 = vmatprep.subr.msk.mxu1 %vm426_vm6, %v2642_v48 }
0x17a1   :  { %5465 = vmatpush3.xpose.msk.msra.mxu1 %vm426_vm6, %v2642_v48 }
0x17a2   :  { %5462 = vmatmul.mubr.msk.f32.gmra.mxu0 %vm758_vm7, %v5754_v53  ;;  %5486 = vmatprep.subr.mxu1 %v5797_v1 }
0x185a   :  { %v5457_v54 = vpop.f32.mrf.mxu0 }
0x185b   :  { %v2820_v25 = vmul.f32 %v6541_v59, %v5457_v54 }
0x185c   :  { %v2790_v56 = vpop.f32.mrf.mxu0 }
0x185d   :  { %v2819_v58 = vmul.f32 %v6535_v57, %v2790_v56 }
0x185e   :  { %v5460_v13 = vpop.f32.mrf.mxu0 }
0x185f   :  { %5466 = vmatprep.mubr.msk.f32.mxu1 %vm426_vm6, %v2819_v58  ;;  %v2822_v62 = vmul.f32 %v6555_v61, %v5460_v13 }
0x1860   :  { %v2800_v14 = vpop.f32.mrf.mxu0  ;;  %5467 = vmatmul.mubr.msk.f32.vlgmr.msra.gmra.mxu1 %vm426_vm6, %v2820_v25 }
0x1861   :  { %v2821_v60 = vmul.f32 %v6549_v26, %v2800_v14 }
0x1862   :  { %v5463_v63 = vpop.f32.mrf.mxu0 }
0x1863   :  { %5469 = vmatprep.mubr.msk.f32.mxu1 %vm426_vm6, %v2821_v60  ;;  %v2824_v5 = vmul.f32 %v6569_v4, %v5463_v63 }
0x1864   :  { %v2810_v2 = vpop.f32.mrf.mxu0  ;;  %5470 = vmatmul.mubr.msk.f32.gmra.mxu1 %vm426_vm6, %v2822_v62 }
0x1865   :  { %v2823_v3 = vmul.f32 %v6563_v41, %v2810_v2 }
0x1867   :  { %5472 = vmatprep.mubr.msk.f32.mxu1 %vm426_vm6, %v2823_v3 }
0x1868   :  { %5473 = vmatmul.mubr.msk.f32.gmra.mxu1 %vm426_vm6, %v2824_v5 }
0x1869   :  { %5498 = vmatprep.mubr.msk.f32.mxu1 %vm5798_vm2, %v5797_v1 }
0x1920   :  { %v5468_v6 = vpop.f32.mrf.mxu1 }
0x1921   :  { %v2918_v8 = vadd.f32 %v5761_v7, %v5468_v6 }
0x1922   :  { %v2912_v9 = vpop.f32.mrf.mxu1 }
0x1923   :  { %v2913_v10 = vadd.f32 %v5762_v32, %v2912_v9  ;;  %v2944_v11 = vsel %vm758_vm7, %v2918_v8, -inf }
0x1924   :  { %2945 = vmax.xlane.f32.xlu1 %v2944_v11  ;;  %v5471_v15 = vpop.f32.mrf.mxu1 }
0x1925   :  { %v2928_v17 = vadd.f32 %v5763_v16, %v5471_v15  ;;  %v2941_v18 = vsel %vm758_vm7, %v2913_v10, -inf }
0x1926   :  { %2942 = vmax.xlane.f32.xlu0 %v2941_v18  ;;  %v2922_v27 = vpop.f32.mrf.mxu1 }
0x1927   :  { %v2923_v30 = vadd.f32 %v5764_v29, %v2922_v27  ;;  %v2950_v23 = vsel %vm758_vm7, %v2928_v17, -inf }
0x1928   :  { %2951 = vmax.xlane.f32.xlu1 %v2950_v23  ;;  %v5474_v31 = vpop.f32.mrf.mxu1 }
0x1929   :  { %v2938_v34 = vadd.f32 %v5765_v33, %v5474_v31  ;;  %v2947_v35 = vsel %vm758_vm7, %v2923_v30, -inf }
0x192a   :  { %2948 = vmax.xlane.f32.xlu0 %v2947_v35  ;;  %v2932_v36 = vpop.f32.mrf.mxu1 }
0x192b   :  { %v2933_v38 = vadd.f32 %v5766_v37, %v2932_v36  ;;  %v2956_v40 = vsel %vm758_vm7, %v2938_v34, -inf }
0x192c   :  { %2957 = vmax.xlane.f32.xlu1 %v2956_v40 }
0x192d   :  { %v2953_v55 = vsel %vm758_vm7, %v2933_v38, -inf }
0x192e   :  { %2954 = vmax.xlane.f32.xlu0 %v2953_v55 }
0x19ad   :  { %v2946_v42 = vpop.xlane.xlu1 %2945 }
0x19ae   :  { %v2960_v43 = vsub.f32 %v2918_v8, %v2946_v42 }
0x19af   :  { %v2943_v44 = vpop.xlane.xlu0 %2942 }
0x19b0   :  { %v2967_v45 = vmul.f32 1.442695, %v2960_v43  ;;  %v2959_v46 = vsub.f32 %v2913_v10, %v2943_v44 }
0x19b1   :  { %v2952_v48 = vpop.xlane.xlu1 %2951 }
0x19b2   :  { %5705 = vpow2.f32 %v2967_v45  ;;  %v2965_v50 = vmul.f32 1.442695, %v2959_v46  ;;  %v2962_v51 = vsub.f32 %v2928_v17, %v2952_v48 }
0x19b3   :  { %v2949_v52 = vpop.xlane.xlu0 %2948 }
0x19b4   :  { %5707 = vpow2.f32 %v2965_v50  ;;  %v2971_v53 = vmul.f32 1.442695, %v2962_v51  ;;  %v2961_v54 = vsub.f32 %v2923_v30, %v2949_v52 }
0x19b5   :  { %v2958_v56 = vpop.xlane.xlu1 %2957 }
0x19b6   :  { %5709 = vpow2.f32 %v2971_v53  ;;  %v2969_v58 = vmul.f32 1.442695, %v2961_v54  ;;  %v2964_v25 = vsub.f32 %v2938_v34, %v2958_v56 }
0x19b7   :  { %v2955_v13 = vpop.xlane.xlu0 %2954 }
0x19b8   :  { %5711 = vpow2.f32 %v2969_v58  ;;  %v2975_v14 = vmul.f32 1.442695, %v2964_v25  ;;  %v2963_v60 = vsub.f32 %v2933_v38, %v2955_v13 }
0x19ba   :  { %5713 = vpow2.f32 %v2975_v14  ;;  %v2973_v62 = vmul.f32 1.442695, %v2963_v60  ;;  %v4884_v14 = vld [vmem:[%s6980_s5 + $0x7] ss:$0 sm:$0xff] }
0x19bc   :  { %5715 = vpow2.f32 %v2973_v62 }
0x19bf   :  { %v5706_v63 = vpop.eup %5705 }
0x19c0   :  { %v2980_v2 = vsel %vm758_vm7, %v5706_v63, 0.0 }
0x19c1   :  { %v5708_v3 = vpop.eup %5707  ;;  %2981 = vadd.xlane.f32.xlu1 %v2980_v2 }
0x19c2   :  { %v2977_v5 = vsel %vm758_vm7, %v5708_v3, 0.0 }
0x19c3   :  { %v5710_v6 = vpop.eup %5709  ;;  %2978 = vadd.xlane.f32.xlu0 %v2977_v5 }
0x19c4   :  { %v2986_v7 = vsel %vm758_vm7, %v5710_v6, 0.0 }
0x19c5   :  { %v5712_v8 = vpop.eup %5711  ;;  %2987 = vadd.xlane.f32.xlu1 %v2986_v7 }
0x19c6   :  { %v2983_v9 = vsel %vm758_vm7, %v5712_v8, 0.0 }
0x19c7   :  { %v5714_v32 = vpop.eup %5713  ;;  %2984 = vadd.xlane.f32.xlu0 %v2983_v9 }
0x19c8   :  { %v2992_v10 = vsel %vm758_vm7, %v5714_v32, 0.0 }
0x19c9   :  { %v5716_v11 = vpop.eup %5715  ;;  %2993 = vadd.xlane.f32.xlu1 %v2992_v10  ;;  %v4890_v10 = vld [vmem:[%s6979_s4 + $0x130] sm:$0xff] }
0x19ca   :  { %v2989_v15 = vsel %vm758_vm7, %v5716_v11, 0.0 }
0x19cb   :  { %2990 = vadd.xlane.f32.xlu0 %v2989_v15 }
0x1a4a   :  { %v2982_v16 = vpop.xlane.xlu1 %2981 }
0x1a4b   :  { %5717 = vrcp.f32 %v2982_v16 }
0x1a4c   :  { %v2979_v17 = vpop.xlane.xlu0 %2978 }
0x1a4d   :  { %5719 = vrcp.f32 %v2979_v17 }
0x1a4e   :  { %v2988_v18 = vpop.xlane.xlu1 %2987 }
0x1a4f   :  { %5721 = vrcp.f32 %v2988_v18  ;;  %v6676_v18 = vld [vmem:[%s6985_s10 + $0x8] sm:$0x3f] }
0x1a50   :  { %v2985_v27 = vpop.xlane.xlu0 %2984 }
0x1a51   :  { %5723 = vrcp.f32 %v2985_v27  ;;  %v3295_v27 = vrot.slane %v6676_v18, %v1355_v22  ;;  %v5768_v22 = vld [vmem:[%s6988_s13 + $0xd0] sm:$0x3] }
0x1a52   :  { %v2994_v29 = vpop.xlane.xlu1 %2993 }
0x1a53   :  { %5725 = vrcp.f32 %v2994_v29 }
0x1a54   :  { %v2991_v30 = vpop.xlane.xlu0 %2990 }
0x1a55   :  { %5727 = vrcp.f32 %v2991_v30 }
0x1a58   :  { %v5718_v23 = vpop.eup %5717 }
0x1a59   :  { %v3002_v34 = vmul.f32 %v5718_v23, %v5706_v63  ;;  %v3300_v23 = vrot.slane %v6676_v18, %v1360_v24  ;;  %v4895_v24 = vld [vmem:[%s6979_s4 + $0x170] sm:$0xff] }
0x1a5a   :  { %v5720_v31 = vpop.eup %5719 }
0x1a5b   :  { %v3001_v33 = vmul.f32 %v5720_v31, %v5708_v3 }
0x1a5c   :  { %v5722_v35 = vpop.eup %5721 }
0x1a5d   :  { %5477 = vmatprep.mubr.msk.f32.mxu0 %vm758_vm7, %v3001_v33  ;;  %v3004_v38 = vmul.f32 %v5722_v35, %v5710_v6  ;;  %v4894_v35 = vld [vmem:[%s6979_s4 + $0x168] sm:$0xff] }
0x1a5e   :  { %v5724_v36 = vpop.eup %5723  ;;  %5478 = vmatmul.mubr.msk.f32.vlgmr.msra.gmra.mxu0 %vm758_vm7, %v3002_v34  ;;  %v4896_v34 = vld [vmem:[%s6979_s4 + $0x178] sm:$0xff] }
0x1a5f   :  { %v3003_v37 = vmul.f32 %v5724_v36, %v5712_v8  ;;  %v4893_v36 = vld [vmem:[%s6979_s4 + $0x160] sm:$0xff] }
0x1a60   :  { %v5726_v40 = vpop.eup %5725 }
0x1a61   :  { %5480 = vmatprep.mubr.msk.f32.mxu0 %vm758_vm7, %v3003_v37  ;;  %v3006_v43 = vmul.f32 %v5726_v40, %v5714_v32  ;;  %v4891_v32 = vld [vmem:[%s6979_s4 + $0x138] sm:$0xff]  ;;  %v4900_v40 = vld [vmem:[%s6979_s4 + $0x1b0] sm:$0xff] }
0x1a62   :  { %v5728_v55 = vpop.eup %5727  ;;  %5481 = vmatmul.mubr.msk.f32.gmra.mxu0 %vm758_vm7, %v3004_v38  ;;  %v4901_v37 = vld [vmem:[%s6979_s4 + $0x1b8] sm:$0xff] }
0x1a63   :  { %v3005_v42 = vmul.f32 %v5728_v55, %v5716_v11  ;;  %v4888_v11 = vld [vmem:[%s6979_s4 + $0x120] sm:$0xff] }
0x1a65   :  { %5483 = vmatprep.mubr.msk.f32.mxu0 %vm758_vm7, %v3005_v42  ;;  %v4898_v42 = vld [vmem:[%s6979_s4 + $0x1a0] sm:$0xff] }
0x1a66   :  { %5484 = vmatmul.mubr.msk.f32.gmra.mxu0 %vm758_vm7, %v3006_v43 }
0x1a67   :  { %5514 = vmatprep.mubr.msk.f32.mxu0 %vm5798_vm2, %v5797_v1 }
0x1b1e   :  { %v5479_v44 = vpop.f32.mrf.mxu0 }
0x1b1f   :  { %v3124_v58 = vmul.f32 %v6541_v59, %v5479_v44  ;;  %v4852_v59 = vld [vmem:[%s6979_s4 + $0xe8] sm:$0xff] }
0x1b20   :  { %v3094_v45 = vpop.f32.mrf.mxu0 }
0x1b22   :  { %v5482_v46 = vpop.f32.mrf.mxu0 }
0x1b23   :  { %v3126_v54 = vmul.f32 %v6555_v61, %v5482_v46  ;;  %v4854_v61 = vld [vmem:[%s6979_s4 + $0xf8] sm:$0xff]  ;;  %v4910_v46 = vld [vmem:[%s6980_s5 + $0xb] ss:$0 sm:$0xff] }
0x1b24   :  { %v3104_v48 = vpop.f32.mrf.mxu0 }
0x1b25   :  { %v3125_v56 = vmul.f32 %v6549_v26, %v3104_v48  ;;  %v5767_v26 = vld [vmem:[%s6988_s13 + $0x90] sm:$0x3f] }
0x1b26   :  { %v5485_v50 = vpop.f32.mrf.mxu0 }
0x1b27   :  { %v3128_v51 = vmul.f32 %v6569_v4, %v5485_v50  ;;  %v4851_v4 = vld [vmem:[%s6979_s4 + $0xe0] sm:$0xff] }
0x1b28   :  { %v3114_v52 = vpop.f32.mrf.mxu0 }
0x1b29   :  { %v3127_v53 = vmul.f32 %v6563_v41, %v3114_v52  ;;  %5487 = vmatpush3.msra.mxu1 %v3128_v51  ;;  %v3123_v41 = vmul.f32 %v6535_v57, %v3094_v45  ;;  %v4853_v57 = vld [vmem:[%s6979_s4 + $0xf0] sm:$0xff]  ;;  %v4908_v45 = vld [vmem:[%s6980_s5 + $0x9] ss:$0 sm:$0xff] }
0x1b2a   :  { %5488 = vmatprep.subr.mxu1 %v5797_v1 }
0x1b2b   :  { %5489 = vmatpush3.msra.mxu1 %v3127_v53  ;;  %v4912_v53 = vld [vmem:[%s6980_s5 + $0xd] ss:$0 sm:$0xff] }
0x1b2c   :  { %5490 = vmatprep.subr.mxu1 %v5797_v1 }
0x1b2d   :  { %5491 = vmatpush3.msra.mxu1 %v3126_v54 }
0x1b2e   :  { %5492 = vmatprep.subr.mxu1 %v5797_v1 }
0x1b2f   :  { %5493 = vmatpush3.msra.mxu1 %v3125_v56 }
0x1b30   :  { %5494 = vmatprep.subr.mxu1 %v5797_v1 }
0x1b31   :  { %5495 = vmatpush3.msra.mxu1 %v3124_v58 }
0x1b32   :  { %5496 = vmatprep.subr.mxu1 %v5797_v1 }
0x1b33   :  { %5497 = vmatpush3.msra.mxu1 %v3123_v41 }
0x1b34   :  { %5499 = vmatmul.mubr.msk.f32.vlgmr.msra.gmra.mxu1 %vm1186_vm9, %v5767_v26  ;;  %5501 = vmatprep.subr.mxu1 %v5797_v1  ;;  %v5770_v26 = vld [vmem:[%s6988_s13 + $0xb8] sm:$0xff] }
0x1b35   :  { %5502 = vmatpush3.msra.mxu1 %v4854_v61  ;;  %5509 = vmatprep.mubr.msk.f32.mxu1 %vm5798_vm2, %v5797_v1 }
0x1b36   :  { %5503 = vmatprep.subr.mxu1 %v5797_v1 }
0x1b37   :  { %5504 = vmatpush3.msra.mxu1 %v4853_v57 }
0x1b38   :  { %5505 = vmatprep.subr.mxu1 %v5797_v1 }
0x1b39   :  { %5506 = vmatpush3.msra.mxu1 %v4852_v59  ;;  %v5771_v59 = vld [vmem:[%s6988_s13 + $0xc0] sm:$0xff] }
0x1b3a   :  { %5507 = vmatprep.subr.mxu1 %v5797_v1 }
0x1b3b   :  { %5508 = vmatpush3.msra.mxu1 %v4851_v4 }
0x1b3c   :  { %5517 = vmatprep.subr.mxu1 %v5797_v1 }
0x1bf4   :  { %v3195_v25 = vpop.f32.mrf.mxu1 }
0x1bf5   :  { %5510 = vmatmul.mubr.msk.f32.vlgmr.msra.gmra.mxu1 %vm426_vm6, %v3195_v25 }
0x1bf6   :  { %v5500_v13 = vpop.f32.mrf.mxu1  ;;  %5525 = vmatprep.mubr.msk.f32.mxu1 %vm5798_vm2, %v5797_v1  ;;  %5518 = vmatpush3.msra.mxu1 %v4891_v32 }
0x1bf7   :  { %5519 = vmatprep.subr.mxu1 %v5797_v1  ;;  %v5772_v13 = vld [vmem:[%s6988_s13 + $0xb0] sm:$0xff] }
0x1bf8   :  { %5520 = vmatpush3.msra.mxu1 %v4890_v10 }
0x1bf9   :  { %5521 = vmatprep.subr.mxu1 %v5797_v1 }
0x1cb5   :  { %v3274_v60 = vpop.f32.mrf.mxu1 }
0x1cb6   :  { %v3275_v62 = vadd.f32 %v4884_v14, %v3274_v60 }
0x1cb7   :  { %v5511_v63 = vpop.f32.mrf.mxu1 }
0x1cb8   :  { %v3278_v2 = vadd.f32 %v3275_v62, %v6466_v28  ;;  %v4889_v28 = vld [vmem:[%s6979_s4 + $0x128] sm:$0xff] }
0x1cb9   :  { %5522 = vmatpush3.msra.mxu1 %v4889_v28  ;;  %v5773_v62 = vld [vmem:[%s6988_s13 + $0xa8] sm:$0xff] }
0x1cba   :  { %v3279_v3 = vsel %vm251_vm4, %v3278_v2, 0.0  ;;  %5523 = vmatprep.subr.mxu1 %v5797_v1 }
0x1cbb   :  { %3280 = vadd.xlane.f32.xlu0 %v3279_v3  ;;  %5524 = vmatpush3.msra.mxu1 %v4888_v11 }
0x1cbc   :  { %5539 = vmatprep.subr.mxu1 %v5797_v1 }
0x1d44   :  { %v3281_v5 = vpop.xlane.xlu0 %3280 }
0x1d45   :  { %v3282_v6 = vmul.f32 0.03125, %v3281_v5 }
0x1d47   :  { %v3283_v7 = vsub.f32 %v3278_v2, %v3282_v6 }
0x1d49   :  { %v3284_v8 = vmul.f32 %v3283_v7, %v3283_v7 }
0x1d4b   :  { %v3285_v9 = vsel %vm251_vm4, %v3284_v8, 0.0 }
0x1d4c   :  { %3286 = vadd.xlane.f32.xlu1 %v3285_v9 }
0x1dd5   :  { %v3287_v15 = vpop.xlane.xlu1 %3286 }
0x1dd6   :  { %v3288_v16 = vmul.f32 0.03125, %v3287_v15 }
0x1dd8   :  { %v3289_v17 = vadd.f32 1e-05, %v3288_v16 }
0x1dda   :  { %5729 = vrsqrt.f32 %v3289_v17 }
0x1de7   :  { %v5730_v29 = vpop.eup %5729 }
0x1de8   :  { %v3291_v30 = vmul.f32 %v5730_v29, %v3283_v7 }
0x1dea   :  { %v3296_v31 = vmul.f32 %v3295_v27, %v3291_v30 }
0x1dec   :  { %v6684_v33 = vadd.f32 %v3300_v23, %v3296_v31  ;;  %v4906_v31 = vld [vmem:[%s6979_s4 + $0x1f8] sm:$0xff] }
0x1dee   :  { %5513 = vmatpush3.msk.msra.mxu0 %vm777_vm8, %v6684_v33 }
0x1def   :  { %5515 = vmatmul.mubr.msk.f32.vlgmr.msra.gmra.mxu0 %vm758_vm7, %v5768_v22  ;;  %5528 = vmatprep.subr.mxu0 %v5797_v1  ;;  %v4904_v22 = vld [vmem:[%s6979_s4 + $0x1e8] sm:$0xff] }
0x1df0   :  { %5529 = vmatpush3.msra.mxu0 %v4896_v34  ;;  %5536 = vmatprep.mubr.msk.f32.mxu0 %vm5798_vm2, %v5797_v1  ;;  %v4905_v34 = vld [vmem:[%s6979_s4 + $0x1f0] sm:$0xff] }
0x1df1   :  { %5530 = vmatprep.subr.mxu0 %v5797_v1 }
0x1df2   :  { %5531 = vmatpush3.msra.mxu0 %v4895_v24 }
0x1df3   :  { %5532 = vmatprep.subr.mxu0 %v5797_v1 }
0x1df4   :  { %5533 = vmatpush3.msra.mxu0 %v4894_v35 }
0x1df5   :  { %5534 = vmatprep.subr.mxu0 %v5797_v1 }
0x1df6   :  { %5535 = vmatpush3.msra.mxu0 %v4893_v36 }
0x1df7   :  { %5537 = vmatmul.mubr.msk.f32.vlgmr.msra.gmra.mxu0 %vm426_vm6, %v6227_v39 }
0x1df8   :  { %5552 = vmatprep.mubr.msk.f32.mxu0 %vm1701_vm10, %v6258_v47  ;;  %v4899_v47 = vld [vmem:[%s6979_s4 + $0x1a8] sm:$0xff] }
0x1eaf   :  { %v6717_v38 = vpop.f32.mrf.mxu0 }
0x1eb0   :  { %5526 = vmatmul.mubr.msk.f32.vlgmr.msra.gmra.mxu1 %vm426_vm6, %v6717_v38 }
0x1eb1   :  { %5540 = vmatpush3.msra.mxu1 %v4901_v37  ;;  %v5516_v55 = vpop.f32.mrf.mxu0  ;;  %5547 = vmatprep.mubr.msk.f32.mxu1 %vm5798_vm2, %v5797_v1 }
0x1eb2   :  { %5541 = vmatprep.subr.mxu1 %v5797_v1  ;;  %v4903_v55 = vld [vmem:[%s6979_s4 + $0x1e0] sm:$0xff] }
0x1eb3   :  { %5542 = vmatpush3.msra.mxu1 %v4900_v40  ;;  %v5774_v40 = vld [vmem:[%s6988_s13 + $0xc8] sm:$0x3] }
0x1eb4   :  { %5543 = vmatprep.subr.mxu1 %v5797_v1 }
0x1eb5   :  { %5544 = vmatpush3.msra.mxu1 %v4899_v47 }
0x1eb6   :  { %5545 = vmatprep.subr.mxu1 %v5797_v1 }
0x1eb7   :  { %5546 = vmatpush3.msra.mxu1 %v4898_v42  ;;  %v3554_v43 = vpop.f32.mrf.mxu0 }
0x1eb8   :  { %5548 = vmatmul.mubr.msk.f32.vlgmr.msra.gmra.mxu1 %vm426_vm6, %v6227_v39  ;;  %v3555_v52 = vadd.f32 %v4910_v46, %v3554_v43  ;;  %v5769_v39 = vld [vmem:[%s6988_s13 + $0xa0] sm:$0xff]  ;;  %v4924_v43 = vld [vmem:[%s6980_s5 + $0xf] ss:$0 sm:$0xff] }
0x1eb9   :  { %v5538_v44 = vpop.f32.mrf.mxu0 }
0x1f70   :  { %v3478_v48 = vpop.f32.mrf.mxu1 }
0x1f71   :  { %v3479_v50 = vadd.f32 %v4908_v45, %v3478_v48 }
0x1f72   :  { %v5527_v51 = vpop.f32.mrf.mxu1 }
0x1f73   :  { %5550 = vmatprep.subr.msk.mxu0 %vm1708_vm11, %v3479_v50 }
0x1f74   :  { %5551 = vmatpush3.msk.msra.mxu0 %vm1708_vm11, %v3479_v50 }
0x1f75   :  { %5553 = vmatmul.mubr.msk.f32.vlgmr.msra.gmra.mxu0 %vm1701_vm10, %v5769_v39  ;;  %5555 = vmatprep.subr.msk.mxu0 %vm426_vm6, %v3555_v52 }
0x1f76   :  { %5556 = vmatpush3.xpose.msk.msra.mxu0 %vm426_vm6, %v3555_v52 }
0x1f77   :  { %5565 = vmatprep.subr.mxu0 %v5797_v1 }
0x1f78   :  { %v3630_v54 = vpop.f32.mrf.mxu1 }
0x1f79   :  { %v3631_v56 = vadd.f32 %v4912_v53, %v3630_v54 }
0x1f7a   :  { %v5549_v58 = vpop.f32.mrf.mxu1 }
0x1f7b   :  { %5560 = vmatprep.subr.msk.mxu1 %vm777_vm8, %v3631_v56 }
0x1f7c   :  { %5561 = vmatpush3.msk.msra.mxu1 %vm777_vm8, %v3631_v56 }
0x1f7d   :  { %5572 = vmatprep.subr.mxu1 %v5797_v1 }
0x2035   :  { %v5554_v41 = vpop.f32.mrf.mxu0 }
0x2036   :  { %v3713_v4 = vmul.f32 %v5771_v59, %v5554_v41 }
0x2037   :  { %v3703_v61 = vpop.f32.mrf.mxu0 }
0x2038   :  { %v3712_v57 = vmul.f32 %v5770_v26, %v3703_v61  ;;  %v4072_v61 = vrot.slane %v6676_v18, %v2150_v20  ;;  %v4930_v20 = vld [vmem:[%s6981_s6 + $0x30] sm:$0xff] }
0x203a   :  { %5557 = vmatprep.mubr.msk.f32.mxu0 %vm426_vm6, %v3712_v57 }
0x203b   :  { %5558 = vmatmul.mubr.msk.f32.vlgmr.msra.gmra.mxu0 %vm426_vm6, %v3713_v4 }
0x203c   :  { %5569 = vmatprep.mubr.msk.f32.mxu0 %vm5798_vm2, %v5797_v1 }
0x20fb   :  { %v5559_v25 = vpop.f32.mrf.mxu0 }
0x20fc   :  { %v3795_v14 = vadd.f32 %v5772_v13, %v5559_v25 }
0x20fd   :  { %v3789_v60 = vpop.f32.mrf.mxu0 }
0x20fe   :  { %v3790_v63 = vadd.f32 %v5773_v62, %v3789_v60  ;;  %v3801_v2 = vsel %vm758_vm7, %v3795_v14, -inf }
0x20ff   :  { %3802 = vmax.xlane.f32.xlu1 %v3801_v2  ;;  %v4941_v2 = vld [vmem:[%s6983_s8 + $0x70] sm:$0xff] }
0x2100   :  { %v3798_v3 = vsel %vm758_vm7, %v3790_v63, -inf }
0x2101   :  { %3799 = vmax.xlane.f32.xlu0 %v3798_v3  ;;  %v4939_v3 = vld [vmem:[%s6983_s8 + $0x60] sm:$0xff] }
0x2188   :  { %v3803_v5 = vpop.xlane.xlu1 %3802 }
0x2189   :  { %v3805_v6 = vsub.f32 %v3795_v14, %v3803_v5  ;;  %v4931_v14 = vld [vmem:[%s6981_s6 + $0x38] sm:$0xff] }
0x218a   :  { %v3800_v7 = vpop.xlane.xlu0 %3799  ;;  %v4938_v5 = vld [vmem:[%s6983_s8 + $0x58] sm:$0xff] }
0x218b   :  { %v3808_v8 = vmul.f32 1.442695, %v3805_v6  ;;  %v3804_v9 = vsub.f32 %v3790_v63, %v3800_v7  ;;  %v4942_v63 = vld [vmem:[%s6983_s8 + $0x78] sm:$0xff]  ;;  %v4937_v6 = vld [vmem:[%s6983_s8 + $0x50] sm:$0xff]  ;;  %v4936_v7 = vld [vmem:[%s6983_s8 + $0x48] sm:$0xff] }
0x218d   :  { %5731 = vpow2.f32 %v3808_v8  ;;  %v3806_v32 = vmul.f32 1.442695, %v3804_v9  ;;  %v4935_v8 = vld [vmem:[%s6983_s8 + $0x40] sm:$0xff] }
0x218e   :  { %v4933_v9 = vld [vmem:[%s6982_s7 + $0x1] ss:$0 sm:$0xff] }
0x218f   :  { %5733 = vpow2.f32 %v3806_v32 }
0x219a   :  { %v5732_v10 = vpop.eup %5731 }
0x219b   :  { %v3813_v28 = vsel %vm758_vm7, %v5732_v10, 0.0 }
0x219c   :  { %v5734_v11 = vpop.eup %5733  ;;  %3814 = vadd.xlane.f32.xlu1 %v3813_v28 }
0x219d   :  { %v3810_v15 = vsel %vm758_vm7, %v5734_v11, 0.0 }
0x219e   :  { %3811 = vadd.xlane.f32.xlu0 %v3810_v15 }
0x2225   :  { %v3815_v16 = vpop.xlane.xlu1 %3814 }
0x2226   :  { %5735 = vrcp.f32 %v3815_v16 }
0x2227   :  { %v3812_v17 = vpop.xlane.xlu0 %3811 }
0x2228   :  { %5737 = vrcp.f32 %v3812_v17 }
0x2233   :  { %v5736_v27 = vpop.eup %5735 }
0x2234   :  { %v3819_v23 = vmul.f32 %v5736_v27, %v5732_v10 }
0x2235   :  { %v5738_v29 = vpop.eup %5737 }
0x2236   :  { %v3818_v30 = vmul.f32 %v5738_v29, %v5734_v11 }
0x2238   :  { %5562 = vmatprep.mubr.msk.f32.mxu1 %vm758_vm7, %v3818_v30 }
0x2239   :  { %5563 = vmatmul.mubr.msk.f32.vlgmr.msra.gmra.mxu1 %vm758_vm7, %v3819_v23 }
0x223a   :  { %5580 = vmatprep.mubr.msk.f32.mxu1 %vm5798_vm2, %v5797_v1  ;;  %5573 = vmatpush3.msra.mxu1 %v4906_v31 }
0x223b   :  { %5574 = vmatprep.subr.mxu1 %v5797_v1 }
0x223c   :  { %5575 = vmatpush3.msra.mxu1 %v4905_v34 }
0x223d   :  { %5576 = vmatprep.subr.mxu1 %v5797_v1 }
0x223e   :  { %5577 = vmatpush3.msra.mxu1 %v4904_v22 }
0x223f   :  { %5578 = vmatprep.subr.mxu1 %v5797_v1 }
0x2240   :  { %5579 = vmatpush3.msra.mxu1 %v4903_v55 }
0x2241   :  { %5599 = vmatprep.subr.mxu1 %v5797_v1 }
0x22f9   :  { %v5564_v24 = vpop.f32.mrf.mxu1 }
0x22fa   :  { %v3905_v35 = vmul.f32 %v5771_v59, %v5564_v24  ;;  %v4077_v59 = vrot.slane %v6676_v18, %v2155_v19  ;;  %v4929_v19 = vld [vmem:[%s6981_s6 + $0x28] sm:$0xff] }
0x22fb   :  { %v3895_v36 = vpop.f32.mrf.mxu1 }
0x22fc   :  { %v3904_v37 = vmul.f32 %v5770_v26, %v3895_v36  ;;  %5566 = vmatpush3.msra.mxu0 %v3905_v35 }
0x22fd   :  { %5567 = vmatprep.subr.mxu0 %v5797_v1 }
0x22fe   :  { %5568 = vmatpush3.msra.mxu0 %v3904_v37 }
0x22ff   :  { %5570 = vmatmul.mubr.msk.f32.vlgmr.msra.gmra.mxu0 %vm268_vm5, %v5774_v40  ;;  %5583 = vmatprep.subr.mxu0 %v5797_v1 }
0x2300   :  { %5585 = vmatprep.mubr.msk.f32.mxu0 %vm5798_vm2, %v5797_v1 }
0x23bf   :  { %v3972_v47 = vpop.f32.mrf.mxu0 }
0x23c0   :  { %5581 = vmatmul.mubr.msk.f32.vlgmr.msra.gmra.mxu1 %vm426_vm6, %v3972_v47 }
0x23c1   :  { %v5571_v42 = vpop.f32.mrf.mxu0  ;;  %5615 = vmatprep.mubr.msk.f32.mxu1 %vm5798_vm2, %v5797_v1  ;;  %5600 = vmatpush3.msra.mxu1 %v4942_v63 }
0x23c2   :  { %5601 = vmatprep.subr.mxu1 %v5797_v1 }
0x23c3   :  { %5602 = vmatpush3.msra.mxu1 %v4941_v2 }
0x23c4   :  { %5603 = vmatprep.subr.mxu1 %v5797_v1 }
0x2480   :  { %v4051_v44 = vpop.f32.mrf.mxu1 }
0x2481   :  { %v4052_v45 = vadd.f32 %v4924_v43, %v4051_v44 }
0x2482   :  { %v5582_v46 = vpop.f32.mrf.mxu1 }
0x2483   :  { %v4055_v48 = vadd.f32 %v4052_v45, %v6717_v38 }
0x2485   :  { %v4056_v50 = vsel %vm2134_vm12, %v4055_v48, 0.0 }
0x2486   :  { %4057 = vadd.xlane.f32.xlu0 %v4056_v50 }
0x250f   :  { %v4058_v51 = vpop.xlane.xlu0 %4057 }
0x2510   :  { %v4059_v52 = vmul.f32 0.03125, %v4058_v51  ;;  %v4944_v51 = vld [vmem:[%s6984_s9 + $0x1] ss:$0 sm:$0xff] }
0x2512   :  { %v4060_v39 = vsub.f32 %v4055_v48, %v4059_v52 }
0x2514   :  { %v4061_v53 = vmul.f32 %v4060_v39, %v4060_v39 }
0x2516   :  { %v4062_v54 = vsel %vm2134_vm12, %v4061_v53, 0.0 }
0x2517   :  { %4063 = vadd.xlane.f32.xlu1 %v4062_v54 }
0x25a0   :  { %v4064_v56 = vpop.xlane.xlu1 %4063 }
0x25a1   :  { %v4065_v58 = vmul.f32 0.03125, %v4064_v56 }
0x25a3   :  { %v4066_v41 = vadd.f32 1e-05, %v4065_v58 }
0x25a5   :  { %5739 = vrsqrt.f32 %v4066_v41 }
0x25b2   :  { %v5740_v26 = vpop.eup %5739 }
0x25b3   :  { %v4068_v57 = vmul.f32 %v5740_v26, %v4060_v39 }
0x25b5   :  { %v4073_v4 = vmul.f32 %v4072_v61, %v4068_v57 }
0x25b7   :  { %v4078_v25 = vadd.f32 %v4077_v59, %v4073_v4 }
0x25b9   :  { %v4079_v13 = vsub.f32 %v4078_v25, %v6717_v38 }
0x25bb   :  { %5584 = vmatpush3.msk.msra.mxu0 %vm1708_vm11, %v4079_v13  ;;  %v4374_v13 = vrot.slane %v6676_v18, %v2452_v49 }
0x25bc   :  { %5586 = vmatmul.mubr.msk.f32.vlgmr.msra.gmra.mxu0 %vm1701_vm10, %v6352_v0  ;;  %5588 = vmatprep.subr.mxu0 %v5797_v1  ;;  %v4928_v0 = vld [vmem:[%s6981_s6 + $0x20] sm:$0xff] }
0x25bd   :  { %5589 = vmatpush3.msra.mxu0 %v4931_v14  ;;  %5596 = vmatprep.mubr.msk.f32.mxu0 %vm5798_vm2, %v5797_v1 }
0x25be   :  { %5590 = vmatprep.subr.mxu0 %v5797_v1 }
0x25bf   :  { %5591 = vmatpush3.msra.mxu0 %v4930_v20 }
0x25c0   :  { %5592 = vmatprep.subr.mxu0 %v5797_v1 }
0x25c1   :  { %5593 = vmatpush3.msra.mxu0 %v4929_v19  ;;  %v4379_v19 = vrot.slane %v6676_v18, %v2457_v12  ;;  %v4947_v18 = vld [vmem:[%s6987_s12 + $0x9] ss:$0 sm:$0xff] }
0x25c2   :  { %5594 = vmatprep.subr.mxu0 %v5797_v1 }
0x25c3   :  { %5595 = vmatpush3.msra.mxu0 %v4928_v0 }
0x25c4   :  { %5618 = vmatprep.subr.mxu0 %v5797_v1 }
0x267c   :  { %v4149_v38 = vpop.f32.mrf.mxu0 }
0x267d   :  { %v6845_v60 = vadd.f32 %v4149_v38, %v6684_v33  ;;  %v4940_v33 = vld [vmem:[%s6983_s8 + $0x68] sm:$0xff] }
0x267e   :  { %v5587_v62 = vpop.f32.mrf.mxu0  ;;  %5604 = vmatpush3.msra.mxu1 %v4940_v33 }
0x267f   :  { %5597 = vmatmul.mubr.msk.f32.vlgmr.msra.gmra.mxu0 %vm426_vm6, %v6845_v60  ;;  %5605 = vmatprep.subr.mxu1 %v5797_v1 }
0x2680   :  { %5620 = vmatprep.mubr.msk.f32.mxu0 %vm5798_vm2, %v5797_v1  ;;  %5606 = vmatpush3.msra.mxu1 %v4939_v3 }
0x2681   :  { %5607 = vmatprep.subr.mxu1 %v5797_v1 }
0x2682   :  { %5608 = vmatpush3.msra.mxu1 %v4938_v5 }
0x2683   :  { %5609 = vmatprep.subr.mxu1 %v5797_v1 }
0x2684   :  { %5610 = vmatpush3.msra.mxu1 %v4937_v6 }
0x2685   :  { %5611 = vmatprep.subr.mxu1 %v5797_v1 }
0x2686   :  { %5612 = vmatpush3.msra.mxu1 %v4936_v7 }
0x2687   :  { %5613 = vmatprep.subr.mxu1 %v5797_v1 }
0x2688   :  { %5614 = vmatpush3.msra.mxu1 %v4935_v8 }
0x2689   :  { %5634 = vmatprep.subr.mxu1 %v5797_v1 }
0x273f   :  { %v4236_v32 = vpop.f32.mrf.mxu0 }
0x2740   :  { %v4237_v10 = vadd.f32 %v4933_v9, %v4236_v32  ;;  %v78_v32 = vld [vmem:[%s6988_s13 + $0xf0] sm:$0x3f] }
0x2741   :  { %v5598_v28 = vpop.f32.mrf.mxu0 }
0x2742   :  { %v4240_v11 = vmul.f32 0.70710677, %v4237_v10  ;;  %v4264_v46 = vmul.f32 0.5, %v4237_v10  ;;  %v4483_v10 = vld [vmem:[%s6986_s11 + $0x18] sm:$0xff]  ;;  %v4482_v28 = vld [vmem:[%s6986_s11 + $0x10] sm:$0xff] }
0x2744   :  { %v4241_v15 = vand.u32 2147483647, %v4240_v11  ;;  %vm4261_vm15 = vcmp.ge.f32.partialorder %v4240_v11, 0.0  ;;  %v4481_v11 = vld [vmem:[%s6986_s11 + $0x8] sm:$0xff] }
0x2746   :  { %v4242_v16 = vmul.f32 0.3275911, %v4241_v15  ;;  %v4255_v27 = vsub.f32 0.0, %v4241_v15 }
0x2748   :  { %v4243_v17 = vadd.f32 1.0, %v4242_v16  ;;  %v4256_v29 = vmul.f32 %v4255_v27, %v4241_v15  ;;  %v4480_v15 = vld [vmem:[%s6986_s11] sm:$0xff]  ;;  %v4955_v16 = vld [vmem:[%s6986_s11 + $0x38] sm:$0xff]  ;;  %v4953_v27 = vld [vmem:[%s6986_s11 + $0x28] sm:$0xff] }
0x274a   :  { %5741 = vrcp.f32 %v4243_v17  ;;  %v4257_v31 = vmul.f32 1.442695, %v4256_v29  ;;  %v4954_v17 = vld [vmem:[%s6986_s11 + $0x30] sm:$0xff]  ;;  %v4952_v29 = vld [vmem:[%s6986_s11 + $0x20] sm:$0xff] }
0x274c   :  { %5743 = vpow2.f32 %v4257_v31 }
0x2757   :  { %v5742_v30 = vpop.eup %5741 }
0x2758   :  { %v4246_v23 = vmul.f32 1.0614054, %v5742_v30 }
0x2759   :  { %v5744_v47 = vpop.eup %5743 }
0x275a   :  { %v4247_v34 = vadd.f32 -1.4531521, %v4246_v23 }
0x275c   :  { %v4248_v22 = vmul.f32 %v5742_v30, %v4247_v34  ;;  %v4959_v34 = vld [vmem:[%s6986_s11 + $0x50] sm:$0xff] }
0x275e   :  { %v4249_v24 = vadd.f32 1.4214138, %v4248_v22 }
0x2760   :  { %v4250_v35 = vmul.f32 %v5742_v30, %v4249_v24  ;;  %v4958_v24 = vld [vmem:[%s6986_s11 + $0x48] sm:$0xff] }
0x2762   :  { %v4251_v36 = vadd.f32 -0.28449672, %v4250_v35  ;;  %v4957_v35 = vld [vmem:[%s6986_s11 + $0x40] sm:$0xff] }
0x2764   :  { %v4252_v37 = vmul.f32 %v5742_v30, %v4251_v36 }
0x2766   :  { %v4253_v40 = vadd.f32 0.2548296, %v4252_v37  ;;  %v4951_v37 = vld [vmem:[%s6987_s12 + $0x7] ss:$0 sm:$0xff] }
0x2768   :  { %v4254_v55 = vmul.f32 %v5742_v30, %v4253_v40  ;;  %v4960_v30 = vld [vmem:[%s6986_s11 + $0x58] sm:$0xff]  ;;  %s5775_s11 = scalar_lea.vmem %s4728_s17, 32 }
0x2769   :  { %p5776_p0 = scmp.ne.s32.totalorder %s4728_s17, %s5775_s11  ;;  %p5781_p2 = scmp.lt.s32.totalorder %s5775_s11, %s5775_s11 }
0x276a   :  { %v4259_v42 = vmul.f32 %v5744_v47, %v4254_v55 }
0x276b   :  { %p5782_p3 = por %p5781_p2, %p5780_p1 }
0x276c   :  { %v4260_v43 = vsub.f32 1.0, %v4259_v42 }
0x276d   :  { %p5783_p4 = pnand %p5782_p3, %p5776_p0 }
0x276e   :  { %v4262_v44 = vsub.f32 0.0, %v4260_v43 }
0x2770   :  { %v4263_v45 = vsel %vm4261_vm15, %v4260_v43, %v4262_v44 }
0x2771   :  { %v4265_v48 = vadd.f32 1.0, %v4263_v45 }
0x2773   :  { %v4266_v50 = vmul.f32 %v4265_v48, %v4264_v46 }
0x2775   :  { %5616 = vmatmul.mubr.msk.f32.vlgmr.msra.gmra.mxu1 %vm2362_vm14, %v4266_v50 }
0x2776   :  { %5642 = vmatprep.mubr.msk.f32.mxu1 %vm5798_vm2, %v5797_v1  ;;  %5635 = vmatpush3.msra.mxu1 %v4955_v16 }
0x2777   :  { %5636 = vmatprep.subr.mxu1 %v5797_v1 }
0x2778   :  { %5637 = vmatpush3.msra.mxu1 %v4954_v17 }
0x2779   :  { %5638 = vmatprep.subr.mxu1 %v5797_v1 }
0x277a   :  { %5639 = vmatpush3.msra.mxu1 %v4953_v27 }
0x277b   :  { %5640 = vmatprep.subr.mxu1 %v5797_v1 }
0x277c   :  { %5641 = vmatpush3.msra.mxu1 %v4952_v29 }
0x2835   :  { %v4353_v52 = vpop.f32.mrf.mxu1 }
0x2836   :  { %v4354_v39 = vadd.f32 %v4944_v51, %v4353_v52 }
0x2837   :  { %v5617_v53 = vpop.f32.mrf.mxu1 }
0x2838   :  { %v4357_v54 = vadd.f32 %v4354_v39, %v6845_v60 }
0x283a   :  { %v4358_v56 = vsel %vm251_vm4, %v4357_v54, 0.0 }
0x283b   :  { %4359 = vadd.xlane.f32.xlu0 %v4358_v56 }
0x28c4   :  { %v4360_v58 = vpop.xlane.xlu0 %4359 }
0x28c5   :  { %v4361_v41 = vmul.f32 0.03125, %v4360_v58 }
0x28c7   :  { %v4362_v61 = vsub.f32 %v4357_v54, %v4361_v41 }
0x28c9   :  { %v4363_v26 = vmul.f32 %v4362_v61, %v4362_v61 }
0x28cb   :  { %v4364_v57 = vsel %vm251_vm4, %v4363_v26, 0.0 }
0x28cc   :  { %4365 = vadd.xlane.f32.xlu1 %v4364_v57 }
0x2955   :  { %v4366_v59 = vpop.xlane.xlu1 %4365 }
0x2956   :  { %v4367_v4 = vmul.f32 0.03125, %v4366_v59 }
0x2958   :  { %v4368_v25 = vadd.f32 1e-05, %v4367_v4 }
0x295a   :  { %5745 = vrsqrt.f32 %v4368_v25 }
0x2967   :  { %v5746_v14 = vpop.eup %5745 }
0x2968   :  { %v4370_v20 = vmul.f32 %v5746_v14, %v4362_v61 }
0x296a   :  { %v4375_v0 = vmul.f32 %v4374_v13, %v4370_v20 }
0x296c   :  { %v4380_v38 = vadd.f32 %v4379_v19, %v4375_v0 }
0x296e   :  { %v4381_v60 = vsel %vm251_vm4, %v4380_v38, 0.0 }
0x296f   :  { %4382 = vadd.xlane.f32.xlu0 %v4381_v60 }
0x29f8   :  { %v4383_v62 = vpop.xlane.xlu0 %4382 }
0x29f9   :  { %v4384_v63 = vmul.f32 0.03125, %v4383_v62 }
0x29fb   :  { %v4385_v2 = vsub.f32 %v4380_v38, %v4384_v63 }
0x29fd   :  { %v4386_v33 = vmul.f32 %v4385_v2, %v4385_v2 }
0x29ff   :  { %v4387_v3 = vsel %vm251_vm4, %v4386_v33, 0.0 }
0x2a00   :  { %4388 = vadd.xlane.f32.xlu1 %v4387_v3 }
0x2a89   :  { %v4389_v5 = vpop.xlane.xlu1 %4388 }
0x2a8a   :  { %v4390_v49 = vmul.f32 0.03125, %v4389_v5 }
0x2a8c   :  { %v4391_v6 = vadd.f32 1e-05, %v4390_v49 }
0x2a8e   :  { %5747 = vrsqrt.f32 %v4391_v6 }
0x2a9b   :  { %v5748_v7 = vpop.eup %5747 }
0x2a9c   :  { %v4393_v12 = vmul.f32 %v5748_v7, %v4385_v2 }
0x2a9e   :  { %v4398_v8 = vmul.f32 %v4946_v21, %v4393_v12 }
0x2aa0   :  { %v4403_v9 = vadd.f32 %v4947_v18, %v4398_v8 }
0x2aa2   :  { %5619 = vmatpush3.msk.msra.mxu0 %vm777_vm8, %v4403_v9 }
0x2aa3   :  { %5621 = vmatmul.mubr.msk.f32.vlgmr.msra.gmra.mxu0 %vm758_vm7, %v78_v32  ;;  %5623 = vmatprep.subr.mxu0 %v5797_v1 }
0x2aa4   :  { %5624 = vmatpush3.msra.mxu0 %v4483_v10  ;;  %5631 = vmatprep.mubr.msk.f32.mxu0 %vm5798_vm2, %v5797_v1 }
0x2aa5   :  { %5625 = vmatprep.subr.mxu0 %v5797_v1 }
0x2aa6   :  { %5626 = vmatpush3.msra.mxu0 %v4482_v28 }
0x2aa7   :  { %5627 = vmatprep.subr.mxu0 %v5797_v1 }
0x2aa8   :  { %5628 = vmatpush3.msra.mxu0 %v4481_v11 }
0x2aa9   :  { %5629 = vmatprep.subr.mxu0 %v5797_v1 }
0x2aaa   :  { %5630 = vmatpush3.msra.mxu0 %v4480_v15 }
0x2aab   :  { %5645 = vmatprep.subr.mxu0 %v5797_v1 }
0x2b63   :  { %v4476_v23 = vpop.f32.mrf.mxu0 }
0x2b64   :  { %v4567_v31 = vrot.slane %v4476_v23, 2  ;;  %5632 = vmatmul.mubr.msk.f32.vlgmr.msra.gmra.mxu0 %vm426_vm6, %v4476_v23  ;;  %v4646_v36 = vrot.slane %v4476_v23, 4 }
0x2b65   :  { %5646 = vmatpush3.msra.mxu0 %v4960_v30  ;;  %v5622_v22 = vpop.f32.mrf.mxu0  ;;  %5653 = vmatprep.mubr.msk.f32.mxu0 %vm5798_vm2, %v5797_v1 }
0x2b66   :  { %5647 = vmatprep.subr.mxu0 %v5797_v1  ;;  %5643 = vmatmul.mubr.msk.f32.vlgmr.msra.gmra.mxu1 %vm426_vm6, %v4567_v31 }
0x2b67   :  { %5648 = vmatpush3.msra.mxu0 %v4959_v34 }
0x2b68   :  { %5649 = vmatprep.subr.mxu0 %v5797_v1 }
0x2b69   :  { %5650 = vmatpush3.msra.mxu0 %v4958_v24 }
0x2b6a   :  { %5651 = vmatprep.subr.mxu0 %v5797_v1 }
0x2b6b   :  { %5652 = vmatpush3.msra.mxu0 %v4957_v35 }
0x2b6c   :  { %5654 = vmatmul.mubr.msk.f32.vlgmr.msra.gmra.mxu0 %vm426_vm6, %v4646_v36 }
0x2c24   :  { %v4553_v40 = vpop.f32.mrf.mxu0 }
0x2c25   :  { %v4561_v42 = vadd.f32 %v4951_v37, %v4553_v40 }
0x2c26   :  { %v5633_v55 = vpop.f32.mrf.mxu0  ;;  %v4636_v47 = vpop.f32.mrf.mxu1 }
0x2c27   :  { %v4640_v44 = vadd.f32 %v4636_v47, %v4561_v42 }
0x2c28   :  { %v5644_v43 = vpop.f32.mrf.mxu1 }
0x2c2c   :  { %v4715_v45 = vpop.f32.mrf.mxu0 }
0x2c2d   :  { %v4719_v46 = vadd.f32 %v4715_v45, %v4640_v44 }
0x2c2e   :  { %v5655_v48 = vpop.f32.mrf.mxu0 }
0x2c2f   :  { %4720 = vst.msk [vmem:[#allocation2] sm:$0x3] %vm2134_vm12, %v4719_v46 }
0x2c30   :  { %5786 = shalt.err (!%p5783_p4)
}
0x2c31   :  { %4730 = dma.vmem_to_hbm [thread:$0]  %s4728_s17, 32, %s6989_s14, [#allocation3]  }
0x2c32   :  { %5795 = dma.done.wait [#allocation3], 32  }
0x2c33   :  { %5796 = vsyncadd [#allocation3], 4294967264 }
0x2c34   :  { %4734 = vsyncpa [#allocation3], 1 }

</bundles_post_ra>
